<compile_context>
chip_gen: v6e
topology: v6e:2x2x1
jax: 0.10.0
libtpu: 0.0.40
codegen_flags: <defaults>
</compile_context>

<pallas_src>
import functools

import jax
import jax.numpy as jnp
from jax import lax
from jax.experimental import pallas as pl
from jax.experimental.pallas import tpu as pltpu

LRELU_SLOPE = 0.1
HALO_L = 128  # halo width along L = one lane block; covers receptive fields p1+p2 <= 128


def get_padding(kernel_size: int, dilation: int = 1) -> int:
    return (kernel_size * dilation - dilation) // 2


# ------------------------------ Pallas kernel -------------------------------
def _resblock2_kernel(xc_ref, xl_ref, xr_ref, w_ref, b_ref, o_ref, *, K, d1, d2, TL, L):
    """Fused ResBlock2 on one (batch, L-tile) block, native NCL layout.

    xc_ref : (1, C, TL)    current tile of x
    xl_ref : (1, C, 128)   lane block left of the tile (clamped at ends; masked here)
    xr_ref : (1, C, 128)   lane block right of the tile (clamped at ends; masked here)
    w_ref  : (2K, C, C)    per-tap weights, w_ref[conv*K + t] = W_conv[:, :, t]
    b_ref  : (2, C, 1)     biases (f32 column vectors)
    o_ref  : (1, C, TL)    output tile
    """
    j = pl.program_id(1)
    p1 = (K * d1 - d1) // 2
    p2 = (K * d2 - d2) // 2
    W = TL + 2 * HALO_L

    # Extended window covering global columns [j*TL - 128, j*TL + TL + 128).
    # All three pieces are 128-lane aligned, so this is a plain copy (no relayout).
    ext = jnp.concatenate([xl_ref[0], xc_ref[0], xr_ref[0]], axis=-1)      # (C, W)

    # 0/1 validity of each global column: reproduces Conv1d zero padding at the
    # sequence ends and zeroes the clamped halo blocks of the first/last tile.
    g = j * TL - HALO_L + lax.broadcasted_iota(jnp.int32, (1, W), 1)
    validf = ((g >= 0) & (g < L)).astype(jnp.float32)                      # (1, W)

    xe = ext.astype(jnp.float32) * validf        # masked residual / conv input (f32)

    def conv(src_f32, widx, dil, pad):
        """sum_t W[t] @ shift(src, t*dil - pad), f32 accumulation on the MXU."""
        src = src_f32.astype(w_ref.dtype)        # cast only the matmul operand
        acc = None
        for t in range(K):
            sh = (pad - t * dil) % W             # op[c, l] = src[c, l + t*dil - pad]
            op = pltpu.roll(src, sh, axis=1) if sh else src
            y = jnp.dot(w_ref[widx * K + t], op, preferred_element_type=jnp.float32)
            acc = y if acc is None else acc + y
        return acc

    # conv 1 (dilation d1): leaky_relu -> dilated conv -> +bias -> +residual
    xt = jnp.where(xe >= 0, xe, LRELU_SLOPE * xe)
    y1 = conv(xt, 0, d1, p1) + b_ref[0] + xe

    # conv 2 (dilation d2): same; y1 is re-zeroed outside [0, L) (its zero padding)
    xt2 = jnp.where(y1 >= 0, y1, LRELU_SLOPE * y1) * validf
    y2 = conv(xt2, 1, d2, p2) + b_ref[1] + y1

    # lane-aligned slice (offset 128) -> lane-dense store (TL is a multiple of 128)
    o_ref[0] = y2[:, HALO_L:HALO_L + TL].astype(o_ref.dtype)


# --------------------------------- wrapper ----------------------------------
def _pick_tile_l(L, N, cap=1024):
    """Largest multiple of 128 dividing L, capped; halved if the grid would be <2 steps."""
    t = min(L, cap)
    t -= t % 128
    t = max(t, 128)
    while t > 128 and L % t:
        t -= 128
    # keep >= 2 ("parallel","parallel") grid steps so v7x megacore feeds both cores
    if N * (L // t) < 2 and t % 256 == 0:
        t //= 2
    return t


def resblock2_forward(x_ncl, params, dilations=(1, 3), *, tile_l=None, weight_dtype=None,
                      vmem_limit_bytes=32 * 1024 * 1024):
    """PyTorch-equivalent ResBlock2 forward.  x_ncl: (N, C, L), returned as (N, C, L)."""
    N, C, L = x_ncl.shape
    (w1, b1), (w2, b2) = params              # torch Conv1d weights: (C_out, C_in, K)
    K = w1.shape[-1]
    d1, d2 = dilations
    p1, p2 = get_padding(K, d1), get_padding(K, d2)
    assert p1 + p2 <= HALO_L, "receptive field must fit in the 128-column halo"
    assert L % 128 == 0, "sequence length must be a multiple of 128 (lane block)"
    TL = tile_l if tile_l is not None else _pick_tile_l(L, N)
    assert TL % 128 == 0 and L % TL == 0

    wdt = weight_dtype if weight_dtype is not None else x_ncl.dtype
    # per-tap weights: w_all[i*K + t] = conv_i.weight[:, :, t]   (C_out, C_in)
    w_all = jnp.concatenate([jnp.moveaxis(w1, -1, 0), jnp.moveaxis(w2, -1, 0)],
                            axis=0).astype(wdt)                        # (2K, C, C)
    b_all = jnp.stack([b1, b2]).reshape(2, C, 1).astype(jnp.float32)   # (2, C, 1)

    NLB = L // HALO_L            # lane blocks along L
    R = TL // HALO_L             # lane blocks per L tile
    kernel = functools.partial(_resblock2_kernel, K=K, d1=d1, d2=d2, TL=TL, L=L)

    return pl.pallas_call(
        kernel,
        out_shape=jax.ShapeDtypeStruct((N, C, L), x_ncl.dtype),
        grid_spec=pltpu.PrefetchScalarGridSpec(
            num_scalar_prefetch=0,
            grid=(N, L // TL),
            in_specs=[
                pl.BlockSpec((1, C, TL), lambda n, j: (n, 0, j)),
                # 128-column halo views of the SAME x array (clamped at the sequence
                # ends; the kernel zero-masks them there via the validity row).
                pl.BlockSpec((1, C, HALO_L),
                             lambda n, j: (n, 0, jnp.maximum(j * R - 1, 0))),
                pl.BlockSpec((1, C, HALO_L),
                             lambda n, j: (n, 0, jnp.minimum((j + 1) * R, NLB - 1))),
                # weights / biases: constant block index -> fetched once, not per step
                pl.BlockSpec((2 * K, C, C), lambda n, j: (0, 0, 0)),
                pl.BlockSpec((2, C, 1), lambda n, j: (0, 0, 0)),
            ],
            out_specs=pl.BlockSpec((1, C, TL), lambda n, j: (n, 0, j)),
        ),
        compiler_params=pltpu.CompilerParams(
            dimension_semantics=("parallel", "parallel"),
            vmem_limit_bytes=vmem_limit_bytes,
        ),
    )(x_ncl, x_ncl, x_ncl, w_all, b_all)


# ------------------------- pure-JAX reference (glue) ------------------------
def resblock2_ref(x_ncl, params, dilations=(1, 3)):
    x = x_ncl
    for (w, b), d in zip(params, dilations):
        K = w.shape[-1]
        pad = get_padding(K, d)
        xt = jnp.where(x >= 0, x, LRELU_SLOPE * x)
        xt = lax.conv_general_dilated(
            xt, w, window_strides=(1,), padding=[(pad, pad)],
            rhs_dilation=(d,), dimension_numbers=("NCH", "OIH", "NCH"))
        xt = xt + b[None, :, None]
        x = xt + x
    return x


# ----------------------------------- main -----------------------------------
if __name__ == "__main__":
    N, C, L = 2, 64, 512         # batch, channels, sequence length (small demo)
    K = 3                        # kernel_size
    dilations = (1, 3)

    key = jax.random.PRNGKey(0)
    kx, kw0, kw1 = jax.random.split(key, 3)
    x = jax.random.normal(kx, (N, C, L), dtype=jnp.float32)

    # deterministic "kaiming-normal-like" init of the effective (weight-normed)
    # conv weights: std = sqrt(2 / fan_out), fan_out = C_out * K; bias = 0.
    std = (2.0 / (C * K)) ** 0.5
    params = [
        (jax.random.normal(kw0, (C, C, K), dtype=jnp.float32) * std,
         jnp.zeros((C,), jnp.float32)),
        (jax.random.normal(kw1, (C, C, K), dtype=jnp.float32) * std,
         jnp.zeros((C,), jnp.float32)),
    ]

    ref = resblock2_ref(x, params, dilations)

    # f32 path, default tile (TL=512 -> grid (2,1); boundary halos fully masked)
    out = jax.block_until_ready(resblock2_forward(x, params, dilations))
    assert out.shape == (N, C, L)
    err = float(jnp.max(jnp.abs(out - ref)))
    assert jnp.allclose(out, ref, atol=1e-3, rtol=1e-3), err

    # multi-tile path (tile_l=128 -> grid (2,4)) exercising real neighbor halo data
    out_t = jax.block_until_ready(resblock2_forward(x, params, dilations, tile_l=128))
    err_t = float(jnp.max(jnp.abs(out_t - ref)))
    assert jnp.allclose(out_t, ref, atol=1e-3, rtol=1e-3), err_t

    # bf16 HBM operands (x + weights), f32 elementwise / accumulation / residuals —
    # the memory-bound fast path on v6e/v7x (and byte-savings path on v5e).
    out_bf16 = jax.block_until_ready(
        resblock2_forward(x.astype(jnp.bfloat16), params, dilations))
    err_bf16 = float(jnp.max(jnp.abs(out_bf16.astype(jnp.float32) - ref)))
    assert jnp.allclose(out_bf16.astype(jnp.float32), ref, atol=1e-1, rtol=1e-1), err_bf16

    print("KERNEL_OK")
</pallas_src>

<mosaic_0001>
module attributes {stable_mosaic.version = 11 : i64} {
  func.func @_resblock2_kernel(%arg0: i32, %arg1: i32, %arg2: memref<1x64x512xf32, #tpu.memory_space<vmem>>, %arg3: memref<1x64x128xf32, #tpu.memory_space<vmem>>, %arg4: memref<1x64x128xf32, #tpu.memory_space<vmem>>, %arg5: memref<6x64x64xf32, #tpu.memory_space<vmem>>, %arg6: memref<2x64x1xf32, #tpu.memory_space<vmem>>, %arg7: memref<1x64x512xf32, #tpu.memory_space<vmem>>) attributes {dimension_semantics = [#tpu.dimension_semantics<parallel>, #tpu.dimension_semantics<parallel>], iteration_bounds = array<i64: 2, 1>, scalar_prefetch = 0 : i64, scratch_operands = 0 : i64, tpu.core_type = #tpu.core_type<tc>, window_params = [{transform_indices = @transform_0, window_bounds = array<i64: 1, 64, 512>}, {transform_indices = @transform_1, window_bounds = array<i64: 1, 64, 128>}, {transform_indices = @transform_2, window_bounds = array<i64: 1, 64, 128>}, {pipeline_mode = #tpu.pipeline_mode<synchronous>, transform_indices = @transform_3, window_bounds = array<i64: 6, 64, 64>}, {pipeline_mode = #tpu.pipeline_mode<synchronous>, transform_indices = @transform_4, window_bounds = array<i64: 2, 64, 1>}, {transform_indices = @transform_5, window_bounds = array<i64: 1, 64, 512>}]} {
    %c0 = arith.constant 0 : index
    %c0_0 = arith.constant 0 : index
    %c0_1 = arith.constant 0 : index
    %0 = vector.load %arg3[%c0, %c0_0, %c0_1] : memref<1x64x128xf32, #tpu.memory_space<vmem>>, vector<1x64x128xf32>
    %1 = vector.shape_cast %0 : vector<1x64x128xf32> to vector<64x128xf32>
    %c0_2 = arith.constant 0 : index
    %c0_3 = arith.constant 0 : index
    %c0_4 = arith.constant 0 : index
    %2 = vector.load %arg2[%c0_2, %c0_3, %c0_4] : memref<1x64x512xf32, #tpu.memory_space<vmem>>, vector<1x64x512xf32>
    %3 = vector.shape_cast %2 : vector<1x64x512xf32> to vector<64x512xf32>
    %c0_5 = arith.constant 0 : index
    %c0_6 = arith.constant 0 : index
    %c0_7 = arith.constant 0 : index
    %4 = vector.load %arg4[%c0_5, %c0_6, %c0_7] : memref<1x64x128xf32, #tpu.memory_space<vmem>>, vector<1x64x128xf32>
    %5 = vector.shape_cast %4 : vector<1x64x128xf32> to vector<64x128xf32>
    %6 = tpu.concatenate %1, %3, %5 in 1 : vector<64x128xf32>, vector<64x512xf32>, vector<64x128xf32> -> vector<64x768xf32>
    %c512_i32 = arith.constant 512 : i32
    %7 = arith.muli %arg1, %c512_i32 : i32
    %c128_i32 = arith.constant 128 : i32
    %8 = arith.subi %7, %c128_i32 : i32
    %9 = tpu.iota {dimensions = array<i32: 1>} : vector<1x768xi32>
    %10 = vector.broadcast %8 : i32 to vector<1x768xi32>
    %11 = arith.addi %10, %9 : vector<1x768xi32>
    %c0_i32 = arith.constant 0 : i32
    %12 = vector.broadcast %c0_i32 : i32 to vector<1x768xi32>
    %13 = arith.cmpi sge, %11, %12 : vector<1x768xi32>
    %c512_i32_8 = arith.constant 512 : i32
    %14 = vector.broadcast %c512_i32_8 : i32 to vector<1x768xi32>
    %15 = arith.cmpi slt, %11, %14 : vector<1x768xi32>
    %16 = arith.andi %13, %15 : vector<1x768xi1>
    %17 = arith.extui %16 : vector<1x768xi1> to vector<1x768xi32>
    %18 = arith.sitofp %17 : vector<1x768xi32> to vector<1x768xf32>
    %19 = vector.broadcast %18 : vector<1x768xf32> to vector<64x768xf32>
    %20 = arith.mulf %6, %19 : vector<64x768xf32>
    %cst = arith.constant 0.000000e+00 : f32
    %21 = vector.broadcast %cst : f32 to vector<64x768xf32>
    %22 = arith.cmpf oge, %20, %21 : vector<64x768xf32>
    %cst_9 = arith.constant 1.000000e-01 : f32
    %23 = vector.broadcast %cst_9 : f32 to vector<64x768xf32>
    %24 = arith.mulf %23, %20 : vector<64x768xf32>
    %25 = arith.select %22, %20, %24 : vector<64x768xi1>, vector<64x768xf32>
    %c1_i32 = arith.constant 1 : i32
    %26 = tpu.dynamic_rotate %25 by %c1_i32 dim 1 : vector<64x768xf32>, i32 -> vector<64x768xf32>
    %c0_10 = arith.constant 0 : index
    %c0_11 = arith.constant 0 : index
    %c0_12 = arith.constant 0 : index
    %27 = vector.load %arg5[%c0_10, %c0_11, %c0_12] : memref<6x64x64xf32, #tpu.memory_space<vmem>>, vector<1x64x64xf32>
    %28 = vector.shape_cast %27 : vector<1x64x64xf32> to vector<64x64xf32>
    %cst_13 = arith.constant dense<0.000000e+00> : vector<64x768xf32>
    %29 = tpu.matmul %28, %26, %cst_13 {dimension_numbers = #tpu.dot_dimension_numbers<[1], [0], [0], [1], [0, 0, 1, 1], [], []>} : vector<64x64xf32>, vector<64x768xf32>, vector<64x768xf32> -> vector<64x768xf32>
    %c1 = arith.constant 1 : index
    %c0_14 = arith.constant 0 : index
    %c0_15 = arith.constant 0 : index
    %30 = vector.load %arg5[%c1, %c0_14, %c0_15] : memref<6x64x64xf32, #tpu.memory_space<vmem>>, vector<1x64x64xf32>
    %31 = vector.shape_cast %30 : vector<1x64x64xf32> to vector<64x64xf32>
    %cst_16 = arith.constant dense<0.000000e+00> : vector<64x768xf32>
    %32 = tpu.matmul %31, %25, %cst_16 {dimension_numbers = #tpu.dot_dimension_numbers<[1], [0], [0], [1], [0, 0, 1, 1], [], []>} : vector<64x64xf32>, vector<64x768xf32>, vector<64x768xf32> -> vector<64x768xf32>
    %33 = arith.addf %29, %32 : vector<64x768xf32>
    %c767_i32 = arith.constant 767 : i32
    %34 = tpu.dynamic_rotate %25 by %c767_i32 dim 1 : vector<64x768xf32>, i32 -> vector<64x768xf32>
    %c2 = arith.constant 2 : index
    %c0_17 = arith.constant 0 : index
    %c0_18 = arith.constant 0 : index
    %35 = vector.load %arg5[%c2, %c0_17, %c0_18] : memref<6x64x64xf32, #tpu.memory_space<vmem>>, vector<1x64x64xf32>
    %36 = vector.shape_cast %35 : vector<1x64x64xf32> to vector<64x64xf32>
    %cst_19 = arith.constant dense<0.000000e+00> : vector<64x768xf32>
    %37 = tpu.matmul %36, %34, %cst_19 {dimension_numbers = #tpu.dot_dimension_numbers<[1], [0], [0], [1], [0, 0, 1, 1], [], []>} : vector<64x64xf32>, vector<64x768xf32>, vector<64x768xf32> -> vector<64x768xf32>
    %38 = arith.addf %33, %37 : vector<64x768xf32>
    %c0_20 = arith.constant 0 : index
    %c0_21 = arith.constant 0 : index
    %c0_22 = arith.constant 0 : index
    %39 = vector.load %arg6[%c0_20, %c0_21, %c0_22] : memref<2x64x1xf32, #tpu.memory_space<vmem>>, vector<1x64x1xf32>
    %40 = vector.shape_cast %39 : vector<1x64x1xf32> to vector<64x1xf32>
    %41 = vector.broadcast %40 : vector<64x1xf32> to vector<64x768xf32>
    %42 = arith.addf %38, %41 : vector<64x768xf32>
    %43 = arith.addf %42, %20 : vector<64x768xf32>
    %cst_23 = arith.constant 0.000000e+00 : f32
    %44 = vector.broadcast %cst_23 : f32 to vector<64x768xf32>
    %45 = arith.cmpf oge, %43, %44 : vector<64x768xf32>
    %cst_24 = arith.constant 1.000000e-01 : f32
    %46 = vector.broadcast %cst_24 : f32 to vector<64x768xf32>
    %47 = arith.mulf %46, %43 : vector<64x768xf32>
    %48 = arith.select %45, %43, %47 : vector<64x768xi1>, vector<64x768xf32>
    %49 = vector.broadcast %18 : vector<1x768xf32> to vector<64x768xf32>
    %50 = arith.mulf %48, %49 : vector<64x768xf32>
    %c3_i32 = arith.constant 3 : i32
    %51 = tpu.dynamic_rotate %50 by %c3_i32 dim 1 : vector<64x768xf32>, i32 -> vector<64x768xf32>
    %c3 = arith.constant 3 : index
    %c0_25 = arith.constant 0 : index
    %c0_26 = arith.constant 0 : index
    %52 = vector.load %arg5[%c3, %c0_25, %c0_26] : memref<6x64x64xf32, #tpu.memory_space<vmem>>, vector<1x64x64xf32>
    %53 = vector.shape_cast %52 : vector<1x64x64xf32> to vector<64x64xf32>
    %cst_27 = arith.constant dense<0.000000e+00> : vector<64x768xf32>
    %54 = tpu.matmul %53, %51, %cst_27 {dimension_numbers = #tpu.dot_dimension_numbers<[1], [0], [0], [1], [0, 0, 1, 1], [], []>} : vector<64x64xf32>, vector<64x768xf32>, vector<64x768xf32> -> vector<64x768xf32>
    %c4 = arith.constant 4 : index
    %c0_28 = arith.constant 0 : index
    %c0_29 = arith.constant 0 : index
    %55 = vector.load %arg5[%c4, %c0_28, %c0_29] : memref<6x64x64xf32, #tpu.memory_space<vmem>>, vector<1x64x64xf32>
    %56 = vector.shape_cast %55 : vector<1x64x64xf32> to vector<64x64xf32>
    %cst_30 = arith.constant dense<0.000000e+00> : vector<64x768xf32>
    %57 = tpu.matmul %56, %50, %cst_30 {dimension_numbers = #tpu.dot_dimension_numbers<[1], [0], [0], [1], [0, 0, 1, 1], [], []>} : vector<64x64xf32>, vector<64x768xf32>, vector<64x768xf32> -> vector<64x768xf32>
    %58 = arith.addf %54, %57 : vector<64x768xf32>
    %c765_i32 = arith.constant 765 : i32
    %59 = tpu.dynamic_rotate %50 by %c765_i32 dim 1 : vector<64x768xf32>, i32 -> vector<64x768xf32>
    %c5 = arith.constant 5 : index
    %c0_31 = arith.constant 0 : index
    %c0_32 = arith.constant 0 : index
    %60 = vector.load %arg5[%c5, %c0_31, %c0_32] : memref<6x64x64xf32, #tpu.memory_space<vmem>>, vector<1x64x64xf32>
    %61 = vector.shape_cast %60 : vector<1x64x64xf32> to vector<64x64xf32>
    %cst_33 = arith.constant dense<0.000000e+00> : vector<64x768xf32>
    %62 = tpu.matmul %61, %59, %cst_33 {dimension_numbers = #tpu.dot_dimension_numbers<[1], [0], [0], [1], [0, 0, 1, 1], [], []>} : vector<64x64xf32>, vector<64x768xf32>, vector<64x768xf32> -> vector<64x768xf32>
    %63 = arith.addf %58, %62 : vector<64x768xf32>
    %c1_34 = arith.constant 1 : index
    %c0_35 = arith.constant 0 : index
    %c0_36 = arith.constant 0 : index
    %64 = vector.load %arg6[%c1_34, %c0_35, %c0_36] : memref<2x64x1xf32, #tpu.memory_space<vmem>>, vector<1x64x1xf32>
    %65 = vector.shape_cast %64 : vector<1x64x1xf32> to vector<64x1xf32>
    %66 = vector.broadcast %65 : vector<64x1xf32> to vector<64x768xf32>
    %67 = arith.addf %63, %66 : vector<64x768xf32>
    %68 = arith.addf %67, %43 : vector<64x768xf32>
    %69 = vector.extract_strided_slice %68 {offsets = [0, 128], sizes = [64, 512], strides = [1, 1]} : vector<64x768xf32> to vector<64x512xf32>
    %c0_37 = arith.constant 0 : index
    %c0_38 = arith.constant 0 : index
    %c0_39 = arith.constant 0 : index
    %70 = vector.load %arg7[%c0_37, %c0_38, %c0_39] : memref<1x64x512xf32, #tpu.memory_space<vmem>>, vector<1x64x512xf32>
    %71 = vector.shape_cast %70 : vector<1x64x512xf32> to vector<64x512xf32>
    %72 = vector.shape_cast %69 : vector<64x512xf32> to vector<1x64x512xf32>
    tpu.vector_store %arg7[%c0_37, %c0_38, %c0_39], %72 {strides = array<i32>} : memref<1x64x512xf32, #tpu.memory_space<vmem>>, vector<1x64x512xf32>,
    return
  }
  func.func @transform_0(%arg0: i32, %arg1: i32) -> (i32, i32, i32) {
    %c0_i32 = arith.constant 0 : i32
    %c0_i32_0 = arith.constant 0 : i32
    return %arg0, %c0_i32, %arg1 : i32, i32, i32
  }
  func.func @transform_1(%arg0: i32, %arg1: i32) -> (i32, i32, i32) {
    %c4_i32 = arith.constant 4 : i32
    %0 = arith.muli %arg1, %c4_i32 : i32
    %c1_i32 = arith.constant 1 : i32
    %1 = arith.subi %0, %c1_i32 : i32
    %c0_i32 = arith.constant 0 : i32
    %2 = arith.maxsi %1, %c0_i32 : i32
    %c0_i32_0 = arith.constant 0 : i32
    %c0_i32_1 = arith.constant 0 : i32
    return %arg0, %c0_i32_0, %2 : i32, i32, i32
  }
  func.func @transform_2(%arg0: i32, %arg1: i32) -> (i32, i32, i32) {
    %c1_i32 = arith.constant 1 : i32
    %0 = arith.addi %arg1, %c1_i32 : i32
    %c4_i32 = arith.constant 4 : i32
    %1 = arith.muli %0, %c4_i32 : i32
    %c3_i32 = arith.constant 3 : i32
    %2 = arith.minsi %1, %c3_i32 : i32
    %c0_i32 = arith.constant 0 : i32
    %c0_i32_0 = arith.constant 0 : i32
    return %arg0, %c0_i32, %2 : i32, i32, i32
  }
  func.func @transform_3(%arg0: i32, %arg1: i32) -> (i32, i32, i32) {
    %c0_i32 = arith.constant 0 : i32
    %c0_i32_0 = arith.constant 0 : i32
    %c0_i32_1 = arith.constant 0 : i32
    %c0_i32_2 = arith.constant 0 : i32
    return %c0_i32, %c0_i32_0, %c0_i32_1 : i32, i32, i32
  }
  func.func @transform_4(%arg0: i32, %arg1: i32) -> (i32, i32, i32) {
    %c0_i32 = arith.constant 0 : i32
    %c0_i32_0 = arith.constant 0 : i32
    %c0_i32_1 = arith.constant 0 : i32
    %c0_i32_2 = arith.constant 0 : i32
    return %c0_i32, %c0_i32_0, %c0_i32_1 : i32, i32, i32
  }
  func.func @transform_5(%arg0: i32, %arg1: i32) -> (i32, i32, i32) {
    %c0_i32 = arith.constant 0 : i32
    %c0_i32_0 = arith.constant 0 : i32
    return %arg0, %c0_i32, %arg1 : i32, i32, i32
  }
}

</mosaic_0001>

<bundles_post_ra>
// kernel: tpu_custom_call.1
= control target key start
LH: loop header
LB: loop body
LE: loop exit
PB: predicated region body
PF: predicated region fallthrough
CT: control target
= control target key end

     0   :  { %s8093_s0 = inlined_call_operand.hbm [shape: f32[2,64,512], index: 0, kind: input, shape index: {}]   ;;  %s8094_s1 = inlined_call_operand.hbm [shape: f32[2,64,512], index: 1, kind: input, shape index: {}]   ;;  %s8095_s2 = inlined_call_operand.hbm [shape: f32[2,64,512], index: 2, kind: input, shape index: {}]   ;;  %s8096_s3 = inlined_call_operand.hbm [shape: f32[6,64,64], index: 3, kind: input, shape index: {}]   ;;  %s8097_s4 = inlined_call_operand.vmem [shape: f32[2,64,1], index: 4, kind: input, shape index: {}]   ;;  %s8098_s5 = inlined_call_operand.hbm [shape: f32[2,64,512], index: 5, kind: output, shape index: {}]  }
   0x1   :  { %8165 = sst [smem:[#allocation77_spill]] %s8093_s0 }
   0x2   :  { %8166 = sst [smem:[#allocation78_spill]] %s8094_s1 }
   0x3   :  { %8167 = sst [smem:[#allocation79_spill]] %s8096_s3 }
   0x4   :  { %10 = vsyncpa [#allocation3], 0 }
   0x5   :  { %12 = vsyncpa [#allocation3 + $0x1], 0 }
   0x6   :  { %13 = vsyncpa [#allocation6], 0 }
   0x7   :  { %15 = vsyncpa [#allocation6 + $0x1], 0 }
   0x8   :  { %16 = vsyncpa [#allocation9], 0 }
   0x9   :  { %17 = vsyncpa [#allocation4], 0 }
   0xa   :  { %19 = vsyncpa [#allocation4 + $0x1], 0  ;;  %s4723_s18 = smov 0   ;;  %s4725_s19 = smov 0  }
   0xb   :  { %s4727_s20 = smov 0   ;;  %s4729_s21 = smov 0  }
   0xc   :  { %s4731_s22 = smov 0   ;;  %s4733_s23 = smov 0  }
   0xd LB: > { %8168 = sst [smem:[#allocation15_spill]] %s4662_s20  ;;  %s37_s24 = sadd.s32 1, %s4670_s22  ;;  %s4674_s23 = sphi %s4733_s23, %s25_s23   ;;  %s4670_s22 = sphi %s4731_s22, %s8401_s22   ;;  %s4666_s21 = sphi %s4729_s21, %s8400_s21   ;;  %s4662_s20 = sphi %s4727_s20, %s8399_s20   ;;  %s4658_s19 = sphi %s4725_s19, %s8403_s19   ;;  %s4654_s18 = sphi %s4723_s18, %s8402_s18  }
   0xe   : > { %8169 = sst [smem:[#allocation16_spill]] %s4670_s22  ;;  %s46_s25 = sadd.s32 1, %s4662_s20 }
   0xf   : > { %p39_p0 = scmp.ge.s32.totalorder %s37_s24, 2  ;;  %p53_p1 = scmp.ne.s32.totalorder %s4662_s20, %s4658_s19 }
  0x10   : > { %p54_p2 = scmp.eq.s32.totalorder %s4674_s23, 0  ;;  %p4378_p6 = scmp.lt.s32.totalorder %s4674_s23, 2 }
  0x11   : > { %s8405_s24 = smov (%p39_p0, %s37_s24), 0  ;;  %s4768_s27 = sand.u32 1, %s4662_s20  }
  0x12   : > { %8170 = sst [smem:[#allocation17_spill]] %s8405_s24  ;;  %p55_p3 = por %p54_p2, %p53_p1 }
  0x13   : > { %s41_s26 = ssub.s32 %s4670_s22, %s8405_s24  ;;  %s4771_s28 = sshll.u32 %s4670_s22, 12 }
  0x14   : > { %p44_p5 = scmp.eq.s32.totalorder %s41_s26, 0  ;;  %p4776_p7 = pnand %p4378_p6, %p55_p3 }
  0x15   : > { %s264_s6 = sand.u32 1, %s4674_s23   ;;  %s4172_s7 = sshll.u32 %s4768_s27, 6 }
  0x16   : > { %s4774_s29 = scalar_select %p44_p5, %s4662_s20, %s46_s25  }
  0x17   : > { %s8173_s1 = sld [smem:[#allocation78_spill]]  ;;  %s268_s11 = scalar_lea.vmem [#allocation5], %s4172_s7 }
  0x18   : > { %8171 = sst [smem:[#allocation18_spill]] %s4774_s29  ;;  %s280_s12 = sshll.u32 %s268_s11, 4  ;;  %s281_s12 = int_to_ptr.vmem [resolvable:$true] %s280_s12 }
  0x19   : > { %s294_s13 = scalar_lea.vmem [#allocation7], %s4172_s7  ;;  %s4786_s15 = scalar_lea.sflag [#allocation6], %s264_s6 }
  0x1a   : > { %s306_s14 = sshll.u32 %s294_s13, 4  ;;  %p8107_p8 = pneg %p4776_p7  ;;  %s4799_s14 = int_to_ptr.vmem [resolvable:$true] %s306_s14 }
  0x1b   : > { %s4489_s16 = scalar_lea.vmem %s281_s12, 1024  ;;  %s4676_s17 = smov [#allocation5]  }
  0x1c   : > { %p4490_p9 = scmp.ne.s32.totalorder %s281_s12, %s4489_s16  ;;  %s4494_s25 = sshll.u32 %s4676_s17, 4  ;;  %s4495_s25 = int_to_ptr.vmem [resolvable:$false] %s4494_s25 }
  0x1d   : > { %s279_s10 = scalar_lea.hbm %s8173_s1, %s4771_s28  ;;  %s4496_s26 = scalar_lea.vmem %s4495_s25, 2048 }
  0x1e   : > { %p4492_p10 = pnand %p4490_p9, %p8107_p8  ;;  %p4497_p12 = scmp.lt.s32.totalorder %s281_s12, %s4495_s25 }
  0x1f   : > { %p4498_p13 = scmp.lt.s32.totalorder %s4496_s26, %s4489_s16 }
  0x20   : > { %p4493_p11 = pneg %p4492_p10 }
  0x21   : > { %p4499_p0 = por %p4498_p13, %p4497_p12 }
  0x23   : > { %p4500_p2 = pnand %p4499_p0, %p4493_p11 }
  0x25   : > { %4503 = shalt.err (!%p4500_p2)
}
  0x26   : > { %s8099_s7 = smov 512   ;;  %s8101_s6 = smov 128  }
  0x27   : > { %s8103_s8 = smov 8   ;;  %s4802_s9 = sadd.s32 4294967295, %s4674_s23  }
  0x28   : > { %4369 = dma.hbm_to_vmem [thread:$0]  (!%p4776_p7), %s279_s10, 1024, %s281_s12, %s4786_s15, %s8099_s7, %s8101_s6, %s8103_s8  }
  0x29   : > { %s4165_s11 = sadd.s32 4294967294, %s4674_s23   ;;  %p59_p3 = scmp.ne.s32.totalorder %s4658_s19, %s4654_s18 }
  0x2a   : > { %p60_p5 = scmp.eq.s32.totalorder %s4802_s9, 0  ;;  %p199_p6 = scmp.eq.s32.totalorder %s4802_s9, 1 }
  0x2b   : > { %p205_p9 = scmp.eq.s32.totalorder %s4165_s11, 1  ;;  %p4166_p10 = scmp.ge.s32.totalorder %s4674_s23, 1 }
  0x2c   : > { %p4812_p11 = por %p60_p5, %p59_p3  ;;  %p4819_p12 = por %p199_p6, %p53_p1 }
  0x2d   : > { %p4823_p13 = por %p205_p9, %p59_p3  ;;  %p212_p0 = scmp.lt.s32.totalorder %s4674_s23, 3 }
  0x2e   : > { %s8175_s12 = scalar_select %p4819_p12, 1, 0 }
  0x2f   : > { %s8176_s13 = scalar_select %p4823_p13, 1, 0 }
  0x30   : > { %p4828_p2 = pnand %p4166_p10, %p212_p0  ;;  %s4680_s17 = smov [#allocation8]  }
  0x31   : > { %s224_s25 = sshll.u32 %s4680_s17, 4  ;;  %s4169_s26 = sshll.u32 %s4768_s27, 8  ;;  %s225_s25 = int_to_ptr.vmem [resolvable:$true] %s224_s25 }
  0x32   : > { %p4359_p4 = pneg %p4828_p2  ;;  %s8178_s0 = sld [smem:[#allocation77_spill]] }
  0x33   : > { %s245_s1 = scalar_lea.vmem [#allocation2], %s4169_s26  ;;  %s4515_s17 = scalar_lea.vmem %s225_s25, 6144 }
  0x34   : > { %p4841_p1 = pnand %p4359_p4, %p60_p5  ;;  %s254_s24 = sshll.u32 %s245_s1, 4  ;;  %s4845_s24 = int_to_ptr.vmem [resolvable:$true] %s254_s24 }
  0x35   : > { %p4516_p6 = scmp.ne.s32.totalorder %s225_s25, %s4515_s17  ;;  %p4523_p0 = scmp.lt.s32.totalorder %s225_s25, %s225_s25 }
  0x36   : > { %p4506_p3 = pneg %p4841_p1  ;;  %p4524_p8 = scmp.lt.s32.totalorder %s4515_s17, %s4515_s17 }
  0x38   : > { %p4518_p9 = pnand %p4516_p6, %p4506_p3  ;;  %p4525_p13 = por %p4524_p8, %p4523_p0 }
  0x3a   : > { %p4519_p10 = pneg %p4518_p9 }
  0x3c   : > { %p4526_p12 = pnand %p4525_p13, %p4519_p10 }
  0x3e   : > { %4529 = shalt.err (!%p4526_p12)
}
  0x3f   : > { %s8180_s7 = smov 8   ;;  %s8181_s11 = smov 128  }
  0x40   : > { %s8182_s3 = sld [smem:[#allocation79_spill]]  ;;  %s242_s22 = scalar_lea.sflag [#allocation3], %s4768_s27 }
  0x41   : > { %s4543_s6 = scalar_lea.vmem %s4845_s24, 4096  ;;  %p8183_p8 = pneg %p4776_p7 }
  0x42   : > { %p4544_p4 = scmp.ne.s32.totalorder %s4845_s24, %s4543_s6  ;;  %s4681_s8 = smov [#allocation2]  }
  0x43   : > { %s4548_s17 = sshll.u32 %s4681_s8, 4  ;;  %s4549_s17 = int_to_ptr.vmem [resolvable:$false] %s4548_s17 }
  0x44   : > { %p4546_p12 = pnand %p4544_p4, %p8183_p8  ;;  %s4550_s29 = scalar_lea.vmem %s4549_s17, 8192 }
  0x45   : > { %p4551_p3 = scmp.lt.s32.totalorder %s4845_s24, %s4549_s17  ;;  %p4552_p6 = scmp.lt.s32.totalorder %s4550_s29, %s4543_s6 }
  0x46   : > { %4362 = dma.hbm_to_vmem [thread:$0]  (!%p4841_p1), %s8182_s3, 6144, %s225_s25, [#allocation9], %s8181_s11, %s8181_s11, %s8180_s7  }
  0x47   : > { %p4547_p13 = pneg %p4546_p12  ;;  %p4553_p9 = por %p4552_p6, %p4551_p3 }
  0x49   : > { %p4554_p10 = pnand %p4553_p9, %p4547_p13 }
  0x4b   : > { %4557 = shalt.err (!%p4554_p10)
}
  0x4c   : > { %s4682_s1 = smov 32   ;;  %s8184_s25 = smov 512  }
  0x4d   : > { %s8185_s3 = scalar_lea.hbm %s8178_s0, %s4771_s28  ;;  %s8186_s29 = sadd.s32 384, %s4771_s28 }
  0x4e   : > { %4366 = dma.hbm_to_vmem [thread:$0]  (!%p4776_p7), %s8185_s3, 4096, %s4845_s24, %s242_s22, %s8184_s25, %s8184_s25, %s4682_s1  }
  0x4f   : > { %s305_s17 = scalar_lea.hbm %s8095_s2, %s8186_s29  ;;  %s4571_s20 = scalar_lea.vmem %s4799_s14, 1024 }
  0x50   : > { %p4572_p1 = scmp.ne.s32.totalorder %s4799_s14, %s4571_s20  ;;  %p8187_p0 = pmov %p8183_p8 }
  0x51   : > { %s4683_s27 = smov [#allocation7]  }
  0x52   : > { %p4574_p4 = pnand %p4572_p1, %p8187_p0  ;;  %s4576_s26 = sshll.u32 %s4683_s27, 4  ;;  %s4577_s26 = int_to_ptr.vmem [resolvable:$false] %s4576_s26 }
  0x53   : > { %s4578_s0 = scalar_lea.vmem %s4577_s26, 2048  ;;  %p4579_p12 = scmp.lt.s32.totalorder %s4799_s14, %s4577_s26 }
  0x54   : > { %p4575_p8 = pneg %p4574_p4  ;;  %p4580_p13 = scmp.lt.s32.totalorder %s4578_s0, %s4571_s20 }
  0x56   : > { %p4581_p3 = por %p4580_p13, %p4579_p12 }
  0x58   : > { %p4582_p6 = pnand %p4581_p3, %p4575_p8 }
  0x5a   : > { %4585 = shalt.err (!%p4582_p6)
}
  0x5b   : > { %4372 = dma.hbm_to_vmem [thread:$0]  (!%p4776_p7), %s305_s17, 1024, %s4799_s14, %s4786_s15, %s8184_s25, %s8181_s11, %s8180_s7  }
  0x5c   : > { %318 = sbr.rel (%p4828_p2) target bundleno = 1149 (0x47d), region = 40 }
  0x61   : > { %s4896_s3 = sand.u32 1, %s4658_s19  }
  0x62   : > { %s4179_s0 = sshll.u32 %s4896_s3, 8  ;;  %s321_s20 = scalar_lea.sflag [#allocation3], %s4896_s3 }
  0x63   : > { %s4902_s22 = scalar_lea.vmem [#allocation2], %s4179_s0 }
  0x64   : > { %4637 = dma.done.wait (%p4812_p11), %s321_s20, 4096  }
  0x65   : > { %4639 = vsyncadd (%p4812_p11), %s321_s20, 4294963200  ;;  %s329_s24 = sand.u32 1, %s4802_s9   ;;  %s4180_s28 = sshll.u32 %s4896_s3, 6 }
  0x66   : > { %s330_s30 = scalar_lea.sflag [#allocation6], %s329_s24  ;;  %s4910_s14 = scalar_lea.vmem [#allocation5], %s4180_s28 }
  0x67   : > { %4641 = dma.done.wait (%p4812_p11), %s330_s30, 2048  }
  0x68   : > { %4643 = vsyncadd (%p4812_p11), %s330_s30, 4294965248  ;;  %s4916_s15 = scalar_lea.vmem [#allocation7], %s4180_s28 }
  0x69   : > { %4645 = dma.done.wait (%p60_p5), [#allocation9], 6144  }
  0x6a   : > { %4647 = vsyncadd (%p60_p5), [#allocation9], 4294961152  ;;  %v8123_v0 = vmov 0.0   ;;  %v430_v1 = vld [vmem:[%s4902_s22 + $0xe8] sm:$0xff]  ;;  %v429_v2 = vld [vmem:[%s4902_s22 + $0xe0] sm:$0xff]  ;;  %s4685_s9 = smov 1  }
  0x6b   : > { %930 = vmatprep.mubr.f32.mxu0 %v8123_v0  ;;  %1043 = vmatprep.mubr.f32.mxu1 %v8123_v0  ;;  %v431_v3 = vld [vmem:[%s4902_s22 + $0xf0] sm:$0xff]  ;;  %vm579_vm0 = vcmp.ge.f32.partialorder %v430_v1, 0.0  ;;  %v627_v4 = vmul.f32 0.1, %v430_v1  ;;  %vm578_vm1 = vcmp.ge.f32.partialorder %v429_v2, 0.0  ;;  %v426_v7 = vld [vmem:[%s4902_s22 + $0xc8] sm:$0xff] }
  0x6c   : > { %v626_v5 = vmul.f32 0.1, %v429_v2  ;;  %vm580_vm2 = vcmp.ge.f32.partialorder %v431_v3, 0.0  ;;  %v628_v6 = vmul.f32 0.1, %v431_v3  ;;  %v427_v8 = vld [vmem:[%s4902_s22 + $0xd0] sm:$0xff] }
  0x6d   : > { %v422_v9 = vld [vmem:[%s4902_s22 + $0xa8] sm:$0xff]  ;;  %v4930_v10 = vsel %vm579_vm0, %v430_v1, %v627_v4  ;;  %vm573_vm3 = vcmp.ge.f32.partialorder %v426_v7, 0.0  ;;  %v621_v12 = vmul.f32 0.1, %v426_v7  ;;  %v400_v13 = vld [vmem:[%s4910_s14 + $0x38] sm:$0xff]  ;;  %v423_v14 = vld [vmem:[%s4902_s22 + $0xb0] sm:$0xff] }
  0x6e   : > { %v4932_v11 = vsel %vm578_vm1, %v429_v2, %v626_v5  ;;  %725 = vrot.lane.b32.xlu0 %v4930_v10, %s4685_s9  ;;  %v4940_v15 = vsel %vm580_vm2, %v431_v3, %v628_v6  ;;  %vm574_vm4 = vcmp.ge.f32.partialorder %v427_v8, 0.0  ;;  %v622_v16 = vmul.f32 0.1, %v427_v8  ;;  %v425_v17 = vld [vmem:[%s4902_s22 + $0xc0] sm:$0xff]  ;;  %v440_v20 = vld [vmem:[%s4916_s15 + $0x38] sm:$0xff]  ;;  %v399_v24 = vld [vmem:[%s4910_s14 + $0x30] sm:$0xff] }
  0x6f   : > { %709 = vrot.lane.b32.xlu1 %v4932_v11, %s4685_s9  ;;  %v4943_v18 = vsel %vm573_vm3, %v426_v7, %v621_v12  ;;  %vm567_vm5 = vcmp.ge.f32.partialorder %v422_v9, 0.0  ;;  %v615_v19 = vmul.f32 0.1, %v422_v9  ;;  %882 = vmatprep.subr.mxu0 %v4932_v11  ;;  %v4950_v22 = vmul.f32 0.0, %v400_v13  ;;  %v419_v25 = vld [vmem:[%s4902_s22 + $0x90] sm:$0xff]  ;;  %v421_v26 = vld [vmem:[%s4902_s22 + $0xa0] sm:$0xff] }
  0x70   : > { %995 = vmatprep.subr.mxu1 %v4940_v15  ;;  %v4948_v21 = vsel %vm574_vm4, %v427_v8, %v622_v16  ;;  %vm568_vm6 = vcmp.ge.f32.partialorder %v423_v14, 0.0  ;;  %v616_v23 = vmul.f32 0.1, %v423_v14  ;;  %vm572_vm7 = vcmp.ge.f32.partialorder %v425_v17, 0.0  ;;  %v418_v27 = vld [vmem:[%s4902_s22 + $0x88] sm:$0xff]  ;;  %v417_v38 = vld [vmem:[%s4902_s22 + $0x80] sm:$0xff] }
  0x71   : > { %8188 = vst [vmem:[#allocation19_spill] sm:$0xff] %v4950_v22  ;;  %996 = vmatpush1.msra.mxu1 %v4930_v10  ;;  %v620_v28 = vmul.f32 0.1, %v425_v17  ;;  %vm577_vm8 = vcmp.ge.f32.partialorder %v4950_v22, 0.0  ;;  %v625_v29 = vmul.f32 0.1, %v4950_v22  ;;  %v4967_v31 = vsel %vm567_vm5, %v422_v9, %v615_v19 }
  0x72   : > { %997 = vmatprep.subr.mxu1 %v4948_v21  ;;  %741 = vrot.lane.b32.xlu0 %v4940_v15, %s4685_s9  ;;  %v4964_v30 = vmul.f32 0.0, %v440_v20  ;;  %v4970_v32 = vsel %vm568_vm6, %v423_v14, %v616_v23  ;;  %v4972_v33 = vmul.f32 0.0, %v399_v24  ;;  %vm562_vm9 = vcmp.ge.f32.partialorder %v419_v25, 0.0  ;;  %v398_v34 = vld [vmem:[%s4910_s14 + $0x28] sm:$0xff]  ;;  %v415_v46 = vld [vmem:[%s4902_s22 + $0x70] sm:$0xff]  ;;  %v413_v51 = vld [vmem:[%s4902_s22 + $0x60] sm:$0xff] }
  0x73   : > { %723 = vrot.lane.b32.xlu1 %v4943_v18, %s4685_s9  ;;  %998 = vmatpush1.msra.mxu1 %v4943_v18  ;;  %v4977_v35 = vsel %vm577_vm8, %v4950_v22, %v625_v29  ;;  %v614_v36 = vmul.f32 0.1, %v421_v26  ;;  %v610_v37 = vmul.f32 0.1, %v419_v25  ;;  %vm561_vm10 = vcmp.ge.f32.partialorder %v418_v27, 0.0  ;;  %v414_v45 = vld [vmem:[%s4902_s22 + $0x68] sm:$0xff] }
  0x74   : > { %8189 = vst [vmem:[#allocation20_spill] sm:$0xff] %v4964_v30  ;;  %8190 = vst [vmem:[#allocation21_spill] sm:$0xff] %v4972_v33  ;;  %999 = vmatprep.subr.mxu1 %v4970_v32  ;;  %vm566_vm11 = vcmp.ge.f32.partialorder %v421_v26, 0.0  ;;  %vm571_vm12 = vcmp.ge.f32.partialorder %v4972_v33, 0.0  ;;  %v619_v39 = vmul.f32 0.1, %v4972_v33  ;;  %883 = vmatpush1.msra.mxu0 %v4977_v35  ;;  %v4990_v41 = vsel %vm572_vm7, %v425_v17, %v620_v28 }
  0x75   : > { %v609_v40 = vmul.f32 0.1, %v418_v27  ;;  %1000 = vmatpush1.msra.mxu1 %v4967_v31  ;;  %v630_v42 = vmul.f32 0.1, %v4964_v30  ;;  %v4994_v43 = vsel %vm562_vm9, %v419_v25, %v610_v37  ;;  %v4996_v44 = vmul.f32 0.0, %v398_v34  ;;  %v439_v49 = vld [vmem:[%s4916_s15 + $0x30] sm:$0xff]  ;;  %884 = vmatprep.subr.mxu0 %v4990_v41 }
  0x76   : > { %739 = vrot.lane.b32.xlu0 %v4948_v21, %s4685_s9  ;;  %vm582_vm13 = vcmp.ge.f32.partialorder %v4964_v30, 0.0  ;;  %v5002_v47 = vsel %vm571_vm12, %v4972_v33, %v619_v39  ;;  %v608_v50 = vmul.f32 0.1, %v417_v38  ;;  %1001 = vmatprep.subr.mxu1 %v4994_v43  ;;  %v5012_v52 = vsel %vm566_vm11, %v421_v26, %v614_v36  ;;  %v397_v54 = vld [vmem:[%s4910_s14 + $0x20] sm:$0xff]  ;;  %v411_v55 = vld [vmem:[%s4902_s22 + $0x50] sm:$0xff]  ;;  %v410_v60 = vld [vmem:[%s4902_s22 + $0x48] sm:$0xff] }
  0x77   : > { %721 = vrot.lane.b32.xlu1 %v4967_v31, %s4685_s9  ;;  %8191 = vst [vmem:[#allocation22_spill] sm:$0xff] %v4996_v44  ;;  %v5005_v48 = vsel %vm561_vm10, %v418_v27, %v609_v40  ;;  %vm565_vm14 = vcmp.ge.f32.partialorder %v4996_v44, 0.0  ;;  %v613_v53 = vmul.f32 0.1, %v4996_v44  ;;  %vm560_vm15 = vcmp.ge.f32.partialorder %v417_v38, 0.0  ;;  %885 = vmatpush1.msra.mxu0 %v5002_v47  ;;  %v396_v5 = vld [vmem:[%s4910_s14 + $0x18] sm:$0xff] }
  0x78   : > { %1002 = vmatpush1.msra.mxu1 %v5005_v48  ;;  %vm555_vm0 = vcmp.ge.f32.partialorder %v414_v45, 0.0  ;;  %v603_v56 = vmul.f32 0.1, %v414_v45  ;;  %vm556_vm1 = vcmp.ge.f32.partialorder %v415_v46, 0.0  ;;  %v604_v57 = vmul.f32 0.1, %v415_v46  ;;  %886 = vmatprep.subr.mxu0 %v5012_v52 }
  0x79   : > { %v5028_v58 = vsel %vm582_vm13, %v4964_v30, %v630_v42  ;;  %v5031_v59 = vsel %vm565_vm14, %v4996_v44, %v613_v53  ;;  %v5034_v61 = vmul.f32 0.0, %v439_v49  ;;  %v5037_v62 = vsel %vm560_vm15, %v417_v38, %v608_v50  ;;  %v409_v7 = vld [vmem:[%s4902_s22 + $0x40] sm:$0xff]  ;;  %v406_v14 = vld [vmem:[%s4902_s22 + $0x28] sm:$0xff]  ;;  %v407_v16 = vld [vmem:[%s4902_s22 + $0x30] sm:$0xff]  ;;  %s4686_s10 = smov 127   ;;  %s7867_s30 = scalar_lea.vmem [#allocation10], %s4179_s0 }
  0x7a   : > { %707 = vrot.lane.b32.xlu0 %v4990_v41, %s4685_s9  ;;  %v5039_v63 = vsel %vm556_vm1, %v415_v46, %v604_v57  ;;  %v5041_v1 = vmul.f32 0.0, %v397_v54  ;;  %887 = vmatpush1.msra.mxu0 %v5031_v59  ;;  %v5044_v2 = vsel %vm555_vm0, %v414_v45, %v603_v56  ;;  %v602_v3 = vmul.f32 0.1, %v413_v51  ;;  %v405_v24 = vld [vmem:[%s4902_s22 + $0x20] sm:$0xff]  ;;  %v395_v26 = vld [vmem:[%s4910_s14 + $0x10] sm:$0xff]  ;;  %v402_v34 = vld [vmem:[%s4902_s22 + $0x8] sm:$0xff] }
  0x7b   : > { %693 = vrot.lane.b32.xlu1 %v4977_v35, %s4685_s9  ;;  %8192 = vst [vmem:[#allocation23_spill] sm:$0xff] %v5034_v61  ;;  %vm550_vm2 = vcmp.ge.f32.partialorder %v411_v55, 0.0  ;;  %v598_v4 = vmul.f32 0.1, %v411_v55  ;;  %888 = vmatprep.subr.mxu0 %v5037_v62  ;;  %vm554_vm3 = vcmp.ge.f32.partialorder %v413_v51, 0.0  ;;  %vm549_vm5 = vcmp.ge.f32.partialorder %v410_v60, 0.0 }
  0x7c   : > { %8193 = vst [vmem:[#allocation24_spill] sm:$0xff] %v5041_v1  ;;  %1003 = vmatprep.subr.mxu1 %v5039_v63  ;;  %vm559_vm4 = vcmp.ge.f32.partialorder %v5041_v1, 0.0  ;;  %v607_v6 = vmul.f32 0.1, %v5041_v1  ;;  %v597_v9 = vmul.f32 0.1, %v410_v60  ;;  %v5070_v19 = vsel %vm554_vm3, %v413_v51, %v602_v3 }
  0x7d   : > { %1004 = vmatpush1.msra.mxu1 %v5044_v2  ;;  %v5057_v8 = vsel %vm550_vm2, %v411_v55, %v598_v4  ;;  %vm576_vm6 = vcmp.ge.f32.partialorder %v5034_v61, 0.0  ;;  %v5063_v13 = vmul.f32 0.0, %v396_v5  ;;  %v624_v17 = vmul.f32 0.1, %v5034_v61  ;;  %v403_v27 = vld [vmem:[%s4902_s22 + $0x10] sm:$0xff]  ;;  %v438_v38 = vld [vmem:[%s4916_s15 + $0x28] sm:$0xff] }
  0x7e   : > { %737 = vrot.lane.b32.xlu0 %v4970_v32, %s4685_s9  ;;  %v5061_v12 = vsel %vm559_vm4, %v5041_v1, %v607_v6  ;;  %1005 = vmatprep.subr.mxu1 %v5057_v8  ;;  %v5072_v20 = vsel %vm549_vm5, %v410_v60, %v597_v9  ;;  %v596_v23 = vmul.f32 0.1, %v409_v7  ;;  %vm548_vm8 = vcmp.ge.f32.partialorder %v409_v7, 0.0  ;;  %v394_v45 = vld [vmem:[%s4910_s14 + $0x8] sm:$0xff]  ;;  %v401_v46 = vld [vmem:[%s4902_s22] sm:$0xff]  ;;  %s4345_s0 = sshll.u32 %s4666_s21, 12 }
  0x7f   : > { %773 = vrot.lane.b32.xlu1 %v5028_v58, %s4685_s9  ;;  %8194 = vst [vmem:[#allocation25_spill] sm:$0xff] %v5063_v13  ;;  %889 = vmatpush1.msra.mxu0 %v5061_v12  ;;  %vm553_vm7 = vcmp.ge.f32.partialorder %v5063_v13, 0.0  ;;  %v601_v25 = vmul.f32 0.1, %v5063_v13  ;;  %v591_v28 = vmul.f32 0.1, %v406_v14  ;;  %v5093_v37 = vsel %vm576_vm6, %v5034_v61, %v624_v17 }
  0x80   : > { %890 = vmatprep.subr.mxu0 %v5070_v19  ;;  %1006 = vmatpush1.msra.mxu1 %v5072_v20  ;;  %vm544_vm9 = vcmp.ge.f32.partialorder %v407_v16, 0.0  ;;  %v592_v29 = vmul.f32 0.1, %v407_v16  ;;  %vm543_vm10 = vcmp.ge.f32.partialorder %v406_v14, 0.0  ;;  %v5096_v39 = vsel %vm548_vm8, %v409_v7, %v596_v23  ;;  %v393_v5 = vld [vmem:[%s4910_s14] sm:$0xff]  ;;  %v432_v23 = vld [vmem:[%s4902_s22 + $0xf8] sm:$0xff] }
  0x81   : > { %v5088_v36 = vsel %vm553_vm7, %v5063_v13, %v601_v25  ;;  %v5100_v42 = vmul.f32 0.0, %v395_v26  ;;  %v590_v49 = vmul.f32 0.1, %v405_v24  ;;  %vm538_vm11 = vcmp.ge.f32.partialorder %v403_v27, 0.0  ;;  %v5141_v9 = vld [vmem:[#allocation8 + $0x40] sm:$0xff]  ;;  %v434_v22 = vld [vmem:[%s4916_s15 + $0x8] sm:$0xff] }
  0x82   : > { %691 = vrot.lane.b32.xlu0 %v5002_v47, %s4685_s9  ;;  %v5098_v40 = vsel %vm544_vm9, %v407_v16, %v592_v29  ;;  %891 = vmatpush1.msra.mxu0 %v5088_v36  ;;  %v586_v50 = vmul.f32 0.1, %v403_v27  ;;  %vm537_vm12 = vcmp.ge.f32.partialorder %v402_v34, 0.0  ;;  %v5112_v51 = vsel %vm543_vm10, %v406_v14, %v591_v28  ;;  %v433_v33 = vld [vmem:[%s4916_s15] sm:$0xff]  ;;  %s4020_s14 = sshll.u32 %s7867_s30, 4  ;;  %s4005_s21 = scalar_lea.sflag [#allocation4], %s4896_s3  ;;  %s8043_s14 = int_to_ptr.vmem [resolvable:$true] %s4020_s14 }
  0x83   : > { %705 = vrot.lane.b32.xlu1 %v5012_v52, %s4685_s9  ;;  %8195 = vst [vmem:[#allocation26_spill] sm:$0xff] %v5100_v42  ;;  %892 = vmatprep.subr.mxu0 %v5096_v39  ;;  %vm547_vm13 = vcmp.ge.f32.partialorder %v5100_v42, 0.0  ;;  %v595_v53 = vmul.f32 0.1, %v5100_v42  ;;  %v585_v54 = vmul.f32 0.1, %v402_v34 }
  0x84   : > { %1007 = vmatprep.subr.mxu1 %v5098_v40  ;;  %v5116_v55 = vmul.f32 0.0, %v438_v38  ;;  %vm542_vm14 = vcmp.ge.f32.partialorder %v405_v24, 0.0  ;;  %v5118_v56 = vsel %vm538_vm11, %v403_v27, %v586_v50  ;;  %v5120_v57 = vmul.f32 0.0, %v394_v45  ;;  %v5165_v27 = vld [vmem:[#allocation8 + $0x48] sm:$0xff]  ;;  %v437_v38 = vld [vmem:[%s4916_s15 + $0x20] sm:$0xff]  ;;  %v5191_v50 = vld [vmem:[#allocation8 + $0x50] sm:$0xff] }
  0x85   : > { %1008 = vmatpush1.msra.mxu1 %v5112_v51  ;;  %v5124_v60 = vsel %vm547_vm13, %v5100_v42, %v595_v53  ;;  %v5126_v3 = vsel %vm537_vm12, %v402_v34, %v585_v54  ;;  %v584_v4 = vmul.f32 0.1, %v401_v46  ;;  %vm536_vm0 = vcmp.ge.f32.partialorder %v401_v46, 0.0  ;;  %v428_v34 = vld [vmem:[%s4902_s22 + $0xd8] sm:$0xff]  ;;  %p8395_p5 = scmp.ne.s32.totalorder %s8175_s12, 0  ;;  %s4690_s16 = smov [#allocation10]  }
  0x86   : > { %719 = vrot.lane.b32.xlu0 %v5005_v48, %s4685_s9  ;;  %8196 = vst [vmem:[#allocation27_spill] sm:$0xff] %v5116_v55  ;;  %8197 = vst [vmem:[#allocation28_spill] sm:$0xff] %v5120_v57  ;;  %1009 = vmatprep.subr.mxu1 %v5118_v56  ;;  %vm541_vm15 = vcmp.ge.f32.partialorder %v5120_v57, 0.0  ;;  %v589_v6 = vmul.f32 0.1, %v5120_v57  ;;  %v5139_v7 = vsel %vm542_vm14, %v405_v24, %v590_v49  ;;  %vm841_vm1 = vcmask 523264  }
  0x87   : > { %735 = vrot.lane.b32.xlu1 %v4994_v43, %s4685_s9  ;;  %893 = vmatpush1.msra.mxu0 %v5124_v60  ;;  %v618_v14 = vmul.f32 0.1, %v5116_v55  ;;  %v5147_v17 = vmul.f32 0.0, %v393_v5  ;;  %vm570_vm2 = vcmp.ge.f32.partialorder %v5116_v55, 0.0  ;;  %v5154_v24 = vsel %vm536_vm0, %v401_v46, %v584_v4  ;;  %v424_v53 = vld [vmem:[%s4902_s22 + $0xb8] sm:$0xff]  ;;  %s4590_s7 = sshll.u32 %s4690_s16, 4  ;;  %s4591_s7 = int_to_ptr.vmem [resolvable:$false] %s4590_s7 }
  0x88   : > { %1010 = vmatpush1.msra.mxu1 %v5126_v3  ;;  %v5145_v16 = vsel %vm541_vm15, %v5120_v57, %v589_v6  ;;  %894 = vmatprep.subr.mxu0 %v5139_v7  ;;  %v629_v26 = vmul.f32 0.1, %v432_v23  ;;  %vm581_vm4 = vcmp.ge.f32.partialorder %v432_v23, 0.0  ;;  %v623_v46 = vmul.f32 0.1, %v428_v34  ;;  %v436_v54 = vld [vmem:[%s4916_s15 + $0x18] sm:$0xff]  ;;  %p4593_p9 = scmp.lt.s32.totalorder %s8043_s14, %s4591_s7 }
  0x89   : > { %4192 = vmatmul.mubr.msk.f32.vlgmr.msra.gmra.mxu1 %vm841_vm1, %v5141_v9  ;;  %895 = vmatpush1.msra.mxu0 %v5145_v16  ;;  %vm535_vm3 = vcmp.ge.f32.partialorder %v5147_v17, 0.0  ;;  %v583_v25 = vmul.f32 0.1, %v5147_v17  ;;  %v5168_v28 = vsel %vm570_vm2, %v5116_v55, %v618_v14  ;;  %v5188_v49 = vmul.f32 0.0, %v437_v38  ;;  %v420_v4 = vld [vmem:[%s4902_s22 + $0x98] sm:$0xff]  ;;  %v5238_v55 = vld [vmem:[#allocation8 + $0x60] sm:$0xff] }
  0x8a   : > { %771 = vrot.lane.b32.xlu0 %v5093_v37, %s4685_s9  ;;  %1049 = vmatprep.mubr.f32.mxu1 %v8123_v0  ;;  %v5186_v45 = vsel %vm581_vm4, %v432_v23, %v629_v26  ;;  %vm575_vm5 = vcmp.ge.f32.partialorder %v428_v34, 0.0  ;;  %v617_v6 = vmul.f32 0.1, %v424_v53  ;;  %v5210_v23 = vmul.f32 0.0, %v436_v54  ;;  %v435_v26 = vld [vmem:[%s4916_s15 + $0x10] sm:$0xff]  ;;  %s4688_s15 = smov 3  }
  0x8b   : > { %689 = vrot.lane.b32.xlu1 %v5031_v59, %s4685_s9  ;;  %896 = vmatprep.subr.mxu0 %v5154_v24  ;;  %v5171_v29 = vsel %vm535_vm3, %v5147_v17, %v583_v25  ;;  %8198 = vst [vmem:[#allocation29_spill] sm:$0xff] %v5188_v49  ;;  %v5207_v5 = vsel %vm575_vm5, %v428_v34, %v623_v46  ;;  %v612_v14 = vmul.f32 0.1, %v5188_v49  ;;  %v5213_v25 = vld [vmem:[#allocation8 + $0x58] sm:$0xff]  ;;  %vm569_vm6 = vcmp.ge.f32.partialorder %v424_v53, 0.0  ;;  %s4592_s11 = scalar_lea.vmem %s4591_s7, 8192 }
  0x8c   : > { %897 = vmatpush1.msra.mxu0 %v5171_v29  ;;  %8199 = vst [vmem:[#allocation30_spill] sm:$0xff] %v5210_v23  ;;  %vm564_vm7 = vcmp.ge.f32.partialorder %v5188_v49, 0.0  ;;  %v611_v38 = vmul.f32 0.1, %v420_v4  ;;  %vm563_vm8 = vcmp.ge.f32.partialorder %v420_v4, 0.0  ;;  %v416_v34 = vld [vmem:[%s4902_s22 + $0x78] sm:$0xff]  ;;  %v5229_v46 = vsel %vm569_vm6, %v424_v53, %v617_v6 }
  0x8d   : > { %4193 = vmatmul.mubr.msk.f32.gmra.mxu1 %vm841_vm1, %v5165_v27  ;;  %4184 = vmatmul.mubr.msk.f32.vlgmr.msra.gmra.mxu0 %vm841_vm1, %v5141_v9  ;;  %v5232_v54 = vsel %vm564_vm7, %v5188_v49, %v612_v14  ;;  %v606_v30 = vmul.f32 0.1, %v5210_v23  ;;  %v5235_v61 = vmul.f32 0.0, %v435_v26  ;;  %vm558_vm9 = vcmp.ge.f32.partialorder %v5210_v23, 0.0  ;;  %v412_v14 = vld [vmem:[%s4902_s22 + $0x58] sm:$0xff]  ;;  %v5263_v49 = vld [vmem:[#allocation8 + $0x68] sm:$0xff] }
  0x8e   : > { %703 = vrot.lane.b32.xlu0 %v5037_v62, %s4685_s9  ;;  %1055 = vmatprep.mubr.f32.mxu1 %v8123_v0  ;;  %v5244_v53 = vsel %vm563_vm8, %v420_v4, %v611_v38  ;;  %v605_v6 = vmul.f32 0.1, %v416_v34  ;;  %vm557_vm10 = vcmp.ge.f32.partialorder %v416_v34, 0.0  ;;  %v5260_v38 = vmul.f32 0.0, %v434_v22  ;;  %v408_v22 = vld [vmem:[%s4902_s22 + $0x38] sm:$0xff] }
  0x8f   : > { %717 = vrot.lane.b32.xlu1 %v5044_v2, %s4685_s9  ;;  %1108 = vmatprep.subr.mxu0 %v5028_v58  ;;  %8200 = vst [vmem:[#allocation31_spill] sm:$0xff] %v5235_v61  ;;  %v5257_v4 = vsel %vm558_vm9, %v5210_v23, %v606_v30  ;;  %v600_v26 = vmul.f32 0.1, %v5235_v61  ;;  %vm552_vm11 = vcmp.ge.f32.partialorder %v5235_v61, 0.0  ;;  %v599_v1 = vmul.f32 0.1, %v412_v14 }
  0x90   : > { %936 = vmatprep.mubr.f32.mxu0 %v8123_v0  ;;  %1109 = vmatpush1.msra.mxu0 %v5186_v45  ;;  %8201 = vst [vmem:[#allocation32_spill] sm:$0xff] %v5260_v38  ;;  %v5269_v44 = vsel %vm557_vm10, %v416_v34, %v605_v6  ;;  %vm551_vm12 = vcmp.ge.f32.partialorder %v412_v14, 0.0  ;;  %v594_v34 = vmul.f32 0.1, %v5260_v38  ;;  %v5285_v6 = vmul.f32 0.0, %v433_v33  ;;  %v5288_v23 = vld [vmem:[#allocation8 + $0x70] sm:$0xff] }
  0x91   : > { %1110 = vmatprep.subr.mxu0 %v5093_v37  ;;  %4194 = vmatmul.mubr.msk.f32.gmra.mxu1 %vm841_vm1, %v5191_v50  ;;  %v5282_v30 = vsel %vm552_vm11, %v5235_v61, %v600_v26  ;;  %vm546_vm13 = vcmp.ge.f32.partialorder %v5260_v38, 0.0  ;;  %v5293_v13 = vsel %vm551_vm12, %v412_v14, %v599_v1  ;;  %v593_v42 = vmul.f32 0.1, %v408_v22  ;;  %v404_v33 = vld [vmem:[%s4902_s22 + $0x18] sm:$0xff] }
  0x92   : > { %733 = vrot.lane.b32.xlu0 %v5039_v63, %s4685_s9  ;;  %4185 = vmatmul.mubr.msk.f32.gmra.mxu0 %vm841_vm1, %v5165_v27  ;;  %8202 = vst [vmem:[#allocation33_spill] sm:$0xff] %v5285_v6  ;;  %vm545_vm14 = vcmp.ge.f32.partialorder %v408_v22, 0.0  ;;  %v5306_v1 = vsel %vm546_vm13, %v5260_v38, %v594_v34  ;;  %v588_v14 = vmul.f32 0.1, %v5285_v6  ;;  %v840_v26 = vld [vmem:[#allocation8 + $0x78] sm:$0xff]  ;;  %vm540_vm15 = vcmp.ge.f32.partialorder %v5285_v6, 0.0 }
  0x93   : > { %769 = vrot.lane.b32.xlu1 %v5168_v28, %s4685_s9  ;;  %1061 = vmatprep.mubr.f32.mxu1 %v8123_v0  ;;  %v5313_v61 = vsel %vm545_vm14, %v408_v22, %v593_v42  ;;  %v587_v57 = vmul.f32 0.1, %v404_v33  ;;  %vm539_vm0 = vcmp.ge.f32.partialorder %v404_v33, 0.0 }
  0x94   : > { %942 = vmatprep.mubr.f32.mxu0 %v8123_v0  ;;  %1111 = vmatpush1.msra.mxu0 %v5207_v5  ;;  %v5324_v34 = vsel %vm540_vm15, %v5285_v6, %v588_v14 }
  0x95   : > { %1112 = vmatprep.subr.mxu0 %v5168_v28  ;;  %4195 = vmatmul.mubr.msk.f32.gmra.mxu1 %vm841_vm1, %v5213_v25  ;;  %v5329_v42 = vsel %vm539_vm0, %v404_v33, %v587_v57 }
  0x96   : > { %687 = vrot.lane.b32.xlu0 %v5061_v12, %s4685_s9  ;;  %4186 = vmatmul.mubr.msk.f32.gmra.mxu0 %vm841_vm1, %v5191_v50 }
  0x97   : > { %701 = vrot.lane.b32.xlu1 %v5070_v19, %s4685_s9  ;;  %1067 = vmatprep.mubr.f32.mxu1 %v8123_v0 }
  0x98   : > { %948 = vmatprep.mubr.f32.mxu0 %v8123_v0  ;;  %1113 = vmatpush1.msra.mxu0 %v5229_v46 }
  0x99   : > { %1114 = vmatprep.subr.mxu0 %v5232_v54  ;;  %4196 = vmatmul.mubr.msk.f32.gmra.mxu1 %vm841_vm1, %v5238_v55 }
  0x9a   : > { %715 = vrot.lane.b32.xlu0 %v5072_v20, %s4685_s9  ;;  %4187 = vmatmul.mubr.msk.f32.gmra.mxu0 %vm841_vm1, %v5213_v25 }
  0x9b   : > { %731 = vrot.lane.b32.xlu1 %v5057_v8, %s4685_s9  ;;  %1073 = vmatprep.mubr.f32.mxu1 %v8123_v0 }
  0x9c   : > { %954 = vmatprep.mubr.f32.mxu0 %v8123_v0  ;;  %1115 = vmatpush1.msra.mxu0 %v5244_v53 }
  0x9d   : > { %1116 = vmatprep.subr.mxu0 %v5257_v4  ;;  %4197 = vmatmul.mubr.msk.f32.gmra.mxu1 %vm841_vm1, %v5263_v49 }
  0x9e   : > { %767 = vrot.lane.b32.xlu0 %v5232_v54, %s4685_s9  ;;  %4188 = vmatmul.mubr.msk.f32.gmra.mxu0 %vm841_vm1, %v5238_v55 }
  0x9f   : > { %685 = vrot.lane.b32.xlu1 %v5088_v36, %s4685_s9  ;;  %1079 = vmatprep.mubr.f32.mxu1 %v8123_v0 }
  0xa0   : > { %960 = vmatprep.mubr.f32.mxu0 %v8123_v0  ;;  %1117 = vmatpush1.msra.mxu0 %v5269_v44 }
  0xa1   : > { %1118 = vmatprep.subr.mxu0 %v5282_v30  ;;  %4198 = vmatmul.mubr.msk.f32.gmra.mxu1 %vm841_vm1, %v5288_v23 }
  0xa2   : > { %699 = vrot.lane.b32.xlu0 %v5096_v39, %s4685_s9  ;;  %4189 = vmatmul.mubr.msk.f32.gmra.mxu0 %vm841_vm1, %v5263_v49 }
  0xa3   : > { %713 = vrot.lane.b32.xlu1 %v5112_v51, %s4685_s9  ;;  %1085 = vmatprep.mubr.f32.mxu1 %v8123_v0 }
  0xa4   : > { %966 = vmatprep.mubr.f32.mxu0 %v8123_v0  ;;  %1119 = vmatpush1.msra.mxu0 %v5293_v13 }
  0xa5   : > { %1120 = vmatprep.subr.mxu0 %v5306_v1  ;;  %4199 = vmatmul.mubr.msk.f32.gmra.mxu1 %vm841_vm1, %v840_v26 }
  0xa6   : > { %729 = vrot.lane.b32.xlu0 %v5098_v40, %s4685_s9  ;;  %4190 = vmatmul.mubr.msk.f32.gmra.mxu0 %vm841_vm1, %v5288_v23 }
  0xa7   : > { %765 = vrot.lane.b32.xlu1 %v5257_v4, %s4685_s9  ;;  %1293 = vmatprep.mubr.f32.mxu1 %v8123_v0 }
  0xa8   : > { %972 = vmatprep.mubr.f32.mxu0 %v8123_v0  ;;  %1121 = vmatpush1.msra.mxu0 %v5313_v61 }
  0xa9   : > { %1122 = vmatprep.subr.mxu0 %v5324_v34 }
  0xaa   : > { %683 = vrot.lane.b32.xlu0 %v5124_v60, %s4685_s9  ;;  %4191 = vmatmul.mubr.msk.f32.gmra.mxu0 %vm841_vm1, %v840_v26 }
  0xab   : > { %697 = vrot.lane.b32.xlu1 %v5139_v7, %s4685_s9  ;;  %1123 = vmatpush1.msra.mxu0 %v5329_v42 }
  0xac   : > { %1156 = vmatprep.mubr.f32.mxu0 %v8123_v0 }
  0xae   : > { %711 = vrot.lane.b32.xlu0 %v5126_v3, %s4685_s9  ;;  %4200 = vmatmul.mubr.msk.f32.vlgmr.msra.gmra.mxu0 %vm841_vm1, %v5141_v9 }
  0xaf   : > { %727 = vrot.lane.b32.xlu1 %v5118_v56, %s4685_s9  ;;  %1162 = vmatprep.mubr.f32.mxu0 %v8123_v0 }
  0xb2   : > { %763 = vrot.lane.b32.xlu0 %v5282_v30, %s4685_s9  ;;  %4201 = vmatmul.mubr.msk.f32.gmra.mxu0 %vm841_vm1, %v5165_v27 }
  0xb3   : > { %681 = vrot.lane.b32.xlu1 %v5145_v16, %s4685_s9  ;;  %1168 = vmatprep.mubr.f32.mxu0 %v8123_v0 }
  0xb6   : > { %695 = vrot.lane.b32.xlu0 %v5154_v24, %s4685_s9  ;;  %4202 = vmatmul.mubr.msk.f32.gmra.mxu0 %vm841_vm1, %v5191_v50 }
  0xb7   : > { %761 = vrot.lane.b32.xlu1 %v5306_v1, %s4685_s9  ;;  %1174 = vmatprep.mubr.f32.mxu0 %v8123_v0 }
  0xba   : > { %679 = vrot.lane.b32.xlu0 %v5171_v29, %s4685_s9  ;;  %4203 = vmatmul.mubr.msk.f32.gmra.mxu0 %vm841_vm1, %v5213_v25 }
  0xbb   : > { %759 = vrot.lane.b32.xlu1 %v5324_v34, %s4685_s9  ;;  %1180 = vmatprep.mubr.f32.mxu0 %v8123_v0 }
  0xbe   : > { %1598 = vrot.lane.b32.xlu0 %v4932_v11, %s4686_s10  ;;  %4204 = vmatmul.mubr.msk.f32.gmra.mxu0 %vm841_vm1, %v5238_v55 }
  0xbf   : > { %1614 = vrot.lane.b32.xlu1 %v4930_v10, %s4686_s10  ;;  %1186 = vmatprep.mubr.f32.mxu0 %v8123_v0  ;;  %v443_v10 = vlaneseq }
  0xc2   : > { %1582 = vrot.lane.b32.xlu0 %v4977_v35, %s4686_s10  ;;  %4205 = vmatmul.mubr.msk.f32.gmra.mxu0 %vm841_vm1, %v5263_v49 }
  0xc3   : > { %1596 = vrot.lane.b32.xlu1 %v4990_v41, %s4686_s10  ;;  %1192 = vmatprep.mubr.f32.mxu0 %v8123_v0 }
  0xc6   : > { %1612 = vrot.lane.b32.xlu0 %v4943_v18, %s4686_s10  ;;  %4206 = vmatmul.mubr.msk.f32.gmra.mxu0 %vm841_vm1, %v5288_v23 }
  0xc7   : > { %757 = vrot.lane.b32.xlu1 %v5186_v45, %s4685_s9  ;;  %1198 = vmatprep.mubr.f32.mxu0 %v8123_v0 }
  0xca   : > { %1580 = vrot.lane.b32.xlu0 %v5002_v47, %s4686_s10  ;;  %4207 = vmatmul.mubr.msk.f32.gmra.mxu0 %vm841_vm1, %v840_v26 }
  0xcb   : > { %1594 = vrot.lane.b32.xlu1 %v5012_v52, %s4686_s10  ;;  %1406 = vmatprep.mubr.f32.mxu0 %v8123_v0 }
  0xce   : > { %1610 = vrot.lane.b32.xlu0 %v4967_v31, %s4686_s10  ;;  %v5409_v31 = vand.u32 127, %v443_v10 }
  0xcf   : > { %755 = vrot.lane.b32.xlu1 %v5207_v5, %s4685_s9 }
  0xd0   : > { %8203 = vst [vmem:[#allocation34_spill] sm:$0xff] %v5409_v31  ;;  %vm775_vm2 = vcmp.lt.s32.totalorder %v5409_v31, 1  ;;  %vm1664_vm3 = vcmp.lt.s32.totalorder %v5409_v31, 127 }
  0xd2   : > { %1578 = vrot.lane.b32.xlu0 %v5031_v59, %s4686_s10 }
  0xd3   : > { %1592 = vrot.lane.b32.xlu1 %v5037_v62, %s4686_s10 }
  0xd6   : > { %1608 = vrot.lane.b32.xlu0 %v5005_v48, %s4686_s10 }
  0xd7   : > { %753 = vrot.lane.b32.xlu1 %v5229_v46, %s4685_s9 }
  0xda   : > { %1576 = vrot.lane.b32.xlu0 %v5061_v12, %s4686_s10 }
  0xdb   : > { %1590 = vrot.lane.b32.xlu1 %v5070_v19, %s4686_s10 }
  0xde   : > { %1606 = vrot.lane.b32.xlu0 %v5044_v2, %s4686_s10 }
  0xdf   : > { %751 = vrot.lane.b32.xlu1 %v5244_v53, %s4685_s9 }
  0xe0   : > { %v726_v11 = vpop.permute.xlu0 %725 }
  0xe1   : > { %v710_v18 = vpop.permute.xlu1 %709 }
  0xe2   : > { %1574 = vrot.lane.b32.xlu0 %v5088_v36, %s4686_s10  ;;  %v807_v48 = vsel %vm775_vm2, %v710_v18, %v726_v11 }
  0xe3   : > { %1588 = vrot.lane.b32.xlu1 %v5096_v39, %s4686_s10 }
  0xe4   : > { %v5415_v35 = vpop.permute.xlu0 %741 }
  0xe5   : > { %v724_v41 = vpop.permute.xlu1 %723  ;;  %v799_v47 = vsel %vm775_vm2, %v726_v11, %v5415_v35 }
  0xe6   : > { %1604 = vrot.lane.b32.xlu0 %v5072_v20, %s4686_s10  ;;  %1358 = vmatprep.subr.mxu0 %v799_v47 }
  0xe7   : > { %749 = vrot.lane.b32.xlu1 %v5269_v44, %s4685_s9  ;;  %1359 = vmatpush1.msra.mxu0 %v807_v48 }
  0xe8   : > { %v5427_v52 = vpop.permute.xlu0 %739 }
  0xe9   : > { %v722_v59 = vpop.permute.xlu1 %721  ;;  %v798_v62 = vsel %vm775_vm2, %v724_v41, %v5427_v52 }
  0xea   : > { %1572 = vrot.lane.b32.xlu0 %v5124_v60, %s4686_s10  ;;  %1360 = vmatprep.subr.mxu0 %v798_v62 }
  0xeb   : > { %1586 = vrot.lane.b32.xlu1 %v5139_v7, %s4686_s10 }
  0xec   : > { %v708_v2 = vpop.permute.xlu0 %707 }
  0xed   : > { %v694_v12 = vpop.permute.xlu1 %693  ;;  %v806_v20 = vsel %vm775_vm2, %v708_v2, %v724_v41 }
  0xee   : > { %v815_v19 = vsel %vm775_vm2, %v694_v12, %v710_v18  ;;  %1602 = vrot.lane.b32.xlu0 %v5112_v51, %s4686_s10  ;;  %1361 = vmatpush1.msra.mxu0 %v806_v20 }
  0xef   : > { %1245 = vmatprep.subr.mxu1 %v815_v19  ;;  %747 = vrot.lane.b32.xlu1 %v5293_v13, %s4685_s9 }
  0xf0   : > { %v5444_v36 = vpop.permute.xlu0 %737 }
  0xf1   : > { %v5446_v39 = vpop.permute.xlu1 %773  ;;  %v797_v55 = vsel %vm775_vm2, %v722_v59, %v5444_v36 }
  0xf2   : > { %v823_v57 = vsel %vm775_vm2, %v5446_v39, %v694_v12  ;;  %1362 = vmatprep.subr.mxu0 %v797_v55  ;;  %1570 = vrot.lane.b32.xlu0 %v5145_v16, %s4686_s10 }
  0xf3   : > { %1584 = vrot.lane.b32.xlu1 %v5154_v24, %s4686_s10  ;;  %1246 = vmatpush1.msra.mxu1 %v823_v57 }
  0xf4   : > { %v692_v60 = vpop.permute.xlu0 %691 }
  0xf5   : > { %v706_v51 = vpop.permute.xlu1 %705  ;;  %v814_v7 = vsel %vm775_vm2, %v692_v60, %v708_v2 }
  0xf6   : > { %v805_v9 = vsel %vm775_vm2, %v706_v51, %v722_v59  ;;  %1247 = vmatprep.subr.mxu1 %v814_v7  ;;  %1600 = vrot.lane.b32.xlu0 %v5126_v3, %s4686_s10  ;;  %v2140_v7 = vld [vmem:[%s8097_s4 + $0x38] sm:$0xff] }
  0xf7   : > { %745 = vrot.lane.b32.xlu1 %v5313_v61, %s4685_s9  ;;  %1363 = vmatpush1.msra.mxu0 %v805_v9  ;;  %v2139_v9 = vld [vmem:[%s8097_s4 + $0x30] sm:$0xff] }
  0xf8   : > { %v720_v16 = vpop.permute.xlu0 %719 }
  0xf9   : > { %v5466_v24 = vpop.permute.xlu1 %735 }
  0xfa   : > { %v796_v27 = vsel %vm775_vm2, %v720_v16, %v5466_v24  ;;  %1568 = vrot.lane.b32.xlu0 %v5171_v29, %s4686_s10 }
  0xfb   : > { %743 = vrot.lane.b32.xlu1 %v5329_v42, %s4685_s9  ;;  %1364 = vmatprep.subr.mxu0 %v796_v27  ;;  %s4689_s9 = smov 125  }
  0xfc   : > { %v5475_v49 = vpop.permute.xlu0 %771 }
  0xfd   : > { %v690_v50 = vpop.permute.xlu1 %689  ;;  %v822_v3 = vsel %vm775_vm2, %v5475_v49, %v692_v60  ;;  %v4687_v60 = vmov 0  }
  0xfe   : > { %v813_v23 = vsel %vm775_vm2, %v690_v50, %v706_v51  ;;  %1248 = vmatpush1.msra.mxu1 %v822_v3  ;;  %1662 = vrot.lane.b32.xlu0 %v5028_v58, %s4686_s10  ;;  %v2137_v3 = vld [vmem:[%s8097_s4 + $0x20] sm:$0xff] }
  0xff   : > { %1646 = vrot.lane.b32.xlu1 %v5186_v45, %s4686_s10  ;;  %1249 = vmatprep.subr.mxu1 %v813_v23 }
 0x100   : > { %v704_v25 = vpop.permute.xlu0 %703  ;;  %4442 = vset.pattern.permute.xlu0 %v4687_v60  ;;  %4443 = vset.pattern.permute.xlu1 %v4687_v60 }
 0x101   : > { %v718_v29 = vpop.permute.xlu1 %717  ;;  %v804_v22 = vsel %vm775_vm2, %v704_v25, %v720_v16  ;;  %v5612_v16 = vld [vmem:[#allocation8 + $0x8] sm:$0xff] }
 0x102   : > { %1365 = vmatpush1.msra.mxu0 %v804_v22  ;;  %1660 = vrot.lane.b32.xlu0 %v5093_v37, %s4686_s10 }
 0x103   : > { %1630 = vrot.lane.b32.xlu1 %v4940_v15, %s4686_s10 }
 0x104   : > { %v5492_v33 = vpop.permute.xlu0 %733 }
 0x105   : > { %v5494_v14 = vpop.permute.xlu1 %769  ;;  %v795_v45 = vsel %vm775_vm2, %v718_v29, %v5492_v33 }
 0x106   : > { %v821_v58 = vsel %vm775_vm2, %v5494_v14, %v690_v50  ;;  %1644 = vrot.lane.b32.xlu0 %v5207_v5, %s4686_s10  ;;  %1366 = vmatprep.subr.mxu0 %v795_v45  ;;  %v2135_v45 = vld [vmem:[%s8097_s4 + $0x10] sm:$0xff] }
 0x107   : > { %1250 = vmatpush1.msra.mxu1 %v821_v58  ;;  %1658 = vrot.lane.b32.xlu1 %v5168_v28, %s4686_s10 }
 0x108   : > { %v688_v37 = vpop.permute.xlu0 %687 }
 0x109   : > { %v702_v15 = vpop.permute.xlu1 %701  ;;  %v812_v26 = vsel %vm775_vm2, %v688_v37, %v704_v25  ;;  %v2138_v25 = vld [vmem:[%s8097_s4 + $0x28] sm:$0xff] }
 0x10a   : > { %v803_v10 = vsel %vm775_vm2, %v702_v15, %v718_v29  ;;  %1251 = vmatprep.subr.mxu1 %v812_v26  ;;  %1628 = vrot.lane.b32.xlu0 %v4948_v21, %s4686_s10  ;;  %v5631_v29 = vld [vmem:[#allocation8 + $0x10] sm:$0xff]  ;;  %v5650_v26 = vld [vmem:[#allocation8 + $0x18] sm:$0xff] }
 0x10b   : > { %1642 = vrot.lane.b32.xlu1 %v5229_v46, %s4686_s10  ;;  %1367 = vmatpush1.msra.mxu0 %v803_v10 }
 0x10c   : > { %v716_v5 = vpop.permute.xlu0 %715 }
 0x10d   : > { %v5514_v28 = vpop.permute.xlu1 %731 }
 0x10e   : > { %v794_v11 = vsel %vm775_vm2, %v716_v5, %v5514_v28  ;;  %1656 = vrot.lane.b32.xlu0 %v5232_v54, %s4686_s10 }
 0x10f   : > { %1626 = vrot.lane.b32.xlu1 %v4970_v32, %s4686_s10  ;;  %1368 = vmatprep.subr.mxu0 %v794_v11  ;;  %v2133_v11 = vld [vmem:[%s8097_s4] sm:$0xff] }
 0x110   : > { %v5523_v18 = vpop.permute.xlu0 %767 }
 0x111   : > { %v686_v46 = vpop.permute.xlu1 %685  ;;  %v820_v21 = vsel %vm775_vm2, %v5523_v18, %v688_v37  ;;  %v2136_v37 = vld [vmem:[%s8097_s4 + $0x18] sm:$0xff] }
 0x112   : > { %v811_v41 = vsel %vm775_vm2, %v686_v46, %v702_v15  ;;  %1252 = vmatpush1.msra.mxu1 %v820_v21  ;;  %1640 = vrot.lane.b32.xlu0 %v5244_v53, %s4686_s10 }
 0x113   : > { %1654 = vrot.lane.b32.xlu1 %v5257_v4, %s4686_s10  ;;  %1253 = vmatprep.subr.mxu1 %v811_v41 }
 0x114   : > { %v700_v32 = vpop.permute.xlu0 %699 }
 0x115   : > { %v714_v54 = vpop.permute.xlu1 %713  ;;  %v802_v47 = vsel %vm775_vm2, %v700_v32, %v716_v5 }
 0x116   : > { %1369 = vmatpush1.msra.mxu0 %v802_v47  ;;  %1624 = vrot.lane.b32.xlu0 %v4994_v43, %s4686_s10 }
 0x117   : > { %1638 = vrot.lane.b32.xlu1 %v5269_v44, %s4686_s10 }
 0x118   : > { %v5540_v48 = vpop.permute.xlu0 %729 }
 0x119   : > { %v5542_v59 = vpop.permute.xlu1 %765  ;;  %v793_v4 = vsel %vm775_vm2, %v714_v54, %v5540_v48 }
 0x11a   : > { %v819_v53 = vsel %vm775_vm2, %v5542_v59, %v686_v46  ;;  %1652 = vrot.lane.b32.xlu0 %v5282_v30, %s4686_s10  ;;  %1370 = vmatprep.subr.mxu0 %v793_v4 }
 0x11b   : > { %1254 = vmatpush1.msra.mxu1 %v819_v53  ;;  %1622 = vrot.lane.b32.xlu1 %v5039_v63, %s4686_s10  ;;  %v5688_v53 = vld [vmem:[#allocation8 + $0x28] sm:$0xff] }
 0x11c   : > { %v684_v44 = vpop.permute.xlu0 %683 }
 0x11d   : > { %v698_v43 = vpop.permute.xlu1 %697  ;;  %v810_v62 = vsel %vm775_vm2, %v684_v44, %v700_v32  ;;  %v5672_v32 = vld [vmem:[#allocation8 + $0x20] sm:$0xff] }
 0x11e   : > { %v801_v2 = vsel %vm775_vm2, %v698_v43, %v714_v54  ;;  %1255 = vmatprep.subr.mxu1 %v810_v62  ;;  %1636 = vrot.lane.b32.xlu0 %v5293_v13, %s4686_s10 }
 0x11f   : > { %1650 = vrot.lane.b32.xlu1 %v5306_v1, %s4686_s10  ;;  %1371 = vmatpush1.msra.mxu0 %v801_v2 }
 0x120   : > { %v712_v30 = vpop.permute.xlu0 %711 }
 0x121   : > { %v5562_v63 = vpop.permute.xlu1 %727 }
 0x122   : > { %v792_v12 = vsel %vm775_vm2, %v712_v30, %v5562_v63  ;;  %1620 = vrot.lane.b32.xlu0 %v5057_v8, %s4686_s10 }
 0x123   : > { %1634 = vrot.lane.b32.xlu1 %v5313_v61, %s4686_s10  ;;  %1372 = vmatprep.subr.mxu0 %v792_v12 }
 0x124   : > { %v5571_v19 = vpop.permute.xlu0 %763 }
 0x125   : > { %v682_v1 = vpop.permute.xlu1 %681  ;;  %v818_v13 = vsel %vm775_vm2, %v5571_v19, %v684_v44 }
 0x126   : > { %v809_v20 = vsel %vm775_vm2, %v682_v1, %v698_v43  ;;  %1256 = vmatpush1.msra.mxu1 %v818_v13  ;;  %1648 = vrot.lane.b32.xlu0 %v5324_v34, %s4686_s10 }
 0x127   : > { %1618 = vrot.lane.b32.xlu1 %v5098_v40, %s4686_s10  ;;  %1257 = vmatprep.subr.mxu1 %v809_v20  ;;  %v5593_v40 = vld [vmem:[#allocation8] sm:$0xff] }
 0x128   : > { %v696_v61 = vpop.permute.xlu0 %695 }
 0x129   : > { %v5582_v8 = vpop.permute.xlu1 %761  ;;  %v800_v55 = vsel %vm775_vm2, %v696_v61, %v712_v30  ;;  %v5707_v30 = vld [vmem:[#allocation8 + $0x30] sm:$0xff] }
 0x12a   : > { %v817_v57 = vsel %vm775_vm2, %v5582_v8, %v682_v1  ;;  %1373 = vmatpush1.msra.mxu0 %v800_v55  ;;  %1632 = vrot.lane.b32.xlu0 %v5329_v42, %s4686_s10  ;;  %v5720_v1 = vld [vmem:[#allocation8 + $0x38] sm:$0xff] }
 0x12b   : > { %1616 = vrot.lane.b32.xlu1 %v5118_v56, %s4686_s10  ;;  %1258 = vmatpush1.msra.mxu1 %v817_v57  ;;  %s4586_s10 = scalar_lea.vmem %s8043_s14, 4096 }
 0x12c   : > { %v680_v51 = vpop.permute.xlu0 %679  ;;  %4216 = vmatmul.mubr.msk.f32.vlgmr.msra.gmra.mxu0 %vm841_vm1, %v5593_v40  ;;  %p4587_p7 = scmp.ne.s32.totalorder %s8043_s14, %s4586_s10  ;;  %p4594_p10 = scmp.lt.s32.totalorder %s4592_s11, %s4586_s10 }
 0x12d   : > { %v5595_v34 = vpop.permute.xlu1 %759  ;;  %v808_v56 = vsel %vm775_vm2, %v680_v51, %v696_v61  ;;  %1412 = vmatprep.mubr.f32.mxu0 %v8123_v0 }
 0x12e   : > { %v816_v42 = vsel %vm775_vm2, %v5595_v34, %v680_v51  ;;  %1259 = vmatprep.subr.mxu1 %v808_v56  ;;  %2178 = vperm.xlu0 %4442, %v2140_v7   ;;  %p4588_p11 = pnand %p4587_p7, %p8395_p5  ;;  %p4595_p1 = por %p4594_p10, %p4593_p9 }
 0x12f   : > { %2173 = vperm.xlu1 %4443, %v2139_v9   ;;  %1260 = vmatpush1.msra.mxu1 %v816_v42 }
 0x130   : > { %4208 = vmatmul.mubr.msk.f32.vlgmr.msra.gmra.mxu1 %vm841_vm1, %v5593_v40  ;;  %v1599_v50 = vpop.permute.xlu0 %1598  ;;  %4217 = vmatmul.mubr.msk.f32.gmra.mxu0 %vm841_vm1, %v5612_v16  ;;  %p4589_p2 = pneg %p4588_p11 }
 0x131   : > { %v5614_v27 = vpop.permute.xlu1 %1614  ;;  %1299 = vmatprep.mubr.f32.mxu1 %v8123_v0  ;;  %1418 = vmatprep.mubr.f32.mxu0 %v8123_v0 }
 0x132   : > { %v1696_v23 = vsel %vm1664_vm3, %v1599_v50, %v5614_v27  ;;  %2163 = vperm.xlu0 %4442, %v2137_v3   ;;  %p4596_p0 = pnand %p4595_p1, %p4589_p2 }
 0x133   : > { %1762 = vmatprep.subr.mxu0 %v1696_v23  ;;  %2168 = vperm.xlu1 %4443, %v2138_v25  }
 0x134   : > { %4209 = vmatmul.mubr.msk.f32.gmra.mxu1 %vm841_vm1, %v5612_v16  ;;  %v5635_v58 = vpop.permute.xlu0 %1582  ;;  %4218 = vmatmul.mubr.msk.f32.gmra.mxu0 %vm841_vm1, %v5631_v29 }
 0x135   : > { %v1597_v22 = vpop.permute.xlu1 %1596  ;;  %v1704_v15 = vsel %vm1664_vm3, %v5635_v58, %v1599_v50  ;;  %1305 = vmatprep.mubr.f32.mxu1 %v8123_v0  ;;  %1424 = vmatprep.mubr.f32.mxu0 %v8123_v0 }
 0x136   : > { %1763 = vmatpush1.msra.mxu0 %v1704_v15  ;;  %2153 = vperm.xlu0 %4442, %v2135_v45  }
 0x137   : > { %2158 = vperm.xlu1 %4443, %v2136_v37  }
 0x138   : > { %4210 = vmatmul.mubr.msk.f32.gmra.mxu1 %vm841_vm1, %v5631_v29  ;;  %v5654_v5 = vpop.permute.xlu0 %1612  ;;  %4219 = vmatmul.mubr.msk.f32.gmra.mxu0 %vm841_vm1, %v5650_v26 }
 0x139   : > { %v758_v10 = vpop.permute.xlu1 %757  ;;  %v1695_v21 = vsel %vm1664_vm3, %v1597_v22, %v5654_v5  ;;  %1311 = vmatprep.mubr.f32.mxu1 %v8123_v0  ;;  %1430 = vmatprep.mubr.f32.mxu0 %v8123_v0 }
 0x13a   : > { %v783_v46 = vsel %vm775_vm2, %v758_v10, %v5446_v39  ;;  %v791_v41 = vsel %vm775_vm2, %v5415_v35, %v758_v10  ;;  %1764 = vmatprep.subr.mxu0 %v1695_v21  ;;  %2143 = vperm.xlu0 %4442, %v2133_v11   ;;  %v2134_v39 = vld [vmem:[%s8097_s4 + $0x8] sm:$0xff] }
 0x13b   : > { %1471 = vmatprep.subr.mxu1 %v783_v46  ;;  %2148 = vperm.xlu1 %4443, %v2134_v39  }
 0x13c   : > { %1472 = vmatpush1.msra.mxu1 %v791_v41  ;;  %v5679_v47 = vpop.permute.xlu0 %1580  ;;  %4220 = vmatmul.mubr.msk.f32.gmra.mxu0 %vm841_vm1, %v5672_v32 }
 0x13d   : > { %v1595_v54 = vpop.permute.xlu1 %1594  ;;  %4211 = vmatmul.mubr.msk.f32.gmra.mxu1 %vm841_vm1, %v5650_v26  ;;  %v1703_v35 = vsel %vm1664_vm3, %v5679_v47, %v1597_v22  ;;  %1436 = vmatprep.mubr.f32.mxu0 %v8123_v0 }
 0x13e   : > { %1317 = vmatprep.mubr.f32.mxu1 %v8123_v0  ;;  %1765 = vmatpush1.msra.mxu0 %v1703_v35 }
 0x140   : > { %v5692_v43 = vpop.permute.xlu0 %1610  ;;  %4221 = vmatmul.mubr.msk.f32.gmra.mxu0 %vm841_vm1, %v5688_v53 }
 0x141   : > { %v756_v4 = vpop.permute.xlu1 %755  ;;  %4212 = vmatmul.mubr.msk.f32.gmra.mxu1 %vm841_vm1, %v5672_v32  ;;  %v1694_v62 = vsel %vm1664_vm3, %v1595_v54, %v5692_v43  ;;  %1442 = vmatprep.mubr.f32.mxu0 %v8123_v0 }
 0x142   : > { %v782_v44 = vsel %vm775_vm2, %v756_v4, %v5475_v49  ;;  %1323 = vmatprep.mubr.f32.mxu1 %v8123_v0  ;;  %v790_v2 = vsel %vm775_vm2, %v5427_v52, %v756_v4  ;;  %1766 = vmatprep.subr.mxu0 %v1694_v62 }
 0x143   : > { %1473 = vmatprep.subr.mxu1 %v782_v44 }
 0x144   : > { %1474 = vmatpush1.msra.mxu1 %v790_v2  ;;  %v5711_v49 = vpop.permute.xlu0 %1578  ;;  %4222 = vmatmul.mubr.msk.f32.gmra.mxu0 %vm841_vm1, %v5707_v30 }
 0x145   : > { %v1593_v12 = vpop.permute.xlu1 %1592  ;;  %4213 = vmatmul.mubr.msk.f32.gmra.mxu1 %vm841_vm1, %v5688_v53  ;;  %v1702_v52 = vsel %vm1664_vm3, %v5711_v49, %v1595_v54  ;;  %1448 = vmatprep.mubr.f32.mxu0 %v8123_v0 }
 0x146   : > { %1329 = vmatprep.mubr.f32.mxu1 %v8123_v0  ;;  %1767 = vmatpush1.msra.mxu0 %v1702_v52  ;;  %v5814_v52 = vld [vmem:[#allocation8 + $0x80] sm:$0xff] }
 0x148   : > { %v5724_v20 = vpop.permute.xlu0 %1608  ;;  %4223 = vmatmul.mubr.msk.f32.gmra.mxu0 %vm841_vm1, %v5720_v1 }
 0x149   : > { %v754_v13 = vpop.permute.xlu1 %753  ;;  %4214 = vmatmul.mubr.msk.f32.gmra.mxu1 %vm841_vm1, %v5707_v30  ;;  %v1693_v55 = vsel %vm1664_vm3, %v1593_v12, %v5724_v20  ;;  %1810 = vmatprep.mubr.f32.mxu0 %v8123_v0 }
 0x14a   : > { %v781_v61 = vsel %vm775_vm2, %v754_v13, %v5494_v14  ;;  %1335 = vmatprep.mubr.f32.mxu1 %v8123_v0  ;;  %v789_v57 = vsel %vm775_vm2, %v5444_v36, %v754_v13  ;;  %1768 = vmatprep.subr.mxu0 %v1693_v55 }
 0x14b   : > { %1475 = vmatprep.subr.mxu1 %v781_v61 }
 0x14c   : > { %1476 = vmatpush1.msra.mxu1 %v789_v57  ;;  %v5741_v14 = vpop.permute.xlu0 %1576 }
 0x14d   : > { %v1591_v51 = vpop.permute.xlu1 %1590  ;;  %4215 = vmatmul.mubr.msk.f32.gmra.mxu1 %vm841_vm1, %v5720_v1  ;;  %v1701_v60 = vsel %vm1664_vm3, %v5741_v14, %v1593_v12  ;;  %v5832_v57 = vpop.f32.mrf.mxu0 }
 0x14e   : > { %1519 = vmatprep.mubr.f32.mxu1 %v8123_v0  ;;  %1769 = vmatpush1.msra.mxu0 %v1701_v60  ;;  %v5841_v60 = vld [vmem:[#allocation8 + $0x90] sm:$0xff] }
 0x150   : > { %v5747_v36 = vpop.permute.xlu0 %1606 }
 0x151   : > { %v752_v7 = vpop.permute.xlu1 %751  ;;  %v1692_v42 = vsel %vm1664_vm3, %v1591_v51, %v5747_v36 }
 0x152   : > { %v780_v56 = vsel %vm775_vm2, %v752_v7, %v5523_v18  ;;  %v788_v9 = vsel %vm775_vm2, %v5466_v24, %v752_v7  ;;  %1770 = vmatprep.subr.mxu0 %v1692_v42 }
 0x153   : > { %1477 = vmatprep.subr.mxu1 %v780_v56 }
 0x154   : > { %1478 = vmatpush1.msra.mxu1 %v788_v9  ;;  %v5758_v3 = vpop.permute.xlu0 %1574 }
 0x155   : > { %v1589_v50 = vpop.permute.xlu1 %1588  ;;  %v1700_v23 = vsel %vm1664_vm3, %v5758_v3, %v1591_v51 }
 0x156   : > { %1771 = vmatpush1.msra.mxu0 %v1700_v23 }
 0x158   : > { %v5763_v25 = vpop.permute.xlu0 %1604 }
 0x159   : > { %v750_v18 = vpop.permute.xlu1 %749  ;;  %v1691_v24 = vsel %vm1664_vm3, %v1589_v50, %v5763_v25 }
 0x15a   : > { %v779_v22 = vsel %vm775_vm2, %v750_v18, %v5542_v59  ;;  %v787_v45 = vsel %vm775_vm2, %v5492_v33, %v750_v18  ;;  %1772 = vmatprep.subr.mxu0 %v1691_v24 }
 0x15b   : > { %1479 = vmatprep.subr.mxu1 %v779_v22  ;;  %v5872_v22 = vld [vmem:[#allocation8 + $0xa0] sm:$0xff] }
 0x15c   : > { %1480 = vmatpush1.msra.mxu1 %v787_v45  ;;  %v5774_v37 = vpop.permute.xlu0 %1572 }
 0x15d   : > { %v1587_v15 = vpop.permute.xlu1 %1586  ;;  %v1699_v10 = vsel %vm1664_vm3, %v5774_v37, %v1589_v50 }
 0x15e   : > { %1773 = vmatpush1.msra.mxu0 %v1699_v10 }
 0x160   : > { %v5779_v11 = vpop.permute.xlu0 %1602 }
 0x161   : > { %v748_v59 = vpop.permute.xlu1 %747  ;;  %v1690_v21 = vsel %vm1664_vm3, %v1587_v15, %v5779_v11 }
 0x162   : > { %v778_v46 = vsel %vm775_vm2, %v748_v59, %v5571_v19  ;;  %v786_v33 = vsel %vm775_vm2, %v5514_v28, %v748_v59  ;;  %1774 = vmatprep.subr.mxu0 %v1690_v21 }
 0x163   : > { %1481 = vmatprep.subr.mxu1 %v778_v46  ;;  %v5891_v46 = vld [vmem:[#allocation8 + $0xa8] sm:$0xff] }
 0x164   : > { %1482 = vmatpush1.msra.mxu1 %v786_v33  ;;  %v5790_v39 = vpop.permute.xlu0 %1570 }
 0x165   : > { %v1585_v41 = vpop.permute.xlu1 %1584  ;;  %v1698_v54 = vsel %vm1664_vm3, %v5790_v39, %v1587_v15 }
 0x166   : > { %1775 = vmatpush1.msra.mxu0 %v1698_v54 }
 0x168   : > { %v5795_v35 = vpop.permute.xlu0 %1600 }
 0x169   : > { %v746_v19 = vpop.permute.xlu1 %745  ;;  %v1689_v44 = vsel %vm1664_vm3, %v1585_v41, %v5795_v35 }
 0x16a   : > { %v777_v28 = vsel %vm775_vm2, %v746_v19, %v5582_v8  ;;  %v785_v4 = vsel %vm775_vm2, %v5540_v48, %v746_v19  ;;  %1776 = vmatprep.subr.mxu0 %v1689_v44 }
 0x16b   : > { %1483 = vmatprep.subr.mxu1 %v777_v28 }
 0x16c   : > { %1484 = vmatpush1.msra.mxu1 %v785_v4  ;;  %v5806_v2 = vpop.permute.xlu0 %1568 }
 0x16d   : > { %v744_v62 = vpop.permute.xlu1 %743  ;;  %v1697_v48 = vsel %vm1664_vm3, %v5806_v2, %v1585_v41 }
 0x16e   : > { %v776_v12 = vsel %vm775_vm2, %v744_v62, %v5595_v34  ;;  %v784_v8 = vsel %vm775_vm2, %v5562_v63, %v744_v62  ;;  %1777 = vmatpush1.msra.mxu0 %v1697_v48  ;;  %v5825_v63 = vld [vmem:[#allocation8 + $0x88] sm:$0xff] }
 0x16f   : > { %1485 = vmatprep.subr.mxu1 %v776_v12  ;;  %4232 = vmatmul.mubr.msk.f32.vlgmr.msra.gmra.mxu0 %vm841_vm1, %v5814_v52 }
 0x170   : > { %1486 = vmatpush1.msra.mxu1 %v784_v8  ;;  %v1663_v34 = vpop.permute.xlu0 %1662  ;;  %1816 = vmatprep.mubr.f32.mxu0 %v8123_v0 }
 0x171   : > { %v1647_v13 = vpop.permute.xlu1 %1646  ;;  %4224 = vmatmul.mubr.msk.f32.vlgmr.msra.gmra.mxu1 %vm841_vm1, %v5593_v40  ;;  %v1712_v61 = vsel %vm1664_vm3, %v1663_v34, %v5635_v58 }
 0x172   : > { %1525 = vmatprep.mubr.f32.mxu1 %v8123_v0  ;;  %v1672_v55 = vsel %vm1664_vm3, %v1647_v13, %v1663_v34  ;;  %1988 = vmatprep.subr.mxu0 %v1712_v61 }
 0x173   : > { %4233 = vmatmul.mubr.msk.f32.gmra.mxu0 %vm841_vm1, %v5825_v63 }
 0x174   : > { %1989 = vmatpush1.msra.mxu0 %v1672_v55  ;;  %v1661_v51 = vpop.permute.xlu0 %1660  ;;  %1822 = vmatprep.mubr.f32.mxu0 %v8123_v0 }
 0x175   : > { %v1631_v40 = vpop.permute.xlu1 %1630  ;;  %4225 = vmatmul.mubr.msk.f32.gmra.mxu1 %vm841_vm1, %v5612_v16  ;;  %v1711_v56 = vsel %vm1664_vm3, %v1661_v51, %v5679_v47  ;;  %v5850_v16 = vpop.f32.mrf.mxu0 }
 0x176   : > { %v1680_v58 = vsel %vm1664_vm3, %v1631_v40, %v1647_v13  ;;  %v1688_v7 = vsel %vm1664_vm3, %v5614_v27, %v1631_v40  ;;  %1531 = vmatprep.mubr.f32.mxu1 %v8123_v0  ;;  %1990 = vmatprep.subr.mxu0 %v1711_v56  ;;  %v5858_v27 = vld [vmem:[#allocation8 + $0x98] sm:$0xff] }
 0x177   : > { %1875 = vmatprep.subr.mxu1 %v1680_v58  ;;  %4234 = vmatmul.mubr.msk.f32.gmra.mxu0 %vm841_vm1, %v5841_v60  ;;  %v5865_v23 = vpop.f32.mrf.mxu0 }
 0x178   : > { %1876 = vmatpush1.msra.mxu1 %v1688_v7  ;;  %v1645_v9 = vpop.permute.xlu0 %1644  ;;  %1828 = vmatprep.mubr.f32.mxu0 %v8123_v0 }
 0x179   : > { %v1659_v42 = vpop.permute.xlu1 %1658  ;;  %4226 = vmatmul.mubr.msk.f32.gmra.mxu1 %vm841_vm1, %v5631_v29  ;;  %v1671_v50 = vsel %vm1664_vm3, %v1645_v9, %v1661_v51  ;;  %v5882_v15 = vpop.f32.mrf.mxu0 }
 0x17a   : > { %1537 = vmatprep.mubr.f32.mxu1 %v8123_v0  ;;  %v1710_v47 = vsel %vm1664_vm3, %v1659_v42, %v5711_v49  ;;  %1991 = vmatpush1.msra.mxu0 %v1671_v50 }
 0x17b   : > { %4235 = vmatmul.mubr.msk.f32.gmra.mxu0 %vm841_vm1, %v5858_v27  ;;  %1992 = vmatprep.subr.mxu0 %v1710_v47 }
 0x17c   : > { %v1629_v18 = vpop.permute.xlu0 %1628  ;;  %1834 = vmatprep.mubr.f32.mxu0 %v8123_v0 }
 0x17d   : > { %v1643_v29 = vpop.permute.xlu1 %1642  ;;  %4227 = vmatmul.mubr.msk.f32.gmra.mxu1 %vm841_vm1, %v5650_v26  ;;  %v1679_v24 = vsel %vm1664_vm3, %v1629_v18, %v1645_v9  ;;  %v1687_v45 = vsel %vm1664_vm3, %v5654_v5, %v1629_v18 }
 0x17e   : > { %v1670_v49 = vsel %vm1664_vm3, %v1643_v29, %v1659_v42  ;;  %1543 = vmatprep.mubr.f32.mxu1 %v8123_v0  ;;  %1877 = vmatprep.subr.mxu1 %v1679_v24 }
 0x17f   : > { %1993 = vmatpush1.msra.mxu0 %v1670_v49  ;;  %1878 = vmatpush1.msra.mxu1 %v1687_v45 }
 0x180   : > { %4236 = vmatmul.mubr.msk.f32.gmra.mxu0 %vm841_vm1, %v5872_v22  ;;  %v1657_v10 = vpop.permute.xlu0 %1656 }
 0x181   : > { %v1627_v26 = vpop.permute.xlu1 %1626  ;;  %4228 = vmatmul.mubr.msk.f32.gmra.mxu1 %vm841_vm1, %v5672_v32  ;;  %1840 = vmatprep.mubr.f32.mxu0 %v8123_v0  ;;  %v1709_v33 = vsel %vm1664_vm3, %v1657_v10, %v5741_v14  ;;  %v5900_v32 = vpop.f32.mrf.mxu0 }
 0x182   : > { %v1678_v59 = vsel %vm1664_vm3, %v1627_v26, %v1643_v29  ;;  %v1686_v5 = vsel %vm1664_vm3, %v5692_v43, %v1627_v26  ;;  %1549 = vmatprep.mubr.f32.mxu1 %v8123_v0  ;;  %1994 = vmatprep.subr.mxu0 %v1709_v33  ;;  %v5907_v43 = vld [vmem:[#allocation8 + $0xb0] sm:$0xff] }
 0x183   : > { %1879 = vmatprep.subr.mxu1 %v1678_v59  ;;  %v5915_v19 = vpop.f32.mrf.mxu0 }
 0x184   : > { %1880 = vmatpush1.msra.mxu1 %v1686_v5  ;;  %4237 = vmatmul.mubr.msk.f32.gmra.mxu0 %vm841_vm1, %v5891_v46  ;;  %v1641_v41 = vpop.permute.xlu0 %1640 }
 0x185   : > { %v1655_v21 = vpop.permute.xlu1 %1654  ;;  %4229 = vmatmul.mubr.msk.f32.gmra.mxu1 %vm841_vm1, %v5688_v53  ;;  %1846 = vmatprep.mubr.f32.mxu0 %v8123_v0  ;;  %v1669_v54 = vsel %vm1664_vm3, %v1641_v41, %v1657_v10  ;;  %v5932_v12 = vpop.f32.mrf.mxu0 }
 0x186   : > { %v1708_v14 = vsel %vm1664_vm3, %v1655_v21, %v5758_v3  ;;  %1555 = vmatprep.mubr.f32.mxu1 %v8123_v0  ;;  %1995 = vmatpush1.msra.mxu0 %v1669_v54  ;;  %v5922_v3 = vld [vmem:[#allocation8 + $0xb8] sm:$0xff] }
 0x187   : > { %1996 = vmatprep.subr.mxu0 %v1708_v14  ;;  %v5948_v34 = vpop.f32.mrf.mxu0 }
 0x188   : > { %4238 = vmatmul.mubr.msk.f32.gmra.mxu0 %vm841_vm1, %v5907_v43  ;;  %v1625_v28 = vpop.permute.xlu0 %1624 }
 0x189   : > { %v1639_v53 = vpop.permute.xlu1 %1638  ;;  %4230 = vmatmul.mubr.msk.f32.gmra.mxu1 %vm841_vm1, %v5707_v30  ;;  %1852 = vmatprep.mubr.f32.mxu0 %v8123_v0  ;;  %v1677_v44 = vsel %vm1664_vm3, %v1625_v28, %v1641_v41  ;;  %v1685_v62 = vsel %vm1664_vm3, %v5724_v20, %v1625_v28  ;;  %v5955_v40 = vpop.f32.mrf.mxu0 }
 0x18a   : > { %v1668_v4 = vsel %vm1664_vm3, %v1639_v53, %v1655_v21  ;;  %1561 = vmatprep.mubr.f32.mxu1 %v8123_v0  ;;  %1881 = vmatprep.subr.mxu1 %v1677_v44 }
 0x18b   : > { %1997 = vmatpush1.msra.mxu0 %v1668_v4  ;;  %1882 = vmatpush1.msra.mxu1 %v1685_v62 }
 0x18c   : > { %4239 = vmatmul.mubr.msk.f32.gmra.mxu0 %vm841_vm1, %v5922_v3  ;;  %v1653_v8 = vpop.permute.xlu0 %1652 }
 0x18d   : > { %v1623_v30 = vpop.permute.xlu1 %1622  ;;  %4231 = vmatmul.mubr.msk.f32.gmra.mxu1 %vm841_vm1, %v5720_v1  ;;  %2036 = vmatprep.mubr.f32.mxu0 %v8123_v0  ;;  %v1707_v13 = vsel %vm1664_vm3, %v1653_v8, %v5774_v37 }
 0x18e   : > { %v1676_v48 = vsel %vm1664_vm3, %v1623_v30, %v1639_v53  ;;  %v1684_v20 = vsel %vm1664_vm3, %v5747_v36, %v1623_v30  ;;  %1923 = vmatprep.mubr.f32.mxu1 %v8123_v0  ;;  %1998 = vmatprep.subr.mxu0 %v1707_v13 }
 0x18f   : > { %1883 = vmatprep.subr.mxu1 %v1676_v48 }
 0x190   : > { %1884 = vmatpush1.msra.mxu1 %v1684_v20  ;;  %v1637_v61 = vpop.permute.xlu0 %1636 }
 0x191   : > { %v1651_v1 = vpop.permute.xlu1 %1650  ;;  %v1667_v36 = vsel %vm1664_vm3, %v1637_v61, %v1653_v8 }
 0x192   : > { %v1706_v55 = vsel %vm1664_vm3, %v1651_v1, %v5790_v39  ;;  %1999 = vmatpush1.msra.mxu0 %v1667_v36  ;;  %v5964_v39 = vpop.f32.mrf.mxu0 }
 0x193   : > { %2000 = vmatprep.subr.mxu0 %v1706_v55 }
 0x194   : > { %v1621_v51 = vpop.permute.xlu0 %1620 }
 0x195   : > { %v1635_v37 = vpop.permute.xlu1 %1634  ;;  %v1675_v7 = vsel %vm1664_vm3, %v1621_v51, %v1637_v61  ;;  %v1683_v56 = vsel %vm1664_vm3, %v5763_v25, %v1621_v51  ;;  %v5974_v25 = vpop.f32.mrf.mxu0 }
 0x196   : > { %v1666_v58 = vsel %vm1664_vm3, %v1635_v37, %v1651_v1  ;;  %1885 = vmatprep.subr.mxu1 %v1675_v7 }
 0x197   : > { %2001 = vmatpush1.msra.mxu0 %v1666_v58  ;;  %1886 = vmatpush1.msra.mxu1 %v1683_v56  ;;  %v5983_v26 = vpop.f32.mrf.mxu0 }
 0x198   : > { %v1649_v9 = vpop.permute.xlu0 %1648 }
 0x199   : > { %v1619_v42 = vpop.permute.xlu1 %1618  ;;  %v1705_v29 = vsel %vm1664_vm3, %v1649_v9, %v5806_v2 }
 0x19a   : > { %v1674_v47 = vsel %vm1664_vm3, %v1619_v42, %v1635_v37  ;;  %v1682_v50 = vsel %vm1664_vm3, %v5779_v11, %v1619_v42  ;;  %2002 = vmatprep.subr.mxu0 %v1705_v29 }
 0x19b   : > { %1887 = vmatprep.subr.mxu1 %v1674_v47 }
 0x19c   : > { %1888 = vmatpush1.msra.mxu1 %v1682_v50  ;;  %v1633_v49 = vpop.permute.xlu0 %1632 }
 0x19d   : > { %v1617_v18 = vpop.permute.xlu1 %1616  ;;  %v1665_v11 = vsel %vm1664_vm3, %v1633_v49, %v1649_v9 }
 0x19e   : > { %v1681_v24 = vsel %vm1664_vm3, %v5795_v35, %v1617_v18  ;;  %v1673_v45 = vsel %vm1664_vm3, %v1617_v18, %v1633_v49  ;;  %2003 = vmatpush1.msra.mxu0 %v1665_v11  ;;  %v5991_v35 = vpop.f32.mrf.mxu0 }
 0x19f   : > { %1889 = vmatprep.subr.mxu1 %v1673_v45  ;;  %4248 = vmatmul.mubr.msk.f32.vlgmr.msra.gmra.mxu0 %vm841_vm1, %v5814_v52 }
 0x1a0   : > { %1890 = vmatpush1.msra.mxu1 %v1681_v24  ;;  %2042 = vmatprep.mubr.f32.mxu0 %v8123_v0  ;;  %v5999_v2 = vpop.f32.mrf.mxu0 }
 0x1a1   : > { %4240 = vmatmul.mubr.msk.f32.vlgmr.msra.gmra.mxu1 %vm841_vm1, %v5814_v52 }
 0x1a2   : > { %1929 = vmatprep.mubr.f32.mxu1 %v8123_v0  ;;  %v6007_v52 = vpop.f32.mrf.mxu0 }
 0x1a3   : > { %4249 = vmatmul.mubr.msk.f32.gmra.mxu0 %vm841_vm1, %v5825_v63 }
 0x1a4   : > { %2048 = vmatprep.mubr.f32.mxu0 %v8123_v0 }
 0x1a5   : > { %4241 = vmatmul.mubr.msk.f32.gmra.mxu1 %vm841_vm1, %v5825_v63  ;;  %v6015_v63 = vpop.f32.mrf.mxu0 }
 0x1a6   : > { %1935 = vmatprep.mubr.f32.mxu1 %v8123_v0 }
 0x1a7   : > { %4250 = vmatmul.mubr.msk.f32.gmra.mxu0 %vm841_vm1, %v5841_v60  ;;  %v6025_v10 = vpop.f32.mrf.mxu0 }
 0x1a8   : > { %2054 = vmatprep.mubr.f32.mxu0 %v8123_v0  ;;  %8204 = vst [vmem:[#allocation35_spill] sm:$0xff] %v6025_v10 }
 0x1a9   : > { %4242 = vmatmul.mubr.msk.f32.gmra.mxu1 %vm841_vm1, %v5841_v60  ;;  %v6023_v60 = vpop.f32.mrf.mxu1 }
 0x1aa   : > { %1941 = vmatprep.mubr.f32.mxu1 %v8123_v0 }
 0x1ab   : > { %4251 = vmatmul.mubr.msk.f32.gmra.mxu0 %vm841_vm1, %v5858_v27 }
 0x1ac   : > { %2060 = vmatprep.mubr.f32.mxu0 %v8123_v0 }
 0x1ad   : > { %4243 = vmatmul.mubr.msk.f32.gmra.mxu1 %vm841_vm1, %v5858_v27  ;;  %v6033_v27 = vpop.f32.mrf.mxu1 }
 0x1ae   : > { %1947 = vmatprep.mubr.f32.mxu1 %v8123_v0 }
 0x1af   : > { %4252 = vmatmul.mubr.msk.f32.gmra.mxu0 %vm841_vm1, %v5872_v22  ;;  %v6043_v59 = vpop.f32.mrf.mxu1 }
 0x1b0   : > { %2066 = vmatprep.mubr.f32.mxu0 %v8123_v0 }
 0x1b1   : > { %4244 = vmatmul.mubr.msk.f32.gmra.mxu1 %vm841_vm1, %v5872_v22  ;;  %v6035_v22 = vpop.f32.mrf.mxu0  ;;  %v6052_v5 = vpop.f32.mrf.mxu1 }
 0x1b2   : > { %1953 = vmatprep.mubr.f32.mxu1 %v8123_v0  ;;  %8205 = vst [vmem:[#allocation36_spill] sm:$0xff] %v6035_v22 }
 0x1b3   : > { %4253 = vmatmul.mubr.msk.f32.gmra.mxu0 %vm841_vm1, %v5891_v46  ;;  %v6057_v21 = vpop.f32.mrf.mxu1 }
 0x1b4   : > { %2072 = vmatprep.mubr.f32.mxu0 %v8123_v0 }
 0x1b5   : > { %4245 = vmatmul.mubr.msk.f32.gmra.mxu1 %vm841_vm1, %v5891_v46  ;;  %v6045_v46 = vpop.f32.mrf.mxu0 }
 0x1b6   : > { %1959 = vmatprep.mubr.f32.mxu1 %v8123_v0  ;;  %8206 = vst [vmem:[#allocation37_spill] sm:$0xff] %v6045_v46 }
 0x1b7   : > { %4254 = vmatmul.mubr.msk.f32.gmra.mxu0 %vm841_vm1, %v5907_v43  ;;  %v6054_v33 = vpop.f32.mrf.mxu0 }
 0x1b8   : > { %2078 = vmatprep.mubr.f32.mxu0 %v8123_v0  ;;  %8207 = vst [vmem:[#allocation38_spill] sm:$0xff] %v6054_v33  ;;  %v6147_v33 = vpop.permute.xlu1 %2173 }
 0x1b9   : > { %4246 = vmatmul.mubr.msk.f32.gmra.mxu1 %vm841_vm1, %v5907_v43  ;;  %v6059_v41 = vpop.f32.mrf.mxu0  ;;  %v6061_v43 = vpop.f32.mrf.mxu1  ;;  %8239 = vst [vmem:[#allocation70_spill] sm:$0xff] %v6147_v33 }
 0x1ba   : > { %1965 = vmatprep.mubr.f32.mxu1 %v8123_v0  ;;  %8208 = vst [vmem:[#allocation39_spill] sm:$0xff] %v6059_v41 }
 0x1bb   : > { %4255 = vmatmul.mubr.msk.f32.gmra.mxu0 %vm841_vm1, %v5922_v3  ;;  %v6063_v14 = vpop.f32.mrf.mxu0  ;;  %v6065_v54 = vpop.f32.mrf.mxu1 }
 0x1bc   : > { %2825 = vmatprep.mubr.f32.mxu0 %v8123_v0  ;;  %8209 = vst [vmem:[#allocation40_spill] sm:$0xff] %v6063_v14  ;;  %8210 = vst [vmem:[#allocation41_spill] sm:$0xff] %v6065_v54 }
 0x1bd   : > { %4247 = vmatmul.mubr.msk.f32.gmra.mxu1 %vm841_vm1, %v5922_v3  ;;  %v6067_v53 = vpop.f32.mrf.mxu0  ;;  %v6069_v28 = vpop.f32.mrf.mxu1 }
 0x1be   : > { %2720 = vmatprep.mubr.f32.mxu1 %v8123_v0  ;;  %8211 = vst [vmem:[#allocation42_spill] sm:$0xff] %v6067_v53  ;;  %8212 = vst [vmem:[#allocation43_spill] sm:$0xff] %v6069_v28 }
 0x1bf   : > { %v6071_v3 = vpop.f32.mrf.mxu0  ;;  %v6073_v4 = vpop.f32.mrf.mxu1 }
 0x1c0   : > { %8213 = vst [vmem:[#allocation44_spill] sm:$0xff] %v6071_v3  ;;  %8214 = vst [vmem:[#allocation45_spill] sm:$0xff] %v6073_v4 }
 0x1c1   : > { %v6075_v44 = vpop.f32.mrf.mxu0  ;;  %v6077_v62 = vpop.f32.mrf.mxu1 }
 0x1c2   : > { %8215 = vst [vmem:[#allocation46_spill] sm:$0xff] %v6075_v44  ;;  %8216 = vst [vmem:[#allocation47_spill] sm:$0xff] %v6077_v62  ;;  %v6137_v44 = vpop.permute.xlu0 %2178 }
 0x1c3   : > { %v6079_v30 = vpop.f32.mrf.mxu0  ;;  %v6081_v8 = vpop.f32.mrf.mxu1  ;;  %8236 = vst [vmem:[#allocation67_spill] sm:$0xff] %v6137_v44 }
 0x1c4   : > { %8217 = vst [vmem:[#allocation48_spill] sm:$0xff] %v6079_v30  ;;  %8218 = vst [vmem:[#allocation49_spill] sm:$0xff] %v6081_v8 }
 0x1c5   : > { %v6083_v48 = vpop.f32.mrf.mxu0  ;;  %v6085_v20 = vpop.f32.mrf.mxu1 }
 0x1c6   : > { %8219 = vst [vmem:[#allocation50_spill] sm:$0xff] %v6083_v48  ;;  %8220 = vst [vmem:[#allocation51_spill] sm:$0xff] %v6085_v20  ;;  %v6149_v46 = vpop.permute.xlu0 %2163 }
 0x1c7   : > { %v6087_v13 = vpop.f32.mrf.mxu0  ;;  %v6089_v1 = vpop.f32.mrf.mxu1 }
 0x1c8   : > { %8221 = vst [vmem:[#allocation52_spill] sm:$0xff] %v6087_v13  ;;  %8222 = vst [vmem:[#allocation53_spill] sm:$0xff] %v6089_v1 }
 0x1c9   : > { %v6091_v61 = vpop.f32.mrf.mxu0  ;;  %v6093_v55 = vpop.f32.mrf.mxu1 }
 0x1ca   : > { %8223 = vst [vmem:[#allocation54_spill] sm:$0xff] %v6091_v61  ;;  %8224 = vst [vmem:[#allocation55_spill] sm:$0xff] %v6093_v55 }
 0x1cb   : > { %v6095_v36 = vpop.f32.mrf.mxu0  ;;  %v6097_v37 = vpop.f32.mrf.mxu1 }
 0x1cc   : > { %8225 = vst [vmem:[#allocation56_spill] sm:$0xff] %v6095_v36  ;;  %8226 = vst [vmem:[#allocation57_spill] sm:$0xff] %v6097_v37  ;;  %v6157_v37 = vpop.permute.xlu0 %2153 }
 0x1cd   : > { %v6099_v51 = vpop.f32.mrf.mxu0  ;;  %v6101_v58 = vpop.f32.mrf.mxu1 }
 0x1ce   : > { %8227 = vst [vmem:[#allocation58_spill] sm:$0xff] %v6099_v51  ;;  %8228 = vst [vmem:[#allocation59_spill] sm:$0xff] %v6101_v58  ;;  %v6155_v58 = vpop.permute.xlu1 %2168 }
 0x1cf   : > { %v6103_v7 = vpop.f32.mrf.mxu0 }
 0x1d0   : > { %8229 = vst [vmem:[#allocation60_spill] sm:$0xff] %v6103_v7  ;;  %v6170_v8 = vpop.permute.xlu0 %2143 }
 0x1ec   : > { %v6105_v42 = vpop.f32.mrf.mxu0 }
 0x1ee   : > { %v6107_v47 = vpop.f32.mrf.mxu0 }
 0x1f0   : > { %v1295_v56 = vpop.f32.mrf.mxu1  ;;  %v6109_v29 = vpop.f32.mrf.mxu0 }
 0x1f2   : > { %v1297_v9 = vpop.f32.mrf.mxu1  ;;  %v6111_v49 = vpop.f32.mrf.mxu0 }
 0x1f3   : > { %v1298_v62 = vadd.f32 %v1297_v9, %v5850_v16 }
 0x1f4   : > { %v1301_v50 = vpop.f32.mrf.mxu1  ;;  %v6113_v45 = vpop.f32.mrf.mxu0 }
 0x1f6   : > { %v1303_v18 = vpop.f32.mrf.mxu1  ;;  %v6115_v0 = vpop.f32.mrf.mxu0 }
 0x1f7   : > { %8230 = vst [vmem:[#allocation61_spill] sm:$0xff] %v6115_v0 }
 0x1f8   : > { %v1307_v24 = vpop.f32.mrf.mxu1  ;;  %v6119_v38 = vpop.f32.mrf.mxu0 }
 0x1f9   : > { %8231 = vst [vmem:[#allocation62_spill] sm:$0xff] %v6119_v38  ;;  %v1304_v38 = vadd.f32 %v1303_v18, %v5882_v15 }
 0x1fa   : > { %v1309_v11 = vpop.f32.mrf.mxu1  ;;  %v6123_v51 = vpop.f32.mrf.mxu0 }
 0x1fb   : > { %8232 = vst [vmem:[#allocation63_spill] sm:$0xff] %v6123_v51 }
 0x1fc   : > { %v6127_v36 = vpop.f32.mrf.mxu0 }
 0x1fd   : > { %v6117_v31 = vpop.f32.mrf.mxu1  ;;  %8233 = vst [vmem:[#allocation64_spill] sm:$0xff] %v6127_v36 }
 0x1fe   : > { %v6131_v13 = vpop.f32.mrf.mxu0 }
 0x1ff   : > { %v6121_v7 = vpop.f32.mrf.mxu1  ;;  %8234 = vst [vmem:[#allocation65_spill] sm:$0xff] %v6131_v13 }
 0x200   : > { %v6135_v30 = vpop.f32.mrf.mxu0 }
 0x201   : > { %v6125_v6 = vpop.f32.mrf.mxu1  ;;  %8235 = vst [vmem:[#allocation66_spill] sm:$0xff] %v6135_v30  ;;  %v6168_v30 = vpop.permute.xlu1 %2158 }
 0x202   : > { %v6141_v53 = vpop.f32.mrf.mxu0 }
 0x203   : > { %v6129_v61 = vpop.f32.mrf.mxu1  ;;  %8237 = vst [vmem:[#allocation68_spill] sm:$0xff] %v6141_v53 }
 0x204   : > { %v6145_v41 = vpop.f32.mrf.mxu0 }
 0x205   : > { %v6133_v48 = vpop.f32.mrf.mxu1  ;;  %8238 = vst [vmem:[#allocation69_spill] sm:$0xff] %v6145_v41  ;;  %v1296_v41 = vadd.f32 %v1295_v56, %v5832_v57  ;;  %v6183_v0 = vpop.permute.xlu1 %2148 }
 0x206   : > { %v6153_v10 = vpop.f32.mrf.mxu0 }
 0x207   : > { %v6139_v3 = vpop.f32.mrf.mxu1  ;;  %8240 = vst [vmem:[#allocation71_spill] sm:$0xff] %v6153_v10 }
 0x208   : > { %v6161_v1 = vpop.f32.mrf.mxu0 }
 0x209   : > { %v6143_v14 = vpop.f32.mrf.mxu1  ;;  %8241 = vst [vmem:[#allocation72_spill] sm:$0xff] %v6161_v1  ;;  %v1302_v1 = vadd.f32 %v1301_v50, %v5865_v23  ;;  %v1308_v23 = vadd.f32 %v1307_v24, %v5900_v32  ;;  %v1310_v50 = vadd.f32 %v1309_v11, %v5915_v19  ;;  %v8245_v24 = vld [vmem:[#allocation28_spill] sm:$0xff] }
 0x20a   : > { %v6165_v20 = vpop.f32.mrf.mxu0 }
 0x20b   : > { %v6151_v22 = vpop.f32.mrf.mxu1  ;;  %8242 = vst [vmem:[#allocation73_spill] sm:$0xff] %v6165_v20 }
 0x20d   : > { %v6159_v55 = vpop.f32.mrf.mxu1 }
 0x20f   : > { %v6163_v53 = vpop.f32.mrf.mxu1 }
 0x22f   : > { %v1812_v13 = vpop.f32.mrf.mxu0 }
 0x230   : > { %v2085_v36 = vadd.f32 %v1812_v13, %v1296_v41 }
 0x231   : > { %v6172_v10 = vpop.f32.mrf.mxu1  ;;  %v1814_v4 = vpop.f32.mrf.mxu0 }
 0x232   : > { %8243 = vst [vmem:[#allocation74_spill] sm:$0xff] %v6172_v10  ;;  %v2086_v28 = vadd.f32 %v1814_v4, %v1298_v62  ;;  %v2181_v20 = vadd.f32 %v6170_v8, %v2085_v36  ;;  %v4444_v4 = vld [vmem:[%s4902_s22] sm:$0xff] }
 0x233   : > { %v6175_v51 = vpop.f32.mrf.mxu1  ;;  %v1818_v57 = vpop.f32.mrf.mxu0 }
 0x234   : > { %v2182_v54 = vadd.f32 %v6170_v8, %v2086_v28  ;;  %v2091_v10 = vadd.f32 %v1818_v57, %v1302_v1  ;;  %v2229_v16 = vadd.f32 %v2181_v20, %v5147_v17 }
 0x235   : > { %v6179_v56 = vpop.f32.mrf.mxu1  ;;  %v1820_v41 = vpop.f32.mrf.mxu0 }
 0x236   : > { %v6190_v62 = vadd.f32 %v4444_v4, %v2182_v54  ;;  %v2092_v36 = vadd.f32 %v1820_v41, %v1304_v38  ;;  %vm2277_vm4 = vcmp.ge.f32.partialorder %v2229_v16, 0.0  ;;  %v2325_v28 = vmul.f32 0.1, %v2229_v16  ;;  %v4445_v4 = vld [vmem:[%s4902_s22 + $0x20] sm:$0xff] }
 0x237   : > { %v6186_v13 = vpop.f32.mrf.mxu1  ;;  %v1824_v9 = vpop.f32.mrf.mxu0  ;;  %v2187_v1 = vadd.f32 %v6183_v0, %v2091_v10  ;;  %v1314_v41 = vadd.f32 %v6117_v31, %v5932_v12 }
 0x238   : > { %8244 = vst [vmem:[#allocation75_spill] sm:$0xff] %v6190_v62  ;;  %v2188_v17 = vadd.f32 %v6183_v0, %v2092_v36  ;;  %v2097_v20 = vadd.f32 %v1824_v9, %v1308_v23  ;;  %vm2278_vm5 = vcmp.ge.f32.partialorder %v6190_v62, 0.0  ;;  %v2373_v54 = vsel %vm2277_vm4, %v2229_v16, %v2325_v28  ;;  %v8247_v28 = vld [vmem:[#allocation26_spill] sm:$0xff] }
 0x239   : > { %v6192_v15 = vpop.f32.mrf.mxu1  ;;  %v1826_v32 = vpop.f32.mrf.mxu0  ;;  %v2326_v38 = vmul.f32 0.1, %v6190_v62  ;;  %v2235_v57 = vadd.f32 %v2187_v1, %v8245_v24  ;;  %v6208_v23 = vmul.f32 0.0, %v2373_v54 }
 0x23a   : > { %v6205_v10 = vadd.f32 %v4445_v4, %v2188_v17  ;;  %v2193_v19 = vadd.f32 %v6157_v37, %v2097_v20  ;;  %v2098_v11 = vadd.f32 %v1826_v32, %v1310_v50  ;;  %v1316_v50 = vadd.f32 %v6121_v7, %v5948_v34 }
 0x23b   : > { %v6198_v18 = vpop.f32.mrf.mxu1  ;;  %v6211_v36 = vsel %vm2278_vm5, %v6190_v62, %v2326_v38  ;;  %v1830_v9 = vpop.f32.mrf.mxu0  ;;  %vm2283_vm6 = vcmp.ge.f32.partialorder %v2235_v57, 0.0  ;;  %v2331_v16 = vmul.f32 0.1, %v2235_v57  ;;  %v1320_v17 = vadd.f32 %v6125_v6, %v5955_v40  ;;  %2469 = vrot.lane.b32.xlu0 %v6208_v23, %s4688_s15 }
 0x23c   : > { %8246 = vst [vmem:[#allocation28_spill] sm:$0xff] %v6205_v10  ;;  %v2241_v1 = vadd.f32 %v2193_v19, %v8247_v28  ;;  %v2194_v24 = vadd.f32 %v6157_v37, %v2098_v11  ;;  %2485 = vrot.lane.b32.xlu1 %v6211_v36, %s4688_s15  ;;  %v2103_v31 = vadd.f32 %v1830_v9, %v1314_v41  ;;  %vm2284_vm7 = vcmp.ge.f32.partialorder %v6205_v10, 0.0  ;;  %v4446_v41 = vld [vmem:[%s4902_s22 + $0x40] sm:$0xff]  ;;  %v8249_v9 = vld [vmem:[#allocation25_spill] sm:$0xff] }
 0x23d   : > { %v6217_v12 = vpop.f32.mrf.mxu1  ;;  %v1832_v20 = vpop.f32.mrf.mxu0  ;;  %v2379_v32 = vsel %vm2283_vm6, %v2235_v57, %v2331_v16  ;;  %v2332_v54 = vmul.f32 0.1, %v6205_v10  ;;  %v1322_v34 = vadd.f32 %v6129_v61, %v5964_v39 }
 0x23e   : > { %vm2289_vm8 = vcmp.ge.f32.partialorder %v2241_v1, 0.0  ;;  %v2337_v38 = vmul.f32 0.1, %v2241_v1  ;;  %v6228_v4 = vadd.f32 %v4446_v41, %v2194_v24  ;;  %v2199_v19 = vadd.f32 %v6168_v30, %v2103_v31 }
 0x23f   : > { %v6231_v11 = vpop.f32.mrf.mxu1  ;;  %v2104_v6 = vadd.f32 %v1832_v20, %v1316_v50  ;;  %v6235_v40 = vmul.f32 0.0, %v2379_v32  ;;  %v6240_v7 = vsel %vm2284_vm7, %v6205_v10, %v2332_v54  ;;  %v1326_v31 = vadd.f32 %v6133_v48, %v5974_v25  ;;  %v4447_v48 = vld [vmem:[%s4902_s22 + $0x60] sm:$0xff]  ;;  %v8278_v10 = vld [vmem:[#allocation72_spill] sm:$0xff] }
 0x240   : > { %8248 = vst [vmem:[#allocation26_spill] sm:$0xff] %v6228_v4  ;;  %v1836_v57 = vpop.f32.mrf.mxu0  ;;  %v2247_v16 = vadd.f32 %v2199_v19, %v8249_v9  ;;  %v2385_v24 = vsel %vm2289_vm8, %v2241_v1, %v2337_v38  ;;  %vm2290_vm9 = vcmp.ge.f32.partialorder %v6228_v4, 0.0  ;;  %2487 = vrot.lane.b32.xlu0 %v6240_v7, %s4688_s15  ;;  %v2338_v20 = vmul.f32 0.1, %v6228_v4  ;;  %v8251_v19 = vld [vmem:[#allocation24_spill] sm:$0xff] }
 0x241   : > { %v2109_v28 = vadd.f32 %v1836_v57, %v1320_v17  ;;  %v2200_v39 = vadd.f32 %v6168_v30, %v2104_v6  ;;  %2471 = vrot.lane.b32.xlu1 %v6235_v40, %s4688_s15  ;;  %v6251_v50 = vmul.f32 0.0, %v2385_v24  ;;  %v6255_v32 = vpop.f32.mrf.mxu1 }
 0x242   : > { %v1838_v61 = vpop.f32.mrf.mxu0  ;;  %vm2295_vm10 = vcmp.ge.f32.partialorder %v2247_v16, 0.0  ;;  %v2343_v1 = vmul.f32 0.1, %v2247_v16  ;;  %v6261_v38 = vsel %vm2290_vm9, %v6228_v4, %v2338_v20  ;;  %v4448_v20 = vld [vmem:[%s4902_s22 + $0x80] sm:$0xff] }
 0x243   : > { %v2205_v17 = vadd.f32 %v6149_v46, %v2109_v28  ;;  %v2110_v25 = vadd.f32 %v1838_v61, %v1322_v34  ;;  %v6258_v54 = vadd.f32 %v4447_v48, %v2200_v39  ;;  %v1328_v28 = vadd.f32 %v6139_v3, %v5983_v26  ;;  %v6280_v3 = vpop.f32.mrf.mxu1 }
 0x244   : > { %v1842_v41 = vpop.f32.mrf.mxu0  ;;  %v2391_v24 = vsel %vm2295_vm10, %v2247_v16, %v2343_v1  ;;  %2473 = vrot.lane.b32.xlu0 %v6251_v50, %s4688_s15  ;;  %v1334_v1 = vadd.f32 %v6151_v22, %v5999_v2 }
 0x245   : > { %8250 = vst [vmem:[#allocation25_spill] sm:$0xff] %v6258_v54  ;;  %v2253_v6 = vadd.f32 %v2205_v17, %v8251_v19  ;;  %v2206_v57 = vadd.f32 %v6149_v46, %v2110_v25  ;;  %v2115_v9 = vadd.f32 %v1842_v41, %v1326_v31  ;;  %2489 = vrot.lane.b32.xlu1 %v6261_v38, %s4688_s15  ;;  %v6271_v39 = vmul.f32 0.0, %v2391_v24  ;;  %v6299_v24 = vpop.f32.mrf.mxu1 }
 0x246   : > { %v1844_v34 = vpop.f32.mrf.mxu0  ;;  %vm2296_vm11 = vcmp.ge.f32.partialorder %v6258_v54, 0.0  ;;  %v2344_v61 = vmul.f32 0.1, %v6258_v54  ;;  %v1332_v31 = vadd.f32 %v6143_v14, %v5991_v35 }
 0x247   : > { %vm2301_vm12 = vcmp.ge.f32.partialorder %v2253_v6, 0.0  ;;  %v2349_v16 = vmul.f32 0.1, %v2253_v6  ;;  %v6278_v26 = vadd.f32 %v4448_v20, %v2206_v57  ;;  %v2116_v17 = vadd.f32 %v1844_v34, %v1328_v28  ;;  %v4449_v34 = vld [vmem:[%s4902_s22 + $0xa0] sm:$0xff]  ;;  %v8254_v20 = vld [vmem:[#allocation22_spill] sm:$0xff] }
 0x248   : > { %v6285_v25 = vsel %vm2296_vm11, %v6258_v54, %v2344_v61  ;;  %v1848_v48 = vpop.f32.mrf.mxu0  ;;  %v2211_v41 = vadd.f32 %v6155_v58, %v2115_v9  ;;  %v1338_v9 = vadd.f32 %v6159_v55, %v6007_v52  ;;  %v1340_v52 = vadd.f32 %v6163_v53, %v6015_v63 }
 0x249   : > { %8252 = vst [vmem:[#allocation24_spill] sm:$0xff] %v6278_v26  ;;  %v2121_v19 = vadd.f32 %v1848_v48, %v1332_v31  ;;  %v2397_v35 = vsel %vm2301_vm12, %v2253_v6, %v2349_v16  ;;  %vm2302_vm13 = vcmp.ge.f32.partialorder %v6278_v26, 0.0  ;;  %v2212_v14 = vadd.f32 %v6155_v58, %v2116_v17  ;;  %2475 = vrot.lane.b32.xlu1 %v6271_v39, %s4688_s15  ;;  %v8255_v48 = vld [vmem:[#allocation21_spill] sm:$0xff] }
 0x24a   : > { %2491 = vrot.lane.b32.xlu0 %v6285_v25, %s4688_s15  ;;  %v1850_v2 = vpop.f32.mrf.mxu0  ;;  %v6294_v22 = vmul.f32 0.0, %v2397_v35  ;;  %v2350_v57 = vmul.f32 0.1, %v6278_v26  ;;  %v2259_v17 = vadd.f32 %v2211_v41, %v8254_v20  ;;  %v4450_v20 = vld [vmem:[%s4902_s22 + $0xc0] sm:$0xff] }
 0x24b   : > { %v2217_v6 = vadd.f32 %v6147_v33, %v2121_v19  ;;  %v2122_v28 = vadd.f32 %v1850_v2, %v1334_v1  ;;  %v6303_v61 = vadd.f32 %v4449_v34, %v2212_v14  ;;  %v6318_v19 = vpop.f32.mrf.mxu1 }
 0x24c   : > { %v6306_v31 = vsel %vm2302_vm13, %v6278_v26, %v2350_v57  ;;  %v1854_v16 = vpop.f32.mrf.mxu0  ;;  %v2355_v57 = vmul.f32 0.1, %v2259_v17  ;;  %vm2307_vm0 = vcmp.ge.f32.partialorder %v2259_v17, 0.0 }
 0x24d   : > { %8253 = vst [vmem:[#allocation76_spill] sm:$0xff] %v6303_v61  ;;  %v2265_v35 = vadd.f32 %v2217_v6, %v8255_v48  ;;  %v2127_v54 = vadd.f32 %v1854_v16, %v1338_v9  ;;  %2493 = vrot.lane.b32.xlu1 %v6306_v31, %s4688_s15  ;;  %vm2308_vm14 = vcmp.ge.f32.partialorder %v6303_v61, 0.0  ;;  %v2356_v1 = vmul.f32 0.1, %v6303_v61  ;;  %v8256_v9 = vld [vmem:[#allocation19_spill] sm:$0xff] }
 0x24e   : > { %2477 = vrot.lane.b32.xlu0 %v6294_v22, %s4688_s15  ;;  %v1856_v55 = vpop.f32.mrf.mxu0  ;;  %v2218_v14 = vadd.f32 %v6147_v33, %v2122_v28 }
 0x24f   : > { %vm2313_vm15 = vcmp.ge.f32.partialorder %v2265_v35, 0.0  ;;  %v2361_v41 = vmul.f32 0.1, %v2265_v35  ;;  %v2223_v63 = vadd.f32 %v6137_v44, %v2127_v54  ;;  %v2128_v53 = vadd.f32 %v1856_v55, %v1340_v52  ;;  %v6330_v54 = vpop.f32.mrf.mxu1  ;;  %v4451_v55 = vld [vmem:[%s4902_s22 + $0xe0] sm:$0xff] }
 0x250   : > { %v2404_v2 = vsel %vm2308_vm14, %v6303_v61, %v2356_v1  ;;  %v6333_v48 = vadd.f32 %v4450_v20, %v2218_v14  ;;  %v2403_v1 = vsel %vm2307_vm0, %v2259_v17, %v2355_v57  ;;  %v1411_v20 = vadd.f32 %v6107_v47, %v6033_v27  ;;  %v8261_v27 = vld [vmem:[#allocation62_spill] sm:$0xff]  ;;  %v8263_v47 = vld [vmem:[#allocation63_spill] sm:$0xff] }
 0x251   : > { %v2271_v6 = vadd.f32 %v2223_v63, %v8256_v9  ;;  %v2409_v34 = vsel %vm2313_vm15, %v2265_v35, %v2361_v41  ;;  %v2224_v16 = vadd.f32 %v6137_v44, %v2128_v53  ;;  %3350 = vrot.lane.b32.xlu1 %v6306_v31, %s4689_s9  ;;  %v6344_v53 = vpop.f32.mrf.mxu1 }
 0x252   : > { %2495 = vrot.lane.b32.xlu0 %v2404_v2, %s4688_s15  ;;  %v6328_v28 = vmul.f32 0.0, %v2409_v34  ;;  %8257 = vst [vmem:[#allocation22_spill] sm:$0xff] %v6333_v48  ;;  %v2362_v9 = vmul.f32 0.1, %v6333_v48  ;;  %v2451_v34 = vmul.f32 0.0, %v2403_v1  ;;  %vm2314_vm4 = vcmp.ge.f32.partialorder %v6333_v48, 0.0 }
 0x253   : > { %vm2319_vm2 = vcmp.ge.f32.partialorder %v2271_v6, 0.0  ;;  %v2367_v52 = vmul.f32 0.1, %v2271_v6  ;;  %v6336_v35 = vadd.f32 %v4451_v55, %v2224_v16  ;;  %v6357_v57 = vpop.f32.mrf.mxu1  ;;  %v1409_v16 = vadd.f32 %v6105_v42, %v6023_v60  ;;  %v8260_v60 = vld [vmem:[#allocation41_spill] sm:$0xff]  ;;  %v8262_v42 = vld [vmem:[#allocation43_spill] sm:$0xff] }
 0x254   : > { %v6373_v55 = vadd.f32 %v6111_v49, %v6052_v5  ;;  %v6377_v1 = vadd.f32 %v6113_v45, %v6057_v21  ;;  %v8264_v5 = vld [vmem:[#allocation45_spill] sm:$0xff]  ;;  %v8265_v49 = vld [vmem:[#allocation64_spill] sm:$0xff]  ;;  %v8266_v21 = vld [vmem:[#allocation47_spill] sm:$0xff] }
 0x255   : > { %8258 = vst [vmem:[#allocation21_spill] sm:$0xff] %v6336_v35  ;;  %v2415_v41 = vsel %vm2319_vm2, %v2271_v6, %v2367_v52  ;;  %3334 = vrot.lane.b32.xlu1 %v6294_v22, %s4689_s9  ;;  %vm2320_vm3 = vcmp.ge.f32.partialorder %v6336_v35, 0.0  ;;  %v2368_v63 = vmul.f32 0.1, %v6336_v35  ;;  %v6361_v6 = vsel %vm2314_vm4, %v6333_v48, %v2362_v9  ;;  %v8267_v45 = vld [vmem:[#allocation65_spill] sm:$0xff] }
 0x256   : > { %2481 = vrot.lane.b32.xlu0 %v6328_v28, %s4688_s15  ;;  %v6346_v14 = vmul.f32 0.0, %v2415_v41  ;;  %v1415_v52 = vadd.f32 %v6109_v29, %v6043_v59  ;;  %v8259_v41 = vld [vmem:[#allocation61_spill] sm:$0xff]  ;;  %v6386_v59 = vadd.f32 %v8261_v27, %v8260_v60  ;;  %v6390_v29 = vadd.f32 %v8263_v47, %v8262_v42  ;;  %v8270_v60 = vld [vmem:[#allocation51_spill] sm:$0xff]  ;;  %v8271_v27 = vld [vmem:[#allocation68_spill] sm:$0xff] }
 0x257   : > { %v6350_v17 = vsel %vm2320_vm3, %v6336_v35, %v2368_v63  ;;  %v6381_v63 = vadd.f32 %v8259_v41, %v6061_v43  ;;  %v6394_v9 = vadd.f32 %v8265_v49, %v8264_v5  ;;  %v6398_v35 = vadd.f32 %v8267_v45, %v8266_v21  ;;  %v1565_v43 = vpop.f32.mrf.mxu1  ;;  %v8268_v41 = vld [vmem:[#allocation49_spill] sm:$0xff]  ;;  %v8274_v5 = vld [vmem:[#allocation55_spill] sm:$0xff] }
 0x258   : > { %2672 = vmatprep.subr.mxu1 %v6350_v17  ;;  %v6406_v61 = vadd.f32 %v8271_v27, %v8270_v60  ;;  %v8272_v42 = vld [vmem:[#allocation53_spill] sm:$0xff]  ;;  %v8275_v49 = vld [vmem:[#allocation71_spill] sm:$0xff]  ;;  %v8283_v27 = vld [vmem:[#allocation74_spill] sm:$0xff] }
 0x259   : > { %2479 = vrot.lane.b32.xlu1 %v2451_v34, %s4688_s15  ;;  %2673 = vmatpush1.msra.mxu1 %v6346_v14  ;;  %v8273_v47 = vld [vmem:[#allocation69_spill] sm:$0xff]  ;;  %v6414_v4 = vadd.f32 %v8275_v49, %v8274_v5  ;;  %v8282_v60 = vld [vmem:[#allocation35_spill] sm:$0xff] }
 0x25a   : > { %2499 = vrot.lane.b32.xlu0 %v6350_v17, %s4688_s15  ;;  %2674 = vmatprep.subr.mxu1 %v6361_v6  ;;  %v6410_v26 = vadd.f32 %v8273_v47, %v8272_v42  ;;  %v8277_v45 = vld [vmem:[#allocation57_spill] sm:$0xff]  ;;  %v1522_v33 = vadd.f32 %v8283_v27, %v8282_v60  ;;  %v8284_v42 = vld [vmem:[#allocation36_spill] sm:$0xff]  ;;  %v8289_v60 = vld [vmem:[#allocation42_spill] sm:$0xff] }
 0x25b   : > { %2675 = vmatpush1.msra.mxu1 %v6328_v28  ;;  %8276 = vst [vmem:[#allocation19_spill] sm:$0xff] %v6414_v4  ;;  %v6419_v62 = vadd.f32 %v8278_v10, %v8277_v45  ;;  %v1524_v47 = vadd.f32 %v6175_v51, %v8284_v42  ;;  %v8285_v49 = vld [vmem:[#allocation37_spill] sm:$0xff]  ;;  %v8286_v4 = vld [vmem:[#allocation38_spill] sm:$0xff]  ;;  %v8287_v45 = vld [vmem:[#allocation39_spill] sm:$0xff] }
 0x25c   : > { %2676 = vmatprep.subr.mxu1 %v2404_v2  ;;  %v1530_v10 = vadd.f32 %v6186_v13, %v8286_v4  ;;  %v8290_v4 = vld [vmem:[#allocation44_spill] sm:$0xff] }
 0x25d   : > { %3352 = vrot.lane.b32.xlu1 %v2404_v2, %s4689_s9  ;;  %2677 = vmatpush1.msra.mxu1 %v2451_v34  ;;  %v8269_v2 = vld [vmem:[#allocation66_spill] sm:$0xff]  ;;  %8279 = vst [vmem:[#allocation61_spill] sm:$0xff] %v6419_v62  ;;  %v1534_v62 = vadd.f32 %v6192_v15, %v8287_v45  ;;  %v6447_v15 = vadd.f32 %v6231_v11, %v8290_v4  ;;  %v8294_v45 = vld [vmem:[#allocation52_spill] sm:$0xff] }
 0x25e   : > { %v6402_v48 = vadd.f32 %v8269_v2, %v8268_v41  ;;  %2678 = vmatprep.subr.mxu1 %v6306_v31  ;;  %v8280_v41 = vld [vmem:[#allocation59_spill] sm:$0xff]  ;;  %v8281_v2 = vld [vmem:[#allocation73_spill] sm:$0xff]  ;;  %v1528_v31 = vadd.f32 %v6179_v56, %v8285_v49  ;;  %v8292_v49 = vld [vmem:[#allocation48_spill] sm:$0xff]  ;;  %v6464_v11 = vadd.f32 %v6318_v19, %v8294_v45 }
 0x25f   : > { %v2038_v21 = vpop.f32.mrf.mxu0  ;;  %v6423_v44 = vadd.f32 %v8281_v2, %v8280_v41  ;;  %2679 = vmatpush1.msra.mxu1 %v6294_v22  ;;  %v8288_v2 = vld [vmem:[#allocation40_spill] sm:$0xff]  ;;  %v6442_v22 = vadd.f32 %v6217_v12, %v8289_v60 }
 0x260   : > { %2680 = vmatprep.subr.mxu1 %v6285_v25  ;;  %v1536_v51 = vadd.f32 %v6198_v18, %v8288_v2  ;;  %v6455_v18 = vadd.f32 %v6280_v3, %v8292_v49  ;;  %v8296_v60 = vld [vmem:[#allocation56_spill] sm:$0xff] }
 0x261   : > { %v1925_v5 = vpop.f32.mrf.mxu1  ;;  %3336 = vrot.lane.b32.xlu1 %v2451_v34, %s4689_s9  ;;  %v2040_v41 = vpop.f32.mrf.mxu0  ;;  %2681 = vmatpush1.msra.mxu1 %v6271_v39  ;;  %v8291_v34 = vld [vmem:[#allocation46_spill] sm:$0xff]  ;;  %v8299_v45 = vld [vmem:[#allocation60_spill] sm:$0xff] }
 0x262   : > { %v2087_v27 = vadd.f32 %v1925_v5, %v1409_v16  ;;  %v2090_v56 = vadd.f32 %v2040_v41, %v1524_v47  ;;  %v6451_v42 = vadd.f32 %v6255_v32, %v8291_v34  ;;  %2682 = vmatprep.subr.mxu1 %v6261_v38  ;;  %v8293_v5 = vld [vmem:[#allocation50_spill] sm:$0xff] }
 0x263   : > { %v1927_v13 = vpop.f32.mrf.mxu1  ;;  %v2044_v16 = vpop.f32.mrf.mxu0  ;;  %v6460_v47 = vadd.f32 %v6299_v24, %v8293_v5  ;;  %v8295_v41 = vld [vmem:[#allocation54_spill] sm:$0xff]  ;;  %2683 = vmatpush1.msra.mxu1 %v6251_v50 }
 0x264   : > { %v2088_v12 = vadd.f32 %v1927_v13, %v1411_v20  ;;  %v6468_v32 = vadd.f32 %v6330_v54, %v8295_v41  ;;  %v2186_v2 = vadd.f32 %v6170_v8, %v2090_v56  ;;  %v6474_v20 = vadd.f32 %v6344_v53, %v8296_v60  ;;  %2684 = vmatprep.subr.mxu1 %v6240_v7  ;;  %v8297_v56 = vld [vmem:[#allocation33_spill] sm:$0xff]  ;;  %v8298_v5 = vld [vmem:[#allocation58_spill] sm:$0xff] }
 0x265   : > { %v1931_v3 = vpop.f32.mrf.mxu1  ;;  %2497 = vrot.lane.b32.xlu1 %v6361_v6, %s4688_s15  ;;  %v2046_v13 = vpop.f32.mrf.mxu0  ;;  %v2183_v54 = vadd.f32 %v6170_v8, %v2087_v27  ;;  %v2095_v34 = vadd.f32 %v2044_v16, %v1528_v31  ;;  %2685 = vmatpush1.msra.mxu1 %v6235_v40  ;;  %v6488_v41 = vadd.f32 %v1565_v43, %v8299_v45  ;;  %v6493_v31 = vld [vmem:[#allocation8 + $0x100] sm:$0xff]  ;;  %v4452_v16 = vld [vmem:[%s4902_s22 + $0x10] sm:$0xff] }
 0x266   : > { %v2184_v24 = vadd.f32 %v6170_v8, %v2088_v12  ;;  %v2093_v19 = vadd.f32 %v1931_v3, %v1415_v52  ;;  %v2234_v4 = vadd.f32 %v2186_v2, %v8297_v56  ;;  %v2096_v49 = vadd.f32 %v2046_v13, %v1530_v10  ;;  %2686 = vmatprep.subr.mxu1 %v6211_v36 }
 0x267   : > { %v1933_v53 = vpop.f32.mrf.mxu1  ;;  %v6485_v12 = vadd.f32 %v6357_v57, %v8298_v5  ;;  %v2050_v2 = vpop.f32.mrf.mxu0  ;;  %2687 = vmatpush1.msra.mxu1 %v6208_v23  ;;  %v6500_v60 = vadd.f32 %v2038_v21, %v1522_v33  ;;  %v8302_v5 = vld [vmem:[#allocation32_spill] sm:$0xff] }
 0x268   : > { %v2189_v52 = vadd.f32 %v6183_v0, %v2093_v19  ;;  %v2094_v27 = vadd.f32 %v1933_v53, %v6373_v55  ;;  %vm2282_vm5 = vcmp.ge.f32.partialorder %v2234_v4, 0.0  ;;  %v2330_v10 = vmul.f32 0.1, %v2234_v4  ;;  %v4453_v53 = vld [vmem:[%s4902_s22 + $0x8] sm:$0xff]  ;;  %4256 = vmatmul.mubr.msk.f32.vlgmr.msra.gmra.mxu1 %vm841_vm1, %v6493_v31 }
 0x269   : > { %v6496_v3 = vadd.f32 %v4452_v16, %v2184_v24  ;;  %v2192_v57 = vadd.f32 %v6183_v0, %v2096_v49  ;;  %v1937_v43 = vpop.f32.mrf.mxu1  ;;  %3354 = vrot.lane.b32.xlu1 %v6361_v6, %s4689_s9  ;;  %v2101_v55 = vadd.f32 %v2050_v2, %v1534_v62  ;;  %v2052_v56 = vpop.f32.mrf.mxu0  ;;  %v6507_v24 = vadd.f32 %v4453_v53, %v2183_v54  ;;  %v4454_v6 = vld [vmem:[%s4902_s22 + $0x28] sm:$0xff] }
 0x26a   : > { %v2190_v19 = vadd.f32 %v6183_v0, %v2094_v27  ;;  %v2099_v13 = vadd.f32 %v1937_v43, %v6377_v1  ;;  %v6510_v49 = vadd.f32 %v6183_v0, %v2095_v34  ;;  %v2102_v33 = vadd.f32 %v2052_v56, %v1536_v51  ;;  %v4455_v43 = vld [vmem:[%s4902_s22 + $0x30] sm:$0xff] }
 0x26b   : > { %8300 = vst [vmem:[#allocation41_spill] sm:$0xff] %v6496_v3  ;;  %8301 = vst [vmem:[#allocation62_spill] sm:$0xff] %v6507_v24  ;;  %v6513_v45 = vadd.f32 %v2192_v57, %v8302_v5  ;;  %v1939_v21 = vpop.f32.mrf.mxu1  ;;  %v6518_v62 = vadd.f32 %v4454_v6, %v2189_v52  ;;  %v2197_v1 = vadd.f32 %v6157_v37, %v2101_v55  ;;  %v2056_v27 = vpop.f32.mrf.mxu0  ;;  %v8304_v34 = vmov 0.0  }
 0x26c   : > { %v2100_v54 = vadd.f32 %v1939_v21, %v6381_v63  ;;  %v2378_v0 = vsel %vm2282_vm5, %v2234_v4, %v2330_v10  ;;  %2725 = vmatprep.mubr.f32.mxu1 %v8304_v34  ;;  %v2195_v2 = vadd.f32 %v6157_v37, %v2099_v13  ;;  %v2198_v51 = vadd.f32 %v6157_v37, %v2102_v33  ;;  %v4456_v33 = vld [vmem:[%s4902_s22 + $0x58] sm:$0xff] }
 0x26d   : > { %8303 = vst [vmem:[#allocation43_spill] sm:$0xff] %v6518_v62  ;;  %v2107_v16 = vadd.f32 %v2056_v27, %v6442_v22  ;;  %v1943_v57 = vpop.f32.mrf.mxu1  ;;  %vm2280_vm6 = vcmp.ge.f32.partialorder %v6496_v3, 0.0  ;;  %v6529_v52 = vmul.f32 0.1, %v6513_v45  ;;  %v6532_v63 = vadd.f32 %v4455_v43, %v2190_v19  ;;  %3338 = vrot.lane.b32.xlu1 %v6328_v28, %s4689_s9  ;;  %v2058_v55 = vpop.f32.mrf.mxu0  ;;  %v8306_v22 = vld [vmem:[#allocation31_spill] sm:$0xff] }
 0x26e   : > { %v2196_v4 = vadd.f32 %v6157_v37, %v2100_v54  ;;  %v2105_v10 = vadd.f32 %v1943_v57, %v6386_v59  ;;  %v6539_v13 = vadd.f32 %v2198_v51, %v8306_v22  ;;  %v6542_v53 = vmul.f32 0.0, %v2378_v0  ;;  %v4457_v54 = vld [vmem:[%s4902_s22 + $0x48] sm:$0xff] }
 0x26f   : > { %8305 = vst [vmem:[#allocation63_spill] sm:$0xff] %v6532_v63  ;;  %v2203_v56 = vadd.f32 %v6168_v30, %v2107_v16  ;;  %v2108_v19 = vadd.f32 %v2058_v55, %v6447_v15  ;;  %v1945_v5 = vpop.f32.mrf.mxu1  ;;  %v6546_v37 = vadd.f32 %v4456_v33, %v2197_v1  ;;  %v2062_v21 = vpop.f32.mrf.mxu0  ;;  %v2328_v6 = vmul.f32 0.1, %v6496_v3  ;;  %v4458_v15 = vld [vmem:[%s4902_s22 + $0x50] sm:$0xff]  ;;  %v4460_v55 = vld [vmem:[%s4902_s22 + $0x68] sm:$0xff] }
 0x270   : > { %v2201_v28 = vadd.f32 %v6168_v30, %v2105_v10  ;;  %v2106_v59 = vadd.f32 %v1945_v5, %v6390_v29  ;;  %v6552_v27 = vadd.f32 %v4457_v54, %v2195_v2  ;;  %v6555_v0 = vmul.f32 0.1, %v6539_v13  ;;  %2549 = vrot.lane.b32.xlu0 %v6542_v53, %s4688_s15  ;;  %v4459_v29 = vld [vmem:[%s4902_s22 + $0x78] sm:$0xff] }
 0x271   : > { %8307 = vst [vmem:[#allocation45_spill] sm:$0xff] %v6546_v37  ;;  %v6558_v51 = vadd.f32 %v4458_v15, %v2196_v4  ;;  %v2204_v1 = vadd.f32 %v6168_v30, %v2108_v19  ;;  %v1949_v16 = vpop.f32.mrf.mxu1  ;;  %v6564_v57 = vadd.f32 %v4459_v29, %v2203_v56  ;;  %2483 = vrot.lane.b32.xlu1 %v6346_v14, %s4688_s15  ;;  %v2064_v4 = vpop.f32.mrf.mxu0  ;;  %vm2279_vm7 = vcmp.ge.f32.partialorder %v6507_v24, 0.0  ;;  %v8312_v19 = vld [vmem:[#allocation30_spill] sm:$0xff]  ;;  %v4463_v29 = vld [vmem:[%s4902_s22 + $0x88] sm:$0xff] }
 0x272   : > { %8308 = vst [vmem:[#allocation64_spill] sm:$0xff] %v6552_v27  ;;  %v2202_v43 = vadd.f32 %v6168_v30, %v2106_v59  ;;  %v2113_v2 = vadd.f32 %v2062_v21, %v6451_v42  ;;  %v2111_v10 = vadd.f32 %v1949_v16, %v6394_v9  ;;  %v6573_v22 = vadd.f32 %v4460_v55, %v2201_v28  ;;  %v4461_v21 = vld [vmem:[%s4902_s22 + $0x70] sm:$0xff] }
 0x273   : > { %8309 = vst [vmem:[#allocation47_spill] sm:$0xff] %v6558_v51  ;;  %8310 = vst [vmem:[#allocation65_spill] sm:$0xff] %v6564_v57  ;;  %v6576_v5 = vadd.f32 %v2204_v1, %v8312_v19  ;;  %v2114_v56 = vadd.f32 %v2064_v4, %v6455_v18  ;;  %v6582_v30 = vsel %vm2280_vm6, %v6496_v3, %v2328_v6  ;;  %v1951_v42 = vpop.f32.mrf.mxu1  ;;  %vm2294_vm8 = vcmp.ge.f32.partialorder %v6539_v13, 0.0  ;;  %v2068_v59 = vpop.f32.mrf.mxu0 }
 0x274   : > { %8311 = vst [vmem:[#allocation49_spill] sm:$0xff] %v6573_v22  ;;  %v2209_v9 = vadd.f32 %v6149_v46, %v2113_v2  ;;  %v2207_v33 = vadd.f32 %v6149_v46, %v2111_v10  ;;  %v2112_v28 = vadd.f32 %v1951_v42, %v6398_v35  ;;  %vm2285_vm9 = vcmp.ge.f32.partialorder %v6518_v62, 0.0  ;;  %2517 = vrot.lane.b32.xlu0 %v6582_v30, %s4688_s15  ;;  %v4462_v35 = vld [vmem:[%s4902_s22 + $0x98] sm:$0xff] }
 0x275   : > { %v6590_v18 = vmul.f32 0.1, %v6576_v5  ;;  %v6593_v6 = vadd.f32 %v4461_v21, %v2202_v43  ;;  %v2210_v54 = vadd.f32 %v6149_v46, %v2114_v56  ;;  %v2119_v15 = vadd.f32 %v2068_v59, %v6460_v47  ;;  %v1955_v1 = vpop.f32.mrf.mxu1  ;;  %3356 = vrot.lane.b32.xlu1 %v6350_v17, %s4689_s9  ;;  %v2070_v4 = vpop.f32.mrf.mxu0  ;;  %v8316_v47 = vld [vmem:[#allocation29_spill] sm:$0xff] }
 0x276   : > { %vm2288_vm10 = vcmp.ge.f32.partialorder %v6513_v45, 0.0  ;;  %v6601_v16 = vadd.f32 %v4462_v35, %v2209_v9  ;;  %v6604_v2 = vadd.f32 %v4463_v29, %v2207_v33  ;;  %v2208_v43 = vadd.f32 %v6149_v46, %v2112_v28  ;;  %v4464_v33 = vld [vmem:[%s4902_s22 + $0x90] sm:$0xff]  ;;  %v4465_v28 = vld [vmem:[%s4902_s22 + $0xb8] sm:$0xff]  ;;  %v4466_v35 = vld [vmem:[%s4902_s22 + $0xa8] sm:$0xff] }
 0x277   : > { %8313 = vst [vmem:[#allocation66_spill] sm:$0xff] %v6593_v6  ;;  %v2117_v10 = vadd.f32 %v1955_v1, %v6402_v48  ;;  %v6611_v55 = vadd.f32 %v2210_v54, %v8316_v47  ;;  %v2215_v19 = vadd.f32 %v6155_v58, %v2119_v15  ;;  %v2120_v56 = vadd.f32 %v2070_v4, %v6464_v11  ;;  %v1957_v9 = vpop.f32.mrf.mxu1  ;;  %v2074_v48 = vpop.f32.mrf.mxu0  ;;  %v8320_v47 = vld [vmem:[#allocation27_spill] sm:$0xff] }
 0x278   : > { %8314 = vst [vmem:[#allocation51_spill] sm:$0xff] %v6601_v16  ;;  %8315 = vst [vmem:[#allocation68_spill] sm:$0xff] %v6604_v2  ;;  %v2333_v42 = vmul.f32 0.1, %v6518_v62  ;;  %v6617_v59 = vadd.f32 %v4464_v33, %v2208_v43  ;;  %v2118_v17 = vadd.f32 %v1957_v9, %v6406_v61  ;;  %vm2293_vm11 = vcmp.ge.f32.partialorder %v6546_v37, 0.0  ;;  %v4467_v33 = vld [vmem:[%s4902_s22 + $0xb0] sm:$0xff] }
 0x279   : > { %v2213_v46 = vadd.f32 %v6155_v58, %v2117_v10  ;;  %v6623_v21 = vadd.f32 %v4465_v28, %v2215_v19  ;;  %v2216_v54 = vadd.f32 %v6155_v58, %v2120_v56  ;;  %v2125_v15 = vadd.f32 %v2074_v48, %v6468_v32  ;;  %v1961_v1 = vpop.f32.mrf.mxu1  ;;  %3340 = vrot.lane.b32.xlu1 %v6346_v14, %s4689_s9  ;;  %v2076_v10 = vpop.f32.mrf.mxu0  ;;  %v8321_v19 = vld [vmem:[#allocation70_spill] sm:$0xff] }
 0x27a   : > { %8317 = vst [vmem:[#allocation53_spill] sm:$0xff] %v6617_v59  ;;  %v6629_v11 = vsel %vm2285_vm9, %v6518_v62, %v2333_v42  ;;  %v2214_v61 = vadd.f32 %v6155_v58, %v2118_v17  ;;  %v2123_v43 = vadd.f32 %v1961_v1, %v6410_v26  ;;  %v2341_v4 = vmul.f32 0.1, %v6546_v37  ;;  %v8323_v17 = vld [vmem:[#allocation19_spill] sm:$0xff] }
 0x27b   : > { %8318 = vst [vmem:[#allocation69_spill] sm:$0xff] %v6623_v21  ;;  %v6633_v29 = vadd.f32 %v4466_v35, %v2213_v46  ;;  %2503 = vrot.lane.b32.xlu0 %v6629_v11, %s4688_s15  ;;  %v6643_v32 = vadd.f32 %v2216_v54, %v8320_v47  ;;  %v2221_v56 = vadd.f32 %v8321_v19, %v2125_v15  ;;  %v1963_v9 = vpop.f32.mrf.mxu1  ;;  %v2327_v58 = vmul.f32 0.1, %v6507_v24  ;;  %v2080_v28 = vpop.f32.mrf.mxu0  ;;  %v4468_v54 = vld [vmem:[%s4902_s22 + $0xd8] sm:$0xff] }
 0x27c   : > { %v2126_v42 = vadd.f32 %v2076_v10, %v6474_v20  ;;  %v6649_v46 = vadd.f32 %v4467_v33, %v2214_v61  ;;  %v2219_v14 = vadd.f32 %v8321_v19, %v2123_v43  ;;  %v6655_v26 = vsel %vm2293_vm11, %v6546_v37, %v2341_v4  ;;  %v4469_v43 = vld [vmem:[%s4902_s22 + $0xc8] sm:$0xff] }
 0x27d   : > { %8319 = vst [vmem:[#allocation55_spill] sm:$0xff] %v6633_v29  ;;  %v2124_v48 = vadd.f32 %v1963_v9, %v8323_v17  ;;  %v6659_v15 = vadd.f32 %v4468_v54, %v2221_v56  ;;  %v2131_v1 = vadd.f32 %v2080_v28, %v6485_v12  ;;  %v6666_v35 = vsel %vm2279_vm7, %v6507_v24, %v2327_v58  ;;  %v1967_v61 = vpop.f32.mrf.mxu1  ;;  %v8326_v12 = vld [vmem:[#allocation61_spill] sm:$0xff]  ;;  %v2082_v56 = vpop.f32.mrf.mxu0  ;;  %v8328_v58 = vld [vmem:[#allocation67_spill] sm:$0xff] }
 0x27e   : > { %8322 = vst [vmem:[#allocation71_spill] sm:$0xff] %v6649_v46  ;;  %v2222_v20 = vadd.f32 %v8321_v19, %v2126_v42  ;;  %v6669_v10 = vadd.f32 %v4469_v43, %v2219_v14  ;;  %2501 = vrot.lane.b32.xlu1 %v6666_v35, %s4688_s15  ;;  %v2129_v47 = vadd.f32 %v1967_v61, %v8326_v12  ;;  %vm2292_vm12 = vcmp.ge.f32.partialorder %v6558_v51, 0.0  ;;  %v8327_v42 = vld [vmem:[#allocation23_spill] sm:$0xff] }
 0x27f   : > { %8324 = vst [vmem:[#allocation57_spill] sm:$0xff] %v6659_v15  ;;  %2537 = vrot.lane.b32.xlu0 %v6655_v26, %s4688_s15  ;;  %v2220_v4 = vadd.f32 %v8321_v19, %v2124_v48  ;;  %v2227_v33 = vadd.f32 %v8328_v58, %v2131_v1  ;;  %v2132_v14 = vadd.f32 %v2082_v56, %v6488_v41  ;;  %v1969_v17 = vpop.f32.mrf.mxu1  ;;  %vm2300_vm13 = vcmp.ge.f32.partialorder %v6576_v5, 0.0  ;;  %v4470_v48 = vld [vmem:[%s4902_s22 + $0xd0] sm:$0xff]  ;;  %v4471_v1 = vld [vmem:[%s4902_s22 + $0xf8] sm:$0xff]  ;;  %v8332_v56 = vld [vmem:[#allocation20_spill] sm:$0xff] }
 0x280   : > { %8325 = vst [vmem:[#allocation72_spill] sm:$0xff] %v6669_v10  ;;  %v6679_v9 = vadd.f32 %v2222_v20, %v8327_v42  ;;  %v2390_v19 = vsel %vm2294_vm8, %v6539_v13, %v6555_v0  ;;  %v2225_v54 = vadd.f32 %v8328_v58, %v2129_v47  ;;  %v2130_v61 = vadd.f32 %v1969_v17, %v6423_v44 }
 0x281   : > { %v6689_v28 = vadd.f32 %v4470_v48, %v2220_v4  ;;  %v6692_v20 = vmul.f32 0.0, %v2390_v19  ;;  %v6696_v41 = vadd.f32 %v4471_v1, %v2227_v33  ;;  %v2228_v43 = vadd.f32 %v8328_v58, %v2132_v14  ;;  %v4472_v4 = vld [vmem:[%s4902_s22 + $0xe8] sm:$0xff]  ;;  %v4473_v33 = vld [vmem:[%s4902_s22 + $0xf0] sm:$0xff] }
 0x282   : > { %v2384_v13 = vsel %vm2288_vm10, %v6513_v45, %v6529_v52  ;;  %v2340_v0 = vmul.f32 0.1, %v6558_v51  ;;  %v6705_v12 = vadd.f32 %v4472_v4, %v2225_v54  ;;  %v2226_v44 = vadd.f32 %v8328_v58, %v2130_v61  ;;  %v6749_v4 = vld [vmem:[#allocation8 + $0x108] sm:$0xff] }
 0x283   : > { %8329 = vst [vmem:[#allocation59_spill] sm:$0xff] %v6689_v28  ;;  %8330 = vst [vmem:[#allocation73_spill] sm:$0xff] %v6696_v41  ;;  %2553 = vrot.lane.b32.xlu0 %v6692_v20, %s4688_s15  ;;  %v6710_v47 = vmul.f32 0.0, %v2384_v13  ;;  %vm2286_vm14 = vcmp.ge.f32.partialorder %v6532_v63, 0.0  ;;  %v2276_v42 = vadd.f32 %v2228_v43, %v8332_v56  ;;  %v2334_v52 = vmul.f32 0.1, %v6532_v63  ;;  %4257 = vmatmul.mubr.msk.f32.gmra.mxu1 %vm841_vm1, %v6749_v4 }
 0x284   : > { %8331 = vst [vmem:[#allocation35_spill] sm:$0xff] %v6705_v12  ;;  %v6717_v45 = vsel %vm2292_vm12, %v6558_v51, %v2340_v0  ;;  %vm2299_vm15 = vcmp.ge.f32.partialorder %v6564_v57, 0.0  ;;  %v6722_v14 = vadd.f32 %v4473_v33, %v2226_v44  ;;  %v2347_v58 = vmul.f32 0.1, %v6564_v57  ;;  %2730 = vmatprep.mubr.f32.mxu1 %v8304_v34 }
 0x285   : > { %2551 = vrot.lane.b32.xlu1 %v6710_v47, %s4688_s15  ;;  %vm2291_vm0 = vcmp.ge.f32.partialorder %v6552_v27, 0.0  ;;  %v2339_v19 = vmul.f32 0.1, %v6552_v27  ;;  %v6730_v17 = vsel %vm2286_vm14, %v6532_v63, %v2334_v52  ;;  %vm2321_vm2 = vcmp.ge.f32.partialorder %v6705_v12, 0.0 }
 0x286   : > { %8333 = vst [vmem:[#allocation74_spill] sm:$0xff] %v6722_v14  ;;  %v2369_v48 = vmul.f32 0.1, %v6705_v12  ;;  %vm2324_vm3 = vcmp.ge.f32.partialorder %v2276_v42, 0.0  ;;  %v6737_v54 = vsel %vm2299_vm15, %v6564_v57, %v2347_v58  ;;  %vm2322_vm4 = vcmp.ge.f32.partialorder %v6722_v14, 0.0 }
 0x287   : > { %2521 = vrot.lane.b32.xlu0 %v6717_v45, %s4688_s15  ;;  %v6740_v61 = vsel %vm2291_vm0, %v6552_v27, %v2339_v19  ;;  %v2370_v1 = vmul.f32 0.1, %v6722_v14  ;;  %v2372_v13 = vmul.f32 0.1, %v2276_v42  ;;  %vm2297_vm5 = vcmp.ge.f32.partialorder %v6573_v22, 0.0 }
 0x288   : > { %v6745_v43 = vsel %vm2321_vm2, %v6705_v12, %v2369_v48  ;;  %v2345_v0 = vmul.f32 0.1, %v6573_v22  ;;  %vm2316_vm6 = vcmp.ge.f32.partialorder %v6689_v28, 0.0  ;;  %v2364_v56 = vmul.f32 0.1, %v6689_v28 }
 0x289   : > { %2519 = vrot.lane.b32.xlu1 %v6730_v17, %s4688_s15  ;;  %v6754_v44 = vsel %vm2322_vm4, %v6722_v14, %v2370_v1  ;;  %vm2323_vm7 = vcmp.ge.f32.partialorder %v6696_v41, 0.0  ;;  %v2420_v52 = vsel %vm2324_vm3, %v2276_v42, %v2372_v13  ;;  %v2371_v58 = vmul.f32 0.1, %v6696_v41 }
 0x28a   : > { %2777 = vmatprep.subr.mxu0 %v6754_v44  ;;  %v6764_v33 = vsel %vm2297_vm5, %v6573_v22, %v2345_v0  ;;  %vm2315_vm8 = vcmp.ge.f32.partialorder %v6669_v10, 0.0  ;;  %v6772_v19 = vmul.f32 0.0, %v2420_v52  ;;  %v6775_v48 = vsel %vm2316_vm6, %v6689_v28, %v2364_v56  ;;  %v6789_v56 = vld [vmem:[#allocation8 + $0x110] sm:$0xff] }
 0x28b   : > { %2539 = vrot.lane.b32.xlu0 %v6737_v54, %s4688_s15  ;;  %2778 = vmatpush1.msra.mxu0 %v6745_v43  ;;  %v2363_v42 = vmul.f32 0.1, %v6669_v10  ;;  %vm2318_vm9 = vcmp.ge.f32.partialorder %v6679_v9, 0.0  ;;  %v6781_v1 = vsel %vm2323_vm7, %v6696_v41, %v2371_v58  ;;  %v2366_v13 = vmul.f32 0.1, %v6679_v9 }
 0x28c   : > { %2779 = vmatprep.subr.mxu0 %v6775_v48  ;;  %v2396_v0 = vsel %vm2300_vm13, %v6576_v5, %v6590_v18  ;;  %vm2310_vm10 = vcmp.ge.f32.partialorder %v6649_v46, 0.0  ;;  %2890 = vmatprep.subr.mxu1 %v6772_v19  ;;  %v2358_v41 = vmul.f32 0.1, %v6649_v46  ;;  %vm2317_vm11 = vcmp.ge.f32.partialorder %v6659_v15, 0.0 }
 0x28d   : > { %2505 = vrot.lane.b32.xlu1 %v6740_v61, %s4688_s15  ;;  %v6797_v52 = vsel %vm2315_vm8, %v6669_v10, %v2363_v42  ;;  %v6799_v58 = vmul.f32 0.0, %v2396_v0  ;;  %2891 = vmatpush1.msra.mxu1 %v6781_v1  ;;  %v2414_v5 = vsel %vm2318_vm9, %v6679_v9, %v2366_v13  ;;  %v2365_v18 = vmul.f32 0.1, %v6659_v15 }
 0x28e   : > { %2780 = vmatpush1.msra.mxu0 %v6797_v52  ;;  %vm2309_vm12 = vcmp.ge.f32.partialorder %v6633_v29, 0.0  ;;  %v2357_v14 = vmul.f32 0.1, %v6633_v29  ;;  %v6811_v42 = vmul.f32 0.0, %v2414_v5  ;;  %v6816_v0 = vsel %vm2310_vm10, %v6649_v46, %v2358_v41  ;;  %4258 = vmatmul.mubr.msk.f32.gmra.mxu1 %vm841_vm1, %v6789_v56 }
 0x28f   : > { %2507 = vrot.lane.b32.xlu0 %v6764_v33, %s4688_s15  ;;  %vm2312_vm13 = vcmp.ge.f32.partialorder %v6643_v32, 0.0  ;;  %v2360_v9 = vmul.f32 0.1, %v6643_v32  ;;  %2781 = vmatprep.subr.mxu0 %v6816_v0  ;;  %v6824_v13 = vsel %vm2317_vm11, %v6659_v15, %v2365_v18  ;;  %vm2305_vm14 = vcmp.ge.f32.partialorder %v6601_v16, 0.0 }
 0x290   : > { %v6827_v5 = vsel %vm2309_vm12, %v6633_v29, %v2357_v14  ;;  %v2353_v41 = vmul.f32 0.1, %v6601_v16  ;;  %2735 = vmatprep.mubr.f32.mxu1 %v8304_v34  ;;  %2892 = vmatprep.subr.mxu1 %v6811_v42  ;;  %vm2304_vm15 = vcmp.ge.f32.partialorder %v6617_v59, 0.0  ;;  %v2352_v18 = vmul.f32 0.1, %v6617_v59 }
 0x291   : > { %2555 = vrot.lane.b32.xlu1 %v6799_v58, %s4688_s15  ;;  %v2408_v12 = vsel %vm2312_vm13, %v6643_v32, %v2360_v9  ;;  %vm2311_vm0 = vcmp.ge.f32.partialorder %v6623_v21, 0.0  ;;  %2893 = vmatpush1.msra.mxu1 %v6824_v13  ;;  %v2359_v28 = vmul.f32 0.1, %v6623_v21  ;;  %vm2303_vm2 = vcmp.ge.f32.partialorder %v6604_v2, 0.0  ;;  %v6848_v32 = vld [vmem:[#allocation8 + $0x118] sm:$0xff] }
 0x292   : > { %2782 = vmatpush1.msra.mxu0 %v6827_v5  ;;  %v6841_v14 = vmul.f32 0.0, %v2408_v12  ;;  %v6844_v15 = vsel %vm2305_vm14, %v6601_v16, %v2353_v41  ;;  %v6853_v9 = vsel %vm2304_vm15, %v6617_v59, %v2352_v18  ;;  %v2351_v10 = vmul.f32 0.1, %v6604_v2  ;;  %4259 = vmatmul.mubr.msk.f32.gmra.mxu1 %vm841_vm1, %v6848_v32 }
 0x293   : > { %2541 = vrot.lane.b32.xlu0 %v6844_v15, %s4688_s15  ;;  %vm2306_vm3 = vcmp.ge.f32.partialorder %v6611_v55, 0.0  ;;  %v2354_v12 = vmul.f32 0.1, %v6611_v55  ;;  %2783 = vmatprep.subr.mxu0 %v6853_v9  ;;  %v6865_v41 = vsel %vm2311_vm0, %v6623_v21, %v2359_v28  ;;  %vm2298_vm4 = vcmp.ge.f32.partialorder %v6593_v6, 0.0  ;;  %v4474_v21 = vld [vmem:[%s4902_s22 + $0x38] sm:$0xff] }
 0x294   : > { %2894 = vmatprep.subr.mxu1 %v6841_v14  ;;  %v2346_v18 = vmul.f32 0.1, %v6593_v6  ;;  %v2185_v46 = vadd.f32 %v6170_v8, %v6500_v60  ;;  %v2399_v16 = vsel %vm2303_vm2, %v6604_v2, %v2351_v10  ;;  %2740 = vmatprep.mubr.f32.mxu1 %v8304_v34  ;;  %v6882_v57 = vadd.f32 %v4474_v21, %v6510_v49  ;;  %v4475_v8 = vld [vmem:[%s4902_s22 + $0x18] sm:$0xff]  ;;  %v6917_v21 = vld [vmem:[#allocation8 + $0x120] sm:$0xff]  ;;  %v2630_v10 = vld [vmem:[#allocation8 + $0x130] sm:$0xff]  ;;  %s8041_s22 = scalar_lea.hbm %s8098_s5, %s4345_s0 }
 0x295   : > { %2895 = vmatpush1.msra.mxu1 %v6865_v41  ;;  %v2402_v29 = vsel %vm2306_vm3, %v6611_v55, %v2354_v12  ;;  %2784 = vmatpush1.msra.mxu0 %v2399_v16  ;;  %v2631_v12 = vld [vmem:[#allocation8 + $0x138] sm:$0xff] }
 0x296   : > { %v6875_v59 = vmul.f32 0.0, %v2402_v29  ;;  %v6878_v28 = vsel %vm2298_vm4, %v6593_v6, %v2346_v18  ;;  %8334 = vst [vmem:[#allocation36_spill] sm:$0xff] %v6882_v57  ;;  %v6890_v60 = vadd.f32 %v4475_v8, %v2185_v46  ;;  %v2335_v49 = vmul.f32 0.1, %v6882_v57  ;;  %4260 = vmatmul.mubr.msk.f32.gmra.mxu1 %vm841_vm1, %v6917_v21  ;;  %v2629_v46 = vld [vmem:[#allocation8 + $0x128] sm:$0xff] }
 0x297   : > { %2523 = vrot.lane.b32.xlu1 %v6878_v28, %s4688_s15  ;;  %2785 = vmatprep.subr.mxu0 %v6878_v28  ;;  %vm2287_vm5 = vcmp.ge.f32.partialorder %v6882_v57, 0.0 }
 0x298   : > { %2896 = vmatprep.subr.mxu1 %v6875_v59  ;;  %2786 = vmatpush1.msra.mxu0 %v6764_v33  ;;  %8335 = vst [vmem:[#allocation37_spill] sm:$0xff] %v6890_v60  ;;  %v2329_v55 = vmul.f32 0.1, %v6890_v60  ;;  %vm2281_vm6 = vcmp.ge.f32.partialorder %v6890_v60, 0.0 }
 0x299   : > { %2897 = vmatpush1.msra.mxu1 %v6844_v15  ;;  %3366 = vrot.lane.b32.xlu0 %v2399_v16, %s4689_s9 }
 0x29a   : > { %2898 = vmatprep.subr.mxu1 %v6799_v58  ;;  %2787 = vmatprep.subr.mxu0 %v6717_v45  ;;  %v6922_v29 = vsel %vm2281_vm6, %v6890_v60, %v2329_v55 }
 0x29b   : > { %2899 = vmatpush1.msra.mxu1 %v6737_v54  ;;  %2788 = vmatpush1.msra.mxu0 %v6740_v61 }
 0x29c   : > { %2900 = vmatprep.subr.mxu1 %v6692_v20  ;;  %2509 = vrot.lane.b32.xlu1 %v2399_v16, %s4688_s15  ;;  %v6912_v16 = vsel %vm2287_vm5, %v6882_v57, %v2335_v49 }
 0x29d   : > { %2789 = vmatprep.subr.mxu0 %v6730_v17  ;;  %2901 = vmatpush1.msra.mxu1 %v6655_v26 }
 0x29e   : > { %2790 = vmatpush1.msra.mxu0 %v6629_v11  ;;  %2902 = vmatprep.subr.mxu1 %v6710_v47 }
 0x29f   : > { %2557 = vrot.lane.b32.xlu0 %v6875_v59, %s4688_s15  ;;  %2791 = vmatprep.subr.mxu0 %v6582_v30 }
 0x2a0   : > { %2903 = vmatpush1.msra.mxu1 %v6912_v16  ;;  %2559 = vrot.lane.b32.xlu1 %v6841_v14, %s4688_s15 }
 0x2a1   : > { %2904 = vmatprep.subr.mxu1 %v6542_v53  ;;  %2792 = vmatpush1.msra.mxu0 %v6666_v35 }
 0x2a2   : > { %2905 = vmatpush1.msra.mxu1 %v6922_v29  ;;  %4264 = vmatmul.mubr.msk.f32.vlgmr.msra.gmra.mxu0 %vm841_vm1, %v6493_v31 }
 0x2a3   : > { %2525 = vrot.lane.b32.xlu0 %v6853_v9, %s4688_s15  ;;  %2745 = vmatprep.mubr.f32.mxu1 %v8304_v34 }
 0x2a4   : > { %2527 = vrot.lane.b32.xlu1 %v6816_v0, %s4688_s15  ;;  %2831 = vmatprep.mubr.f32.mxu0 %v8304_v34 }
 0x2a5   : > { %4261 = vmatmul.mubr.msk.f32.gmra.mxu1 %vm841_vm1, %v2629_v46 }
 0x2a6   : > { %4265 = vmatmul.mubr.msk.f32.gmra.mxu0 %vm841_vm1, %v6749_v4  ;;  %2750 = vmatprep.mubr.f32.mxu1 %v8304_v34 }
 0x2a7   : > { %2543 = vrot.lane.b32.xlu0 %v6865_v41, %s4688_s15  ;;  %2837 = vmatprep.mubr.f32.mxu0 %v8304_v34 }
 0x2a8   : > { %2513 = vrot.lane.b32.xlu1 %v6797_v52, %s4688_s15 }
 0x2a9   : > { %4262 = vmatmul.mubr.msk.f32.gmra.mxu1 %vm841_vm1, %v2630_v10 }
 0x2aa   : > { %4266 = vmatmul.mubr.msk.f32.gmra.mxu0 %vm841_vm1, %v6789_v56  ;;  %2755 = vmatprep.mubr.f32.mxu1 %v8304_v34 }
 0x2ab   : > { %2511 = vrot.lane.b32.xlu0 %v6827_v5, %s4688_s15  ;;  %2843 = vmatprep.mubr.f32.mxu0 %v8304_v34 }
 0x2ac   : > { %2547 = vrot.lane.b32.xlu1 %v6781_v1, %s4688_s15 }
 0x2ad   : > { %4263 = vmatmul.mubr.msk.f32.gmra.mxu1 %vm841_vm1, %v2631_v12  ;;  %v6976_v8 = vpop.permute.xlu0 %2469 }
 0x2ae   : > { %4267 = vmatmul.mubr.msk.f32.gmra.mxu0 %vm841_vm1, %v6848_v32  ;;  %v6960_v18 = vpop.permute.xlu1 %2485  ;;  %2938 = vmatprep.mubr.f32.mxu1 %v8304_v34 }
 0x2af   : > { %3368 = vrot.lane.b32.xlu0 %v6827_v5, %s4689_s9  ;;  %2849 = vmatprep.mubr.f32.mxu0 %v8304_v34 }
 0x2b0   : > { %2563 = vrot.lane.b32.xlu1 %v6772_v19, %s4688_s15 }
 0x2b1   : > { %4272 = vmatmul.mubr.msk.f32.vlgmr.msra.gmra.mxu1 %vm841_vm1, %v6493_v31 }
 0x2b2   : > { %4268 = vmatmul.mubr.msk.f32.gmra.mxu0 %vm841_vm1, %v6917_v21  ;;  %2943 = vmatprep.mubr.f32.mxu1 %v8304_v34 }
 0x2b3   : > { %2545 = vrot.lane.b32.xlu0 %v6824_v13, %s4688_s15  ;;  %v6973_v5 = vpop.permute.xlu1 %2471  ;;  %2855 = vmatprep.mubr.f32.mxu0 %v8304_v34 }
 0x2b4   : > { %2531 = vrot.lane.b32.xlu1 %v6754_v44, %s4688_s15 }
 0x2b5   : > { %4273 = vmatmul.mubr.msk.f32.gmra.mxu1 %vm841_vm1, %v6749_v4 }
 0x2b6   : > { %4269 = vmatmul.mubr.msk.f32.gmra.mxu0 %vm841_vm1, %v2629_v46  ;;  %2948 = vmatprep.mubr.f32.mxu1 %v8304_v34 }
 0x2b7   : > { %3370 = vrot.lane.b32.xlu0 %v6797_v52, %s4689_s9  ;;  %v6986_v31 = vpop.permute.xlu1 %2489  ;;  %2861 = vmatprep.mubr.f32.mxu0 %v8304_v34  ;;  %v6994_v52 = vpop.permute.xlu0 %2487 }
 0x2b8   : > { %3348 = vrot.lane.b32.xlu1 %v6285_v25, %s4689_s9 }
 0x2b9   : > { %4274 = vmatmul.mubr.msk.f32.gmra.mxu1 %vm841_vm1, %v6789_v56 }
 0x2ba   : > { %4270 = vmatmul.mubr.msk.f32.gmra.mxu0 %vm841_vm1, %v2630_v10  ;;  %2953 = vmatprep.mubr.f32.mxu1 %v8304_v34 }
 0x2bb   : > { %2561 = vrot.lane.b32.xlu0 %v6811_v42, %s4688_s15  ;;  %v6999_v25 = vpop.permute.xlu1 %2475  ;;  %2867 = vmatprep.mubr.f32.mxu0 %v8304_v34  ;;  %v7013_v4 = vpop.permute.xlu0 %2473 }
 0x2bc   : > { %3332 = vrot.lane.b32.xlu1 %v6271_v39, %s4689_s9 }
 0x2bd   : > { %4275 = vmatmul.mubr.msk.f32.gmra.mxu1 %vm841_vm1, %v6848_v32 }
 0x2be   : > { %4271 = vmatmul.mubr.msk.f32.gmra.mxu0 %vm841_vm1, %v2631_v12  ;;  %2958 = vmatprep.mubr.f32.mxu1 %v8304_v34 }
 0x2bf   : > { %2529 = vrot.lane.b32.xlu0 %v6775_v48, %s4688_s15  ;;  %v7010_v39 = vpop.permute.xlu1 %2493  ;;  %3067 = vmatprep.mubr.f32.mxu0 %v8304_v34  ;;  %v7027_v56 = vpop.permute.xlu0 %2491 }
 0x2c0   : > { %3346 = vrot.lane.b32.xlu1 %v6261_v38, %s4689_s9 }
 0x2c1   : > { %4276 = vmatmul.mubr.msk.f32.gmra.mxu1 %vm841_vm1, %v6917_v21 }
 0x2c2   : > { %2963 = vmatprep.mubr.f32.mxu1 %v8304_v34 }
 0x2c3   : > { %2515 = vrot.lane.b32.xlu0 %v6745_v43, %s4688_s15  ;;  %v7022_v38 = vpop.permute.xlu1 %3350 }
 0x2c4   : > { %3330 = vrot.lane.b32.xlu1 %v6251_v50, %s4689_s9 }
 0x2c5   : > { %4277 = vmatmul.mubr.msk.f32.gmra.mxu1 %vm841_vm1, %v2629_v46 }
 0x2c6   : > { %2968 = vmatprep.mubr.f32.mxu1 %v8304_v34 }
 0x2c7   : > { %3372 = vrot.lane.b32.xlu0 %v6745_v43, %s4689_s9  ;;  %v7032_v32 = vpop.permute.xlu1 %3334  ;;  %v7042_v43 = vpop.permute.xlu0 %2477 }
 0x2c8   : > { %3344 = vrot.lane.b32.xlu1 %v6240_v7, %s4689_s9 }
 0x2c9   : > { %4278 = vmatmul.mubr.msk.f32.gmra.mxu1 %vm841_vm1, %v2630_v10 }
 0x2ca   : > { %2973 = vmatprep.mubr.f32.mxu1 %v8304_v34 }
 0x2cb   : > { %3364 = vrot.lane.b32.xlu0 %v6764_v33, %s4689_s9  ;;  %v7040_v50 = vpop.permute.xlu1 %2479 }
 0x2cc   : > { %3328 = vrot.lane.b32.xlu1 %v6235_v40, %s4689_s9  ;;  %v7054_v40 = vpop.permute.xlu0 %2495 }
 0x2cd   : > { %4279 = vmatmul.mubr.msk.f32.gmra.mxu1 %vm841_vm1, %v2631_v12  ;;  %v4332_v12 = vld [vmem:[%s8097_s4 + $0x60] sm:$0xff] }
 0x2ce   : > { %3172 = vmatprep.mubr.f32.mxu1 %v8304_v34 }
 0x2cf   : > { %2535 = vrot.lane.b32.xlu0 %v6912_v16, %s4688_s15  ;;  %v7050_v7 = vpop.permute.xlu1 %3352 }
 0x2d0   : > { %3358 = vrot.lane.b32.xlu1 %v6666_v35, %s4689_s9  ;;  %v7066_v49 = vpop.permute.xlu0 %2481 }
 0x2d3   : > { %3362 = vrot.lane.b32.xlu0 %v6740_v61, %s4689_s9  ;;  %v7058_v33 = vpop.permute.xlu1 %3336 }
 0x2d4   : > { %3386 = vrot.lane.b32.xlu1 %v6775_v48, %s4689_s9  ;;  %v7076_v48 = vpop.permute.xlu0 %2499 }
 0x2d7   : > { %2533 = vrot.lane.b32.xlu0 %v6922_v29, %s4688_s15  ;;  %v7064_v35 = vpop.permute.xlu1 %2497 }
 0x2d8   : > { %3400 = vrot.lane.b32.xlu1 %v6865_v41, %s4689_s9 }
 0x2db   : > { %3360 = vrot.lane.b32.xlu0 %v6629_v11, %s4689_s9  ;;  %v7072_v61 = vpop.permute.xlu1 %3354 }
 0x2dc   : > { %3382 = vrot.lane.b32.xlu1 %v6853_v9, %s4689_s9  ;;  %v8336_v9 = vld [vmem:[#allocation34_spill] sm:$0xff] }
 0x2dd   : > { %vm2565_vm7 = vcmp.lt.s32.totalorder %v8336_v9, 3  ;;  %vm3422_vm8 = vcmp.lt.s32.totalorder %v8336_v9, 125 }
 0x2de   : > { %v2604_v57 = vsel %vm2565_vm7, %v7066_v49, %v7064_v35  ;;  %v2603_v3 = vsel %vm2565_vm7, %v7040_v50, %v7054_v40 }
 0x2df   : > { %3342 = vrot.lane.b32.xlu0 %v6211_v36, %s4689_s9  ;;  %v7080_v41 = vpop.permute.xlu1 %3338 }
 0x2e0   : > { %3416 = vrot.lane.b32.xlu1 %v6841_v14, %s4689_s9 }
 0x2e2   : > { %v7086_v11 = vpop.permute.xlu0 %2549 }
 0x2e3   : > { %3326 = vrot.lane.b32.xlu0 %v6208_v23, %s4689_s9  ;;  %v7089_v55 = vpop.permute.xlu1 %2483 }
 0x2e4   : > { %3396 = vrot.lane.b32.xlu1 %v6737_v54, %s4689_s9  ;;  %v2605_v36 = vsel %vm2565_vm7, %v7089_v55, %v7076_v48 }
 0x2e5   : > { %3019 = vmatprep.subr.mxu0 %v2605_v36  ;;  %v4334_v36 = vld [vmem:[%s8097_s4 + $0x70] sm:$0xff] }
 0x2e6   : > { %v7099_v23 = vpop.permute.xlu0 %2517 }
 0x2e7   : > { %3404 = vrot.lane.b32.xlu0 %v6781_v1, %s4689_s9  ;;  %v7101_v54 = vpop.permute.xlu1 %3356 }
 0x2e8   : > { %3378 = vrot.lane.b32.xlu1 %v6717_v45, %s4689_s9 }
 0x2eb   : > { %3402 = vrot.lane.b32.xlu0 %v6824_v13, %s4689_s9  ;;  %v7109_v21 = vpop.permute.xlu1 %3340 }
 0x2ec   : > { %3412 = vrot.lane.b32.xlu1 %v6799_v58, %s4689_s9 }
 0x2ed   : > { %v7107_v14 = vpop.permute.xlu0 %2503 }
 0x2ef   : > { %3384 = vrot.lane.b32.xlu0 %v6816_v0, %s4689_s9 }
 0x2f0   : > { %3388 = vrot.lane.b32.xlu1 %v6754_v44, %s4689_s9  ;;  %v7115_v1 = vpop.permute.xlu1 %2501 }
 0x2f1   : > { %v2538_v45 = vpop.permute.xlu0 %2537 }
 0x2f3   : > { %3418 = vrot.lane.b32.xlu0 %v6811_v42, %s4689_s9 }
 0x2f4   : > { %3420 = vrot.lane.b32.xlu1 %v6772_v19, %s4689_s9 }
 0x2f5   : > { %v7121_v58 = vpop.permute.xlu0 %2553 }
 0x2f6   : > { %v7126_v13 = vsel %vm2565_vm7, %v2538_v45, %v7121_v58 }
 0x2f7   : > { %3398 = vrot.lane.b32.xlu0 %v6844_v15, %s4689_s9  ;;  %v7130_v44 = vpop.permute.xlu1 %2551 }
 0x2f8   : > { %3392 = vrot.lane.b32.xlu1 %v6912_v16, %s4689_s9 }
 0x2f9   : > { %v7134_v0 = vpop.permute.xlu0 %2521 }
 0x2fa   : > { %v7139_v19 = vsel %vm2565_vm7, %v7134_v0, %v2538_v45 }
 0x2fb   : > { %3380 = vrot.lane.b32.xlu0 %v6878_v28, %s4689_s9  ;;  %v7143_v42 = vpop.permute.xlu1 %2519  ;;  %v4328_v28 = vld [vmem:[%s8097_s4 + $0x40] sm:$0xff] }
 0x2fc   : > { %3374 = vrot.lane.b32.xlu1 %v6582_v30, %s4689_s9 }
 0x2fd   : > { %v7147_v15 = vpop.permute.xlu0 %2539 }
 0x2ff   : > { %3414 = vrot.lane.b32.xlu0 %v6875_v59, %s4689_s9  ;;  %v7151_v16 = vpop.permute.xlu1 %2505  ;;  %v4330_v59 = vld [vmem:[%s8097_s4 + $0x50] sm:$0xff] }
 0x300   : > { %3408 = vrot.lane.b32.xlu1 %v6710_v47, %s4689_s9 }
 0x301   : > { %v7155_v46 = vpop.permute.xlu0 %2507 }
 0x303   : > { %3394 = vrot.lane.b32.xlu0 %v6655_v26, %s4689_s9  ;;  %v7162_v30 = vpop.permute.xlu1 %2555 }
 0x304   : > { %3870 = vperm.xlu1 %4443, %v4328_v28  }
 0x305   : > { %v7164_v10 = vpop.permute.xlu0 %2541 }
 0x307   : > { %3376 = vrot.lane.b32.xlu0 %v6730_v17, %s4689_s9 }
 0x308   : > { %3880 = vperm.xlu1 %4443, %v4330_v59  }
 0x309   : > { %v7171_v47 = vpop.permute.xlu1 %2523 }
 0x30b   : > { %3410 = vrot.lane.b32.xlu0 %v6692_v20, %s4689_s9  ;;  %v7178_v26 = vpop.permute.xlu0 %3366  ;;  %v4329_v20 = vld [vmem:[%s8097_s4 + $0x48] sm:$0xff] }
 0x30c   : > { %3890 = vperm.xlu1 %4443, %v4332_v12  }
 0x30e   : > { %v7183_v45 = vpop.permute.xlu1 %2509 }
 0x30f   : > { %3390 = vrot.lane.b32.xlu0 %v6922_v29, %s4689_s9  ;;  %v4331_v29 = vld [vmem:[%s8097_s4 + $0x58] sm:$0xff] }
 0x310   : > { %3900 = vperm.xlu1 %4443, %v4334_v36  }
 0x311   : > { %v7187_v17 = vpop.permute.xlu0 %2557 }
 0x312   : > { %v7189_v28 = vpop.permute.xlu1 %2559 }
 0x313   : > { %3406 = vrot.lane.b32.xlu0 %v6542_v53, %s4689_s9  ;;  %v4333_v53 = vld [vmem:[%s8097_s4 + $0x68] sm:$0xff] }
 0x315   : > { %v7196_v59 = vpop.permute.xlu0 %2525 }
 0x316   : > { %v7198_v12 = vpop.permute.xlu1 %2527 }
 0x317   : > { %3875 = vperm.xlu0 %4442, %v4329_v20   ;;  %v4335_v20 = vld [vmem:[%s8097_s4 + $0x78] sm:$0xff] }
 0x319   : > { %v7203_v36 = vpop.permute.xlu0 %2543 }
 0x31a   : > { %v2514_v2 = vpop.permute.xlu1 %2513 }
 0x31b   : > { %3885 = vperm.xlu0 %4442, %v4331_v29  }
 0x31d   : > { %v2512_v6 = vpop.permute.xlu0 %2511 }
 0x31e   : > { %v7208_v37 = vpop.permute.xlu1 %2547 }
 0x31f   : > { %3895 = vperm.xlu0 %4442, %v4333_v53  }
 0x321   : > { %v7213_v22 = vpop.permute.xlu0 %3368 }
 0x322   : > { %v2564_v51 = vpop.permute.xlu1 %2563 }
 0x323   : > { %3905 = vperm.xlu0 %4442, %v4335_v20   ;;  %v2613_v29 = vsel %vm2565_vm7, %v2564_v51, %v7089_v55 }
 0x324   : > { %3020 = vmatpush1.msra.mxu0 %v2613_v29 }
 0x325   : > { %v7222_v27 = vpop.permute.xlu0 %2545  ;;  %3021 = vmatprep.subr.mxu0 %v2604_v57  ;;  %v2611_v57 = vsel %vm2565_vm7, %v7189_v28, %v7040_v50  ;;  %v2609_v50 = vsel %vm2565_vm7, %v7162_v30, %v6999_v25 }
 0x326   : > { %v2532_v53 = vpop.permute.xlu1 %2531 }
 0x328   : > { %v2722_v62 = vpop.f32.mrf.mxu1 }
 0x329   : > { %v7224_v63 = vpop.permute.xlu0 %3370 }
 0x32a   : > { %v7226_v60 = vpop.permute.xlu1 %3348 }
 0x32d   : > { %v2562_v20 = vpop.permute.xlu0 %2561 }
 0x32e   : > { %v2612_v55 = vsel %vm2565_vm7, %v2562_v20, %v7066_v49  ;;  %v7231_v29 = vpop.permute.xlu1 %3332  ;;  %v2602_v49 = vsel %vm2565_vm7, %v7042_v43, %v7010_v39 }
 0x32f   : > { %3022 = vmatpush1.msra.mxu0 %v2612_v55  ;;  %v2610_v55 = vsel %vm2565_vm7, %v7187_v17, %v7042_v43  ;;  %v2600_v43 = vsel %vm2565_vm7, %v7013_v4, %v6986_v31 }
 0x330   : > { %3023 = vmatprep.subr.mxu0 %v2603_v3  ;;  %v2601_v3 = vsel %vm2565_vm7, %v6999_v25, %v7027_v56 }
 0x331   : > { %v2530_v62 = vpop.permute.xlu0 %2529  ;;  %3024 = vmatpush1.msra.mxu0 %v2611_v57 }
 0x332   : > { %3025 = vmatprep.subr.mxu0 %v2602_v49  ;;  %v7249_v24 = vpop.permute.xlu1 %3346  ;;  %v2608_v49 = vsel %vm2565_vm7, %v7121_v58, %v7013_v4  ;;  %v2607_v4 = vsel %vm2565_vm7, %v7130_v44, %v6973_v5  ;;  %v2596_v58 = vsel %vm2565_vm7, %v7064_v35, %v2514_v2 }
 0x333   : > { %3026 = vmatpush1.msra.mxu0 %v2610_v55 }
 0x334   : > { %3027 = vmatprep.subr.mxu0 %v2601_v3 }
 0x335   : > { %v2516_v57 = vpop.permute.xlu0 %2515  ;;  %3028 = vmatpush1.msra.mxu0 %v2609_v50  ;;  %v2599_v50 = vsel %vm2565_vm7, %v6973_v5, %v6994_v52  ;;  %v2606_v5 = vsel %vm2565_vm7, %v7086_v11, %v6976_v8 }
 0x336   : > { %v2597_v55 = vsel %vm2565_vm7, %v7076_v48, %v2516_v57  ;;  %3029 = vmatprep.subr.mxu0 %v2600_v43  ;;  %v2589_v25 = vsel %vm2565_vm7, %v2516_v57, %v2532_v53  ;;  %v7272_v3 = vpop.permute.xlu1 %3330  ;;  %v2588_v48 = vsel %vm2565_vm7, %v2514_v2, %v2530_v62  ;;  %v2598_v43 = vsel %vm2565_vm7, %v6976_v8, %v6960_v18 }
 0x337   : > { %3124 = vmatprep.subr.mxu1 %v2589_v25  ;;  %3030 = vmatpush1.msra.mxu0 %v2608_v49  ;;  %v7293_v49 = vld [vmem:[#allocation8 + $0xc0] sm:$0xff]  ;;  %v2587_v2 = vsel %vm2565_vm7, %v2512_v6, %v7198_v12  ;;  %v2573_v8 = vsel %vm2565_vm7, %v7208_v37, %v2564_v51  ;;  %v2586_v25 = vsel %vm2565_vm7, %v7183_v45, %v7196_v59 }
 0x338   : > { %3031 = vmatprep.subr.mxu0 %v2599_v50  ;;  %3125 = vmatpush1.msra.mxu1 %v2597_v55  ;;  %v2595_v55 = vsel %vm2565_vm7, %v7054_v40, %v2512_v6  ;;  %v2594_v6 = vsel %vm2565_vm7, %v7010_v39, %v7183_v45  ;;  %v2581_v40 = vsel %vm2565_vm7, %v2532_v53, %v7208_v37  ;;  %v7334_v45 = vld [vmem:[#allocation8 + $0xc8] sm:$0xff] }
 0x339   : > { %v7287_v57 = vpop.permute.xlu0 %3372  ;;  %3032 = vmatpush1.msra.mxu0 %v2607_v4  ;;  %3126 = vmatprep.subr.mxu1 %v2588_v48  ;;  %v2572_v51 = vsel %vm2565_vm7, %v7222_v27, %v2562_v20  ;;  %v2585_v4 = vsel %vm2565_vm7, %v7155_v46, %v7171_v47  ;;  %v2580_v37 = vsel %vm2565_vm7, %v2530_v62, %v7222_v27 }
 0x33a   : > { %3033 = vmatprep.subr.mxu0 %v2598_v43  ;;  %3127 = vmatpush1.msra.mxu1 %v2596_v58  ;;  %v7302_v35 = vpop.permute.xlu1 %3344  ;;  %v2593_v53 = vsel %vm2565_vm7, %v7027_v56, %v7155_v46  ;;  %v2571_v20 = vsel %vm2565_vm7, %v7203_v36, %v7189_v28  ;;  %v2584_v62 = vsel %vm2565_vm7, %v7151_v16, %v7134_v0 }
 0x33b   : > { %3128 = vmatprep.subr.mxu1 %v2587_v2  ;;  %3034 = vmatpush1.msra.mxu0 %v2606_v5  ;;  %v2592_v56 = vsel %vm2565_vm7, %v6986_v31, %v7151_v16  ;;  %v2579_v46 = vsel %vm2565_vm7, %v7198_v12, %v7203_v36  ;;  %v2570_v0 = vsel %vm2565_vm7, %v7164_v10, %v7187_v17  ;;  %v7372_v16 = vld [vmem:[#allocation8 + $0xd0] sm:$0xff]  ;;  %v7385_v36 = vpop.f32.mrf.mxu1 }
 0x33c   : > { %4280 = vmatmul.mubr.msk.f32.vlgmr.msra.gmra.mxu0 %vm841_vm1, %v7293_v49  ;;  %3129 = vmatpush1.msra.mxu1 %v2595_v55  ;;  %v2583_v31 = vsel %vm2565_vm7, %v7107_v14, %v7143_v42  ;;  %v2578_v28 = vsel %vm2565_vm7, %v7196_v59, %v7164_v10  ;;  %v2591_v12 = vsel %vm2565_vm7, %v6994_v52, %v7107_v14 }
 0x33d   : > { %3237 = vmatprep.subr.mxu0 %v2573_v8  ;;  %v7323_v50 = vpop.permute.xlu0 %3364  ;;  %3130 = vmatprep.subr.mxu1 %v2586_v25  ;;  %v2569_v10 = vsel %vm2565_vm7, %v7147_v15, %v7162_v30  ;;  %v2582_v52 = vsel %vm2565_vm7, %v7115_v1, %v7099_v23  ;;  %v2590_v59 = vsel %vm2565_vm7, %v6960_v18, %v7115_v1  ;;  %v7415_v1 = vld [vmem:[#allocation8 + $0xd8] sm:$0xff]  ;;  %v7453_v8 = vld [vmem:[#allocation8 + $0xe0] sm:$0xff] }
 0x33e   : > { %3238 = vmatpush1.msra.mxu0 %v2581_v40  ;;  %3131 = vmatpush1.msra.mxu1 %v2594_v6  ;;  %v7332_v39 = vpop.permute.xlu1 %3328  ;;  %v2577_v58 = vsel %vm2565_vm7, %v7171_v47, %v7147_v15  ;;  %v3454_v18 = vsel %vm3422_vm8, %v7101_v54, %v7287_v57  ;;  %v3462_v47 = vsel %vm3422_vm8, %v7109_v21, %v7101_v54 }
 0x33f   : > { %3239 = vmatprep.subr.mxu0 %v2572_v51  ;;  %3132 = vmatprep.subr.mxu1 %v2585_v4  ;;  %v3453_v54 = vsel %vm3422_vm8, %v7072_v61, %v7224_v63  ;;  %v3452_v55 = vsel %vm3422_vm8, %v7050_v7, %v7213_v22  ;;  %v3460_v6 = vsel %vm3422_vm8, %v7058_v33, %v7050_v7 }
 0x340   : > { %3072 = vmatprep.mubr.f32.mxu0 %v8304_v34  ;;  %3240 = vmatpush1.msra.mxu0 %v2580_v37  ;;  %v3459_v7 = vsel %vm3422_vm8, %v7032_v32, %v7022_v38  ;;  %v3450_v37 = vsel %vm3422_vm8, %v7226_v60, %v7323_v50 }
 0x341   : > { %4281 = vmatmul.mubr.msk.f32.gmra.mxu0 %vm841_vm1, %v7334_v45  ;;  %3133 = vmatpush1.msra.mxu1 %v2593_v53  ;;  %v2536_v27 = vpop.permute.xlu0 %2535  ;;  %v7486_v53 = vld [vmem:[#allocation8 + $0xe8] sm:$0xff] }
 0x342   : > { %3241 = vmatprep.subr.mxu0 %v2571_v20  ;;  %3134 = vmatprep.subr.mxu1 %v2584_v62  ;;  %v7362_v48 = vpop.permute.xlu1 %3358  ;;  %v2567_v43 = vsel %vm2565_vm7, %v2536_v27, %v7130_v44  ;;  %v2575_v2 = vsel %vm2565_vm7, %v7143_v42, %v2536_v27  ;;  %v3461_v44 = vsel %vm3422_vm8, %v7080_v41, %v7072_v61 }
 0x343   : > { %3242 = vmatpush1.msra.mxu0 %v2579_v46  ;;  %3135 = vmatpush1.msra.mxu1 %v2592_v56  ;;  %v2727_v15 = vpop.f32.mrf.mxu1  ;;  %v3457_v56 = vsel %vm3422_vm8, %v7272_v3, %v7249_v24 }
 0x344   : > { %3243 = vmatprep.subr.mxu0 %v2570_v0  ;;  %3136 = vmatprep.subr.mxu1 %v2583_v31  ;;  %v7514_v0 = vld [vmem:[#allocation8 + $0xf0] sm:$0xff] }
 0x345   : > { %3077 = vmatprep.mubr.f32.mxu0 %v8304_v34  ;;  %3244 = vmatpush1.msra.mxu0 %v2578_v28  ;;  %v7383_v17 = vpop.permute.xlu0 %3362  ;;  %v7428_v5 = vpop.f32.mrf.mxu1 }
 0x346   : > { %4282 = vmatmul.mubr.msk.f32.gmra.mxu0 %vm841_vm1, %v7372_v16  ;;  %3137 = vmatpush1.msra.mxu1 %v2591_v12  ;;  %v7397_v14 = vpop.permute.xlu1 %3386  ;;  %v3449_v27 = vsel %vm3422_vm8, %v7249_v24, %v7383_v17  ;;  %v3456_v24 = vsel %vm3422_vm8, %v7332_v39, %v7302_v35 }
 0x347   : > { %3245 = vmatprep.subr.mxu0 %v2569_v10  ;;  %3138 = vmatprep.subr.mxu1 %v2582_v52  ;;  %v7534_v10 = vld [vmem:[#allocation8 + $0xf8] sm:$0xff] }
 0x348   : > { %3246 = vmatpush1.msra.mxu0 %v2577_v58  ;;  %3139 = vmatpush1.msra.mxu1 %v2590_v59 }
 0x349   : > { %3247 = vmatprep.subr.mxu0 %v7126_v13  ;;  %4288 = vmatmul.mubr.msk.f32.vlgmr.msra.gmra.mxu1 %vm841_vm1, %v7293_v49  ;;  %v2534_v30 = vpop.permute.xlu0 %2533 }
 0x34a   : > { %3520 = vmatprep.subr.mxu1 %v3454_v18  ;;  %3082 = vmatprep.mubr.f32.mxu0 %v8304_v34  ;;  %v7422_v13 = vpop.permute.xlu1 %3400  ;;  %v2574_v61 = vsel %vm2565_vm7, %v7099_v23, %v2534_v30  ;;  %v3451_v23 = vsel %vm3422_vm8, %v7022_v38, %v7178_v26  ;;  %v3458_v38 = vsel %vm3422_vm8, %v7231_v29, %v7226_v60 }
 0x34b   : > { %3248 = vmatpush1.msra.mxu0 %v7139_v19  ;;  %3521 = vmatpush1.msra.mxu1 %v3462_v47  ;;  %v2566_v19 = vsel %vm2565_vm7, %v2534_v30, %v7086_v11 }
 0x34c   : > { %4283 = vmatmul.mubr.msk.f32.gmra.mxu0 %vm841_vm1, %v7415_v1  ;;  %3249 = vmatprep.subr.mxu0 %v2567_v43 }
 0x34d   : > { %3250 = vmatpush1.msra.mxu0 %v2575_v2  ;;  %3522 = vmatprep.subr.mxu1 %v3453_v54  ;;  %v7446_v42 = vpop.permute.xlu0 %3360 }
 0x34e   : > { %3178 = vmatprep.mubr.f32.mxu1 %v8304_v34  ;;  %3523 = vmatpush1.msra.mxu1 %v3461_v44  ;;  %v7455_v25 = vpop.permute.xlu1 %3382  ;;  %v2732_v11 = vpop.f32.mrf.mxu1  ;;  %v3448_v46 = vsel %vm3422_vm8, %v7302_v35, %v7446_v42 }
 0x34f   : > { %4289 = vmatmul.mubr.msk.f32.gmra.mxu1 %vm841_vm1, %v7334_v45  ;;  %3524 = vmatprep.subr.mxu1 %v3452_v55 }
 0x350   : > { %3087 = vmatprep.mubr.f32.mxu0 %v8304_v34  ;;  %3251 = vmatprep.subr.mxu0 %v2566_v19  ;;  %v7473_v51 = vpop.f32.mrf.mxu1 }
 0x351   : > { %4284 = vmatmul.mubr.msk.f32.gmra.mxu0 %vm841_vm1, %v7453_v8  ;;  %3525 = vmatpush1.msra.mxu1 %v3460_v6  ;;  %v3343_v40 = vpop.permute.xlu0 %3342 }
 0x352   : > { %3252 = vmatpush1.msra.mxu0 %v2574_v61  ;;  %3526 = vmatprep.subr.mxu1 %v3451_v23  ;;  %v7479_v4 = vpop.permute.xlu1 %3416  ;;  %v2737_v20 = vpop.f32.mrf.mxu1  ;;  %v3447_v28 = vsel %vm3422_vm8, %v3343_v40, %v7362_v48 }
 0x353   : > { %3184 = vmatprep.mubr.f32.mxu1 %v8304_v34  ;;  %3527 = vmatpush1.msra.mxu1 %v3459_v7 }
 0x354   : > { %4290 = vmatmul.mubr.msk.f32.gmra.mxu1 %vm841_vm1, %v7372_v16  ;;  %3528 = vmatprep.subr.mxu1 %v3450_v37  ;;  %v7545_v58 = vpop.f32.mrf.mxu1  ;;  %v3443_v37 = vsel %vm3422_vm8, %v7178_v26, %v7455_v25 }
 0x355   : > { %3092 = vmatprep.mubr.f32.mxu0 %v8304_v34  ;;  %3529 = vmatpush1.msra.mxu1 %v3458_v38  ;;  %v7499_v62 = vpop.permute.xlu0 %3326 }
 0x356   : > { %4285 = vmatmul.mubr.msk.f32.gmra.mxu0 %vm841_vm1, %v7486_v53  ;;  %3530 = vmatprep.subr.mxu1 %v3449_v27  ;;  %v7507_v60 = vpop.permute.xlu1 %3396  ;;  %v3455_v31 = vsel %vm3422_vm8, %v7499_v62, %v3343_v40  ;;  %v2742_v43 = vpop.f32.mrf.mxu1 }
 0x357   : > { %3190 = vmatprep.mubr.f32.mxu1 %v8304_v34  ;;  %3531 = vmatpush1.msra.mxu1 %v3457_v56 }
 0x358   : > { %4291 = vmatmul.mubr.msk.f32.gmra.mxu1 %vm841_vm1, %v7415_v1  ;;  %3532 = vmatprep.subr.mxu1 %v3448_v46  ;;  %v7564_v54 = vpop.f32.mrf.mxu1  ;;  %v3428_v46 = vsel %vm3422_vm8, %v7422_v13, %v7479_v4 }
 0x359   : > { %3097 = vmatprep.mubr.f32.mxu0 %v8304_v34  ;;  %3533 = vmatpush1.msra.mxu1 %v3456_v24  ;;  %v3405_v12 = vpop.permute.xlu0 %3404 }
 0x35a   : > { %4286 = vmatmul.mubr.msk.f32.gmra.mxu0 %vm841_vm1, %v7514_v0  ;;  %3534 = vmatprep.subr.mxu1 %v3447_v28  ;;  %v7531_v35 = vpop.permute.xlu1 %3378 }
 0x35b   : > { %3196 = vmatprep.mubr.f32.mxu1 %v8304_v34  ;;  %3535 = vmatpush1.msra.mxu1 %v3455_v31 }
 0x35c   : > { %4292 = vmatmul.mubr.msk.f32.gmra.mxu1 %vm841_vm1, %v7453_v8  ;;  %3102 = vmatprep.mubr.f32.mxu0 %v8304_v34 }
 0x35d   : > { %3202 = vmatprep.mubr.f32.mxu1 %v8304_v34  ;;  %v3403_v52 = vpop.permute.xlu0 %3402 }
 0x35e   : > { %4287 = vmatmul.mubr.msk.f32.gmra.mxu0 %vm841_vm1, %v7534_v10  ;;  %v7542_v59 = vpop.permute.xlu1 %3412 }
 0x35f   : > { %3285 = vmatprep.mubr.f32.mxu0 %v8304_v34 }
 0x360   : > { %4293 = vmatmul.mubr.msk.f32.gmra.mxu1 %vm841_vm1, %v7486_v53 }
 0x361   : > { %3208 = vmatprep.mubr.f32.mxu1 %v8304_v34  ;;  %v3385_v18 = vpop.permute.xlu0 %3384 }
 0x362   : > { %4296 = vmatmul.mubr.msk.f32.vlgmr.msra.gmra.mxu0 %vm841_vm1, %v7293_v49  ;;  %v3389_v30 = vpop.permute.xlu1 %3388  ;;  %v3437_v49 = vsel %vm3422_vm8, %v7397_v14, %v3403_v52  ;;  %v3436_v19 = vsel %vm3422_vm8, %v3385_v18, %v7422_v13  ;;  %v3444_v11 = vsel %vm3422_vm8, %v7213_v22, %v3385_v18  ;;  %v7600_v22 = vld [vmem:[#allocation8 + $0x148] sm:$0xff]  ;;  %v7650_v13 = vld [vmem:[#allocation8 + $0x158] sm:$0xff] }
 0x363   : > { %3290 = vmatprep.mubr.f32.mxu0 %v8304_v34  ;;  %v3446_v15 = vsel %vm3422_vm8, %v7287_v57, %v3389_v30  ;;  %v3438_v47 = vsel %vm3422_vm8, %v3389_v30, %v3405_v12  ;;  %v3445_v57 = vsel %vm3422_vm8, %v7224_v63, %v7397_v14  ;;  %v7582_v63 = vld [vmem:[#allocation8 + $0x140] sm:$0xff] }
 0x364   : > { %4294 = vmatmul.mubr.msk.f32.gmra.mxu1 %vm841_vm1, %v7514_v0  ;;  %3625 = vmatprep.subr.mxu0 %v3438_v47 }
 0x365   : > { %3214 = vmatprep.mubr.f32.mxu1 %v8304_v34  ;;  %v3419_v2 = vpop.permute.xlu0 %3418  ;;  %3626 = vmatpush1.msra.mxu0 %v3446_v15  ;;  %v2747_v61 = vpop.f32.mrf.mxu1  ;;  %v3441_v15 = vsel %vm3422_vm8, %v7383_v17, %v7531_v35  ;;  %v7690_v17 = vld [vmem:[#allocation8 + $0x168] sm:$0xff] }
 0x366   : > { %4297 = vmatmul.mubr.msk.f32.gmra.mxu0 %vm841_vm1, %v7334_v45  ;;  %v3421_v44 = vpop.permute.xlu1 %3420  ;;  %3627 = vmatprep.subr.mxu0 %v3437_v49  ;;  %v3429_v38 = vsel %vm3422_vm8, %v3403_v52, %v3419_v2 }
 0x367   : > { %3295 = vmatprep.mubr.f32.mxu0 %v8304_v34  ;;  %3628 = vmatpush1.msra.mxu0 %v3445_v57  ;;  %v3470_v55 = vsel %vm3422_vm8, %v3421_v44, %v7109_v21  ;;  %v7584_v14 = vpop.f32.mrf.mxu1  ;;  %v3430_v21 = vsel %vm3422_vm8, %v3405_v12, %v3421_v44  ;;  %v3478_v57 = vld [vmem:[#allocation8 + $0x170] sm:$0xff] }
 0x368   : > { %4295 = vmatmul.mubr.msk.f32.gmra.mxu1 %vm841_vm1, %v7534_v10  ;;  %3629 = vmatprep.subr.mxu0 %v3436_v19 }
 0x369   : > { %3568 = vmatprep.mubr.f32.mxu1 %v8304_v34  ;;  %v3399_v45 = vpop.permute.xlu0 %3398  ;;  %3738 = vmatprep.subr.mxu1 %v3470_v55  ;;  %v2752_v23 = vpop.f32.mrf.mxu1 }
 0x36a   : > { %4298 = vmatmul.mubr.msk.f32.gmra.mxu0 %vm841_vm1, %v7372_v16  ;;  %v3435_v6 = vsel %vm3422_vm8, %v7455_v25, %v3399_v45  ;;  %v3469_v16 = vsel %vm3422_vm8, %v3419_v2, %v7080_v41  ;;  %v7629_v25 = vld [vmem:[#allocation8 + $0x150] sm:$0xff]  ;;  %v3393_v24 = vpop.permute.xlu1 %3392 }
 0x36b   : > { %3300 = vmatprep.mubr.f32.mxu0 %v8304_v34  ;;  %3630 = vmatpush1.msra.mxu0 %v3444_v11  ;;  %v7605_v7 = vpop.f32.mrf.mxu1 }
 0x36c   : > { %4304 = vmatmul.mubr.msk.f32.vlgmr.msra.gmra.mxu1 %vm841_vm1, %v7582_v63  ;;  %3631 = vmatprep.subr.mxu0 %v3435_v6 }
 0x36d   : > { %3573 = vmatprep.mubr.f32.mxu1 %v8304_v34  ;;  %3739 = vmatpush1.msra.mxu1 %v3430_v21  ;;  %v3381_v40 = vpop.permute.xlu0 %3380  ;;  %v2757_v41 = vpop.f32.mrf.mxu1 }
 0x36e   : > { %4299 = vmatmul.mubr.msk.f32.gmra.mxu0 %vm841_vm1, %v7415_v1  ;;  %3740 = vmatprep.subr.mxu1 %v3469_v16  ;;  %v3434_v20 = vsel %vm3422_vm8, %v3381_v40, %v7507_v60  ;;  %v3442_v26 = vsel %vm3422_vm8, %v7323_v50, %v3381_v40  ;;  %v3468_v1 = vsel %vm3422_vm8, %v7479_v4, %v7058_v33  ;;  %v3375_v52 = vpop.permute.xlu1 %3374 }
 0x36f   : > { %3305 = vmatprep.mubr.f32.mxu0 %v8304_v34  ;;  %3632 = vmatpush1.msra.mxu0 %v3443_v37  ;;  %v7631_v56 = vpop.f32.mrf.mxu1  ;;  %v3439_v61 = vsel %vm3422_vm8, %v7362_v48, %v3375_v52 }
 0x370   : > { %4305 = vmatmul.mubr.msk.f32.gmra.mxu1 %vm841_vm1, %v7600_v22  ;;  %3633 = vmatprep.subr.mxu0 %v3434_v20 }
 0x371   : > { %3741 = vmatpush1.msra.mxu1 %v3429_v38  ;;  %3578 = vmatprep.mubr.f32.mxu1 %v8304_v34  ;;  %v3415_v27 = vpop.permute.xlu0 %3414  ;;  %v7645_v31 = vpop.f32.mrf.mxu1 }
 0x372   : > { %4300 = vmatmul.mubr.msk.f32.gmra.mxu0 %vm841_vm1, %v7453_v8  ;;  %3742 = vmatprep.subr.mxu1 %v3468_v1  ;;  %v3467_v33 = vsel %vm3422_vm8, %v3415_v27, %v7032_v32  ;;  %v3427_v50 = vsel %vm3422_vm8, %v3399_v45, %v3415_v27  ;;  %v3466_v32 = vsel %vm3422_vm8, %v7542_v59, %v7231_v29  ;;  %v7671_v29 = vld [vmem:[#allocation8 + $0x160] sm:$0xff] }
 0x373   : > { %3743 = vmatpush1.msra.mxu1 %v3428_v46  ;;  %3310 = vmatprep.mubr.f32.mxu0 %v8304_v34  ;;  %v2942_v4 = vpop.f32.mrf.mxu1 }
 0x374   : > { %4306 = vmatmul.mubr.msk.f32.gmra.mxu1 %vm841_vm1, %v7629_v25  ;;  %3634 = vmatpush1.msra.mxu0 %v3442_v26 }
 0x375   : > { %3583 = vmatprep.mubr.f32.mxu1 %v8304_v34  ;;  %3744 = vmatprep.subr.mxu1 %v3467_v33  ;;  %v3395_v8 = vpop.permute.xlu0 %3394  ;;  %v7662_v12 = vpop.f32.mrf.mxu1 }
 0x376   : > { %4301 = vmatmul.mubr.msk.f32.gmra.mxu0 %vm841_vm1, %v7486_v53  ;;  %3745 = vmatpush1.msra.mxu1 %v3427_v50  ;;  %v3433_v28 = vsel %vm3422_vm8, %v7531_v35, %v3395_v8  ;;  %v3426_v53 = vsel %vm3422_vm8, %v7507_v60, %v7542_v59 }
 0x377   : > { %3315 = vmatprep.mubr.f32.mxu0 %v8304_v34  ;;  %3746 = vmatprep.subr.mxu1 %v3466_v32  ;;  %v2947_v30 = vpop.f32.mrf.mxu1 }
 0x378   : > { %4307 = vmatmul.mubr.msk.f32.gmra.mxu1 %vm841_vm1, %v7650_v13  ;;  %3635 = vmatprep.subr.mxu0 %v3433_v28 }
 0x379   : > { %3588 = vmatprep.mubr.f32.mxu1 %v8304_v34  ;;  %3747 = vmatpush1.msra.mxu1 %v3426_v53  ;;  %v3377_v18 = vpop.permute.xlu0 %3376  ;;  %v7685_v47 = vpop.f32.mrf.mxu1 }
 0x37a   : > { %4302 = vmatmul.mubr.msk.f32.gmra.mxu0 %vm841_vm1, %v7514_v0  ;;  %v3440_v60 = vsel %vm3422_vm8, %v7446_v42, %v3377_v18  ;;  %v3432_v59 = vsel %vm3422_vm8, %v3377_v18, %v3393_v24  ;;  %v3409_v42 = vpop.permute.xlu1 %3408 }
 0x37b   : > { %3320 = vmatprep.mubr.f32.mxu0 %v8304_v34  ;;  %3636 = vmatpush1.msra.mxu0 %v3441_v15  ;;  %v2952_v35 = vpop.f32.mrf.mxu1  ;;  %v3464_v44 = vsel %vm3422_vm8, %v3409_v42, %v7332_v39  ;;  %v3479_v39 = vld [vmem:[#allocation8 + $0x178] sm:$0xff] }
 0x37c   : > { %4308 = vmatmul.mubr.msk.f32.gmra.mxu1 %vm841_vm1, %v7671_v29  ;;  %3637 = vmatprep.subr.mxu0 %v3432_v59 }
 0x37d   : > { %3593 = vmatprep.mubr.f32.mxu1 %v8304_v34  ;;  %3638 = vmatpush1.msra.mxu0 %v3440_v60  ;;  %v3411_v0 = vpop.permute.xlu0 %3410  ;;  %v7700_v49 = vpop.f32.mrf.mxu1 }
 0x37e   : > { %4303 = vmatmul.mubr.msk.f32.gmra.mxu0 %vm841_vm1, %v7534_v10  ;;  %v3425_v43 = vsel %vm3422_vm8, %v3395_v8, %v3411_v0  ;;  %v3465_v2 = vsel %vm3422_vm8, %v3411_v0, %v7272_v3  ;;  %v3424_v3 = vsel %vm3422_vm8, %v3393_v24, %v3409_v42 }
 0x37f   : > { %3748 = vmatprep.subr.mxu1 %v3465_v2  ;;  %3673 = vmatprep.mubr.f32.mxu0 %v8304_v34  ;;  %v2957_v19 = vpop.f32.mrf.mxu1 }
 0x380   : > { %4309 = vmatmul.mubr.msk.f32.gmra.mxu1 %vm841_vm1, %v7690_v17 }
 0x381   : > { %3598 = vmatprep.mubr.f32.mxu1 %v8304_v34  ;;  %3749 = vmatpush1.msra.mxu1 %v3425_v43  ;;  %v3391_v10 = vpop.permute.xlu0 %3390  ;;  %v7715_v45 = vpop.f32.mrf.mxu1 }
 0x382   : > { %3750 = vmatprep.subr.mxu1 %v3464_v44  ;;  %v3431_v55 = vsel %vm3422_vm8, %v3375_v52, %v3391_v10 }
 0x383   : > { %3751 = vmatpush1.msra.mxu1 %v3424_v3  ;;  %3639 = vmatprep.subr.mxu0 %v3431_v55  ;;  %v2962_v21 = vpop.f32.mrf.mxu1 }
 0x384   : > { %4310 = vmatmul.mubr.msk.f32.gmra.mxu1 %vm841_vm1, %v3478_v57  ;;  %3640 = vmatpush1.msra.mxu0 %v3439_v61 }
 0x385   : > { %3603 = vmatprep.mubr.f32.mxu1 %v8304_v34  ;;  %v3407_v11 = vpop.permute.xlu0 %3406  ;;  %4312 = vmatmul.mubr.msk.f32.vlgmr.msra.gmra.mxu0 %vm841_vm1, %v7582_v63  ;;  %v7727_v23 = vpop.f32.mrf.mxu1 }
 0x386   : > { %v3423_v6 = vsel %vm3422_vm8, %v3391_v10, %v3407_v11  ;;  %v3463_v48 = vsel %vm3422_vm8, %v3407_v11, %v7499_v62  ;;  %3679 = vmatprep.mubr.f32.mxu0 %v8304_v34  ;;  %8337 = vst [vmem:[#allocation38_spill] sm:$0xff] %v7727_v23 }
 0x387   : > { %3752 = vmatprep.subr.mxu1 %v3463_v48  ;;  %v2967_v16 = vpop.f32.mrf.mxu1 }
 0x388   : > { %4311 = vmatmul.mubr.msk.f32.gmra.mxu1 %vm841_vm1, %v3479_v39 }
 0x389   : > { %3753 = vmatpush1.msra.mxu1 %v3423_v6  ;;  %3786 = vmatprep.mubr.f32.mxu1 %v8304_v34  ;;  %v7734_v40 = vpop.f32.mrf.mxu1 }
 0x38a   : > { %4313 = vmatmul.mubr.msk.f32.gmra.mxu0 %vm841_vm1, %v7600_v22  ;;  %8338 = vst [vmem:[#allocation39_spill] sm:$0xff] %v7734_v40 }
 0x38b   : > { %3685 = vmatprep.mubr.f32.mxu0 %v8304_v34  ;;  %v2972_v9 = vpop.f32.mrf.mxu1 }
 0x38c   : > { %4320 = vmatmul.mubr.msk.f32.vlgmr.msra.gmra.mxu1 %vm841_vm1, %v7582_v63  ;;  %v7774_v63 = vpop.f32.mrf.mxu0 }
 0x38d   : > { %3791 = vmatprep.mubr.f32.mxu1 %v8304_v34  ;;  %v7742_v62 = vpop.f32.mrf.mxu1 }
 0x38e   : > { %4314 = vmatmul.mubr.msk.f32.gmra.mxu0 %vm841_vm1, %v7629_v25  ;;  %8339 = vst [vmem:[#allocation40_spill] sm:$0xff] %v7742_v62 }
 0x38f   : > { %3691 = vmatprep.mubr.f32.mxu0 %v8304_v34  ;;  %v2977_v37 = vpop.f32.mrf.mxu1 }
 0x390   : > { %4321 = vmatmul.mubr.msk.f32.gmra.mxu1 %vm841_vm1, %v7600_v22  ;;  %v7776_v22 = vpop.f32.mrf.mxu0 }
 0x391   : > { %3796 = vmatprep.mubr.f32.mxu1 %v8304_v34 }
 0x392   : > { %4315 = vmatmul.mubr.msk.f32.gmra.mxu0 %vm841_vm1, %v7650_v13  ;;  %v7778_v20 = vpop.f32.mrf.mxu0 }
 0x393   : > { %3697 = vmatprep.mubr.f32.mxu0 %v8304_v34 }
 0x394   : > { %4322 = vmatmul.mubr.msk.f32.gmra.mxu1 %vm841_vm1, %v7629_v25  ;;  %v7780_v41 = vpop.f32.mrf.mxu0 }
 0x395   : > { %3801 = vmatprep.mubr.f32.mxu1 %v8304_v34 }
 0x396   : > { %4316 = vmatmul.mubr.msk.f32.gmra.mxu0 %vm841_vm1, %v7671_v29  ;;  %v7782_v38 = vpop.f32.mrf.mxu0 }
 0x397   : > { %3703 = vmatprep.mubr.f32.mxu0 %v8304_v34 }
 0x398   : > { %4323 = vmatmul.mubr.msk.f32.gmra.mxu1 %vm841_vm1, %v7650_v13  ;;  %v7784_v26 = vpop.f32.mrf.mxu0 }
 0x399   : > { %3806 = vmatprep.mubr.f32.mxu1 %v8304_v34 }
 0x39a   : > { %4317 = vmatmul.mubr.msk.f32.gmra.mxu0 %vm841_vm1, %v7690_v17  ;;  %v7786_v1 = vpop.f32.mrf.mxu0 }
 0x39b   : > { %3709 = vmatprep.mubr.f32.mxu0 %v8304_v34 }
 0x39c   : > { %4324 = vmatmul.mubr.msk.f32.gmra.mxu1 %vm841_vm1, %v7671_v29  ;;  %v7788_v25 = vpop.f32.mrf.mxu0 }
 0x39d   : > { %3811 = vmatprep.mubr.f32.mxu1 %v8304_v34 }
 0x39e   : > { %4318 = vmatmul.mubr.msk.f32.gmra.mxu0 %vm841_vm1, %v3478_v57  ;;  %v7790_v27 = vpop.f32.mrf.mxu0 }
 0x39f   : > { %3715 = vmatprep.mubr.f32.mxu0 %v8304_v34 }
 0x3a0   : > { %4325 = vmatmul.mubr.msk.f32.gmra.mxu1 %vm841_vm1, %v7690_v17 }
 0x3a1   : > { %3816 = vmatprep.mubr.f32.mxu1 %v8304_v34 }
 0x3a2   : > { %4319 = vmatmul.mubr.msk.f32.gmra.mxu0 %vm841_vm1, %v3479_v39 }
 0x3a4   : > { %4326 = vmatmul.mubr.msk.f32.gmra.mxu1 %vm841_vm1, %v3478_v57 }
 0x3a5   : > { %3821 = vmatprep.mubr.f32.mxu1 %v8304_v34  ;;  %v7792_v34 = vpop.f32.mrf.mxu0 }
 0x3a7   : > { %v7794_v46 = vpop.f32.mrf.mxu0 }
 0x3a8   : > { %4327 = vmatmul.mubr.msk.f32.gmra.mxu1 %vm841_vm1, %v3479_v39 }
 0x3a9   : > { %v7796_v24 = vpop.f32.mrf.mxu0 }
 0x3ab   : > { %v7798_v33 = vpop.f32.mrf.mxu0 }
 0x3ac   : > { %8340 = vst [vmem:[#allocation42_spill] sm:$0xff] %v7798_v33 }
 0x3ad   : > { %v7800_v50 = vpop.f32.mrf.mxu0 }
 0x3ae   : > { %8341 = vst [vmem:[#allocation44_spill] sm:$0xff] %v7800_v50 }
 0x3af   : > { %v7802_v13 = vpop.f32.mrf.mxu0 }
 0x3b0   : > { %8342 = vst [vmem:[#allocation46_spill] sm:$0xff] %v7802_v13 }
 0x3b1   : > { %v7804_v8 = vpop.f32.mrf.mxu0 }
 0x3b2   : > { %8343 = vst [vmem:[#allocation48_spill] sm:$0xff] %v7804_v8  ;;  %v7855_v8 = vpop.permute.xlu1 %3870 }
 0x3fc   : > { %v3069_v4 = vpop.f32.mrf.mxu0 }
 0x3fe   : > { %v3070_v32 = vpop.f32.mrf.mxu0 }
 0x401   : > { %v3074_v28 = vpop.f32.mrf.mxu0 }
 0x403   : > { %v3075_v53 = vpop.f32.mrf.mxu0 }
 0x406   : > { %v3079_v52 = vpop.f32.mrf.mxu0 }
 0x408   : > { %v3080_v29 = vpop.f32.mrf.mxu0 }
 0x409   : > { %v7806_v18 = vpop.f32.mrf.mxu1  ;;  %v3081_v33 = vadd.f32 %v3080_v29, %v7473_v51 }
 0x40b   : > { %v7808_v30 = vpop.f32.mrf.mxu1 }
 0x40c   : > { %v3084_v15 = vpop.f32.mrf.mxu0 }
 0x40e   : > { %v3085_v60 = vpop.f32.mrf.mxu0 }
 0x40f   : > { %v7810_v59 = vpop.f32.mrf.mxu1  ;;  %v3086_v51 = vadd.f32 %v3085_v60, %v7545_v58 }
 0x411   : > { %v3089_v17 = vpop.f32.mrf.mxu0  ;;  %v7812_v0 = vpop.f32.mrf.mxu1 }
 0x413   : > { %v7814_v35 = vpop.f32.mrf.mxu0 }
 0x414   : > { %v7816_v42 = vpop.f32.mrf.mxu1 }
 0x416   : > { %v3094_v43 = vpop.f32.mrf.mxu0  ;;  %v7818_v2 = vpop.f32.mrf.mxu1 }
 0x418   : > { %v7820_v57 = vpop.f32.mrf.mxu0  ;;  %v7822_v10 = vpop.f32.mrf.mxu1 }
 0x41a   : > { %v3099_v44 = vpop.f32.mrf.mxu0  ;;  %v7824_v19 = vpop.f32.mrf.mxu1 }
 0x41c   : > { %v7826_v3 = vpop.f32.mrf.mxu0  ;;  %v7828_v55 = vpop.f32.mrf.mxu1 }
 0x41e   : > { %v3104_v61 = vpop.f32.mrf.mxu0  ;;  %v7830_v39 = vpop.f32.mrf.mxu1 }
 0x41f   : > { %v3071_v61 = vadd.f32 %v3070_v32, %v7385_v36 }
 0x420   : > { %v7832_v11 = vpop.f32.mrf.mxu0  ;;  %v7834_v21 = vpop.f32.mrf.mxu1 }
 0x422   : > { %v7836_v6 = vpop.f32.mrf.mxu0  ;;  %v7838_v48 = vpop.f32.mrf.mxu1 }
 0x423   : > { %8344 = vst [vmem:[#allocation50_spill] sm:$0xff] %v7838_v48 }
 0x424   : > { %v3289_v16 = vpop.f32.mrf.mxu0  ;;  %v7840_v9 = vpop.f32.mrf.mxu1 }
 0x425   : > { %8345 = vst [vmem:[#allocation52_spill] sm:$0xff] %v7840_v9 }
 0x426   : > { %v7842_v37 = vpop.f32.mrf.mxu0  ;;  %v7844_v4 = vpop.f32.mrf.mxu1 }
 0x427   : > { %8346 = vst [vmem:[#allocation54_spill] sm:$0xff] %v7844_v4 }
 0x428   : > { %v3294_v28 = vpop.f32.mrf.mxu0  ;;  %v7846_v52 = vpop.f32.mrf.mxu1 }
 0x429   : > { %8347 = vst [vmem:[#allocation56_spill] sm:$0xff] %v7846_v52  ;;  %v3076_v28 = vadd.f32 %v3075_v53, %v7428_v5  ;;  %v8351_v53 = vld [vmem:[#allocation28_spill] sm:$0xff] }
 0x42a   : > { %v7848_v15 = vpop.f32.mrf.mxu0  ;;  %v7850_v17 = vpop.f32.mrf.mxu1 }
 0x42b   : > { %8348 = vst [vmem:[#allocation33_spill] sm:$0xff] %v7850_v17 }
 0x42c   : > { %v3299_v43 = vpop.f32.mrf.mxu0  ;;  %v3570_v44 = vpop.f32.mrf.mxu1 }
 0x42d   : > { %v7861_v43 = vpop.permute.xlu0 %3875  ;;  %v8349_v44 = vld [vmem:[#allocation75_spill] sm:$0xff] }
 0x42e   : > { %v7853_v62 = vpop.f32.mrf.mxu0  ;;  %v3571_v16 = vpop.f32.mrf.mxu1 }
 0x42f   : > { %v3827_v40 = vadd.f32 %v3571_v16, %v3071_v61 }
 0x430   : > { %v3304_v13 = vpop.f32.mrf.mxu0  ;;  %v3575_v23 = vpop.f32.mrf.mxu1 }
 0x431   : > { %v3908_v52 = vadd.f32 %v7855_v8, %v3827_v40  ;;  %v7873_v13 = vpop.permute.xlu1 %3880 }
 0x432   : > { %v7859_v4 = vpop.f32.mrf.mxu0  ;;  %v3576_v17 = vpop.f32.mrf.mxu1 }
 0x433   : > { %v3940_v36 = vadd.f32 %v3908_v52, %v8349_v44  ;;  %v3831_v32 = vadd.f32 %v3576_v17, %v3076_v28  ;;  %v7881_v28 = vpop.permute.xlu0 %3885  ;;  %v8352_v44 = vld [vmem:[#allocation26_spill] sm:$0xff] }
 0x434   : > { %v3309_v50 = vpop.f32.mrf.mxu0  ;;  %v3580_v9 = vpop.f32.mrf.mxu1 }
 0x435   : > { %3972 = vst [vmem:[%s7867_s30] sm:$0xff] %v3940_v36  ;;  %v3912_v5 = vadd.f32 %v7861_v43, %v3831_v32 }
 0x436   : > { %v7871_v23 = vpop.f32.mrf.mxu0  ;;  %v3581_v40 = vpop.f32.mrf.mxu1 }
 0x437   : > { %8350 = vst [vmem:[#allocation58_spill] sm:$0xff] %v7871_v23  ;;  %v3944_v52 = vadd.f32 %v3912_v5, %v8351_v53  ;;  %v3835_v50 = vadd.f32 %v3581_v40, %v3081_v33  ;;  %v3091_v33 = vadd.f32 %v7814_v35, %v7564_v54  ;;  %v7890_v40 = vpop.permute.xlu1 %3890  ;;  %v8353_v53 = vld [vmem:[#allocation25_spill] sm:$0xff] }
 0x438   : > { %v3314_v9 = vpop.f32.mrf.mxu0  ;;  %v3585_v17 = vpop.f32.mrf.mxu1 }
 0x439   : > { %3976 = vst [vmem:[%s7867_s30 + $0x20] sm:$0xff] %v3944_v52  ;;  %v3916_v29 = vadd.f32 %v7873_v13, %v3835_v50 }
 0x43a   : > { %v7879_v61 = vpop.f32.mrf.mxu0  ;;  %v3586_v16 = vpop.f32.mrf.mxu1 }
 0x43b   : > { %v3948_v36 = vadd.f32 %v3916_v29, %v8352_v44  ;;  %v3839_v32 = vadd.f32 %v3586_v16, %v3086_v51  ;;  %v7898_v16 = vpop.permute.xlu0 %3895  ;;  %v3175_v44 = vadd.f32 %v7806_v18, %v7774_v63 }
 0x43c   : > { %v3319_v23 = vpop.f32.mrf.mxu0  ;;  %v3590_v48 = vpop.f32.mrf.mxu1 }
 0x43d   : > { %3980 = vst [vmem:[%s7867_s30 + $0x40] sm:$0xff] %v3948_v36  ;;  %v3920_v58 = vadd.f32 %v7881_v28, %v3839_v32  ;;  %v3096_v48 = vadd.f32 %v7820_v57, %v7584_v14  ;;  %v8354_v23 = vld [vmem:[#allocation24_spill] sm:$0xff]  ;;  %v3101_v32 = vadd.f32 %v7826_v3, %v7605_v7  ;;  %v3181_v3 = vadd.f32 %v7810_v59, %v7778_v20  ;;  %v8357_v59 = vld [vmem:[#allocation22_spill] sm:$0xff] }
 0x43e   : > { %v7888_v60 = vpop.f32.mrf.mxu0  ;;  %v3591_v5 = vpop.f32.mrf.mxu1  ;;  %v3288_v20 = vadd.f32 %v7836_v6, %v7645_v31  ;;  %v3187_v31 = vadd.f32 %v7816_v42, %v7782_v38  ;;  %v3189_v6 = vadd.f32 %v7818_v2, %v7784_v26  ;;  %v3193_v38 = vadd.f32 %v7822_v10, %v7786_v1 }
 0x43f   : > { %v3952_v52 = vadd.f32 %v3920_v58, %v8353_v53  ;;  %v3843_v50 = vadd.f32 %v3591_v5, %v3091_v33  ;;  %v3177_v33 = vadd.f32 %v7808_v30, %v7776_v22  ;;  %v8355_v53 = vld [vmem:[#allocation76_spill] sm:$0xff]  ;;  %v3183_v30 = vadd.f32 %v7812_v0, %v7780_v41 }
 0x440   : > { %v3595_v9 = vpop.f32.mrf.mxu1  ;;  %v3324_v17 = vpop.f32.mrf.mxu0 }
 0x441   : > { %3984 = vst [vmem:[%s7867_s30 + $0x60] sm:$0xff] %v3952_v52  ;;  %v3924_v54 = vadd.f32 %v7890_v40, %v3843_v50  ;;  %v7909_v17 = vpop.permute.xlu1 %3900 }
 0x442   : > { %v3596_v35 = vpop.f32.mrf.mxu1 }
 0x443   : > { %v3956_v51 = vadd.f32 %v3924_v54, %v8354_v23  ;;  %v3847_v29 = vadd.f32 %v3596_v35, %v3096_v48  ;;  %v3106_v48 = vadd.f32 %v7832_v11, %v7631_v56  ;;  %v8356_v35 = vld [vmem:[#allocation62_spill] sm:$0xff] }
 0x444   : > { %v3600_v36 = vpop.f32.mrf.mxu1 }
 0x445   : > { %3988 = vst [vmem:[%s7867_s30 + $0x80] sm:$0xff] %v3956_v51  ;;  %v3928_v14 = vadd.f32 %v7898_v16, %v3847_v29  ;;  %v3675_v57 = vpop.f32.mrf.mxu0 }
 0x446   : > { %v3601_v58 = vpop.f32.mrf.mxu1  ;;  %v3828_v5 = vadd.f32 %v3675_v57, %v3175_v44  ;;  %v7922_v44 = vpop.permute.xlu0 %3905 }
 0x447   : > { %v3960_v52 = vadd.f32 %v3928_v14, %v8355_v53  ;;  %v3851_v50 = vadd.f32 %v3601_v58, %v3101_v32  ;;  %v3677_v9 = vpop.f32.mrf.mxu0  ;;  %v8358_v32 = vld [vmem:[#allocation41_spill] sm:$0xff]  ;;  %v3293_v53 = vadd.f32 %v7842_v37, %v7662_v12 }
 0x448   : > { %v3605_v63 = vpop.f32.mrf.mxu1  ;;  %v3909_v18 = vadd.f32 %v7855_v8, %v3828_v5  ;;  %v3829_v7 = vadd.f32 %v3677_v9, %v3177_v33  ;;  %v8359_v9 = vld [vmem:[#allocation21_spill] sm:$0xff] }
 0x449   : > { %3992 = vst [vmem:[%s7867_s30 + $0xa0] sm:$0xff] %v3960_v52  ;;  %v3932_v22 = vadd.f32 %v7909_v17, %v3851_v50  ;;  %v8361_v12 = vld [vmem:[#allocation37_spill] sm:$0xff] }
 0x44a   : > { %v3606_v54 = vpop.f32.mrf.mxu1  ;;  %v3941_v23 = vadd.f32 %v3909_v18, %v8356_v35  ;;  %v3910_v51 = vadd.f32 %v7855_v8, %v3829_v7  ;;  %v3681_v29 = vpop.f32.mrf.mxu0  ;;  %v8360_v18 = vld [vmem:[#allocation43_spill] sm:$0xff] }
 0x44b   : > { %v3964_v56 = vadd.f32 %v3932_v22, %v8357_v59  ;;  %v3855_v11 = vadd.f32 %v3606_v54, %v3106_v48  ;;  %v3832_v36 = vadd.f32 %v3681_v29, %v3181_v3  ;;  %v8362_v22 = vld [vmem:[#allocation63_spill] sm:$0xff]  ;;  %v3298_v29 = vadd.f32 %v7848_v15, %v7685_v47  ;;  %v8364_v15 = vld [vmem:[#allocation36_spill] sm:$0xff] }
 0x44c   : > { %3973 = vst [vmem:[%s7867_s30 + $0x8] sm:$0xff] %v3941_v23  ;;  %v3942_v14 = vadd.f32 %v3910_v51, %v8358_v32  ;;  %v3788_v41 = vpop.f32.mrf.mxu1  ;;  %v3683_v0 = vpop.f32.mrf.mxu0  ;;  %v3195_v59 = vadd.f32 %v7824_v19, %v7788_v25 }
 0x44d   : > { %3996 = vst [vmem:[%s7867_s30 + $0xc0] sm:$0xff] %v3964_v56  ;;  %v3936_v57 = vadd.f32 %v7922_v44, %v3855_v11  ;;  %v3913_v33 = vadd.f32 %v7861_v43, %v3832_v36  ;;  %v3830_v58 = vadd.f32 %v3788_v41, %v3288_v20  ;;  %v3833_v5 = vadd.f32 %v3683_v0, %v3183_v30  ;;  %v8363_v11 = vld [vmem:[#allocation64_spill] sm:$0xff]  ;;  %v8365_v41 = vld [vmem:[#allocation47_spill] sm:$0xff] }
 0x44e   : > { %3974 = vst [vmem:[%s7867_s30 + $0x10] sm:$0xff] %v3942_v14  ;;  %v3790_v52 = vpop.f32.mrf.mxu1  ;;  %v3687_v50 = vpop.f32.mrf.mxu0  ;;  %v3199_v56 = vadd.f32 %v7828_v55, %v7790_v27  ;;  %v3303_v27 = vadd.f32 %v7853_v62, %v7700_v49  ;;  %v8366_v55 = vld [vmem:[#allocation49_spill] sm:$0xff] }
 0x44f   : > { %v3968_v63 = vadd.f32 %v3936_v57, %v8359_v9  ;;  %v3945_v7 = vadd.f32 %v3913_v33, %v8360_v18  ;;  %v3911_v3 = vadd.f32 %v7855_v8, %v3830_v58  ;;  %v3914_v48 = vadd.f32 %v7861_v43, %v3833_v5  ;;  %v8368_v18 = vld [vmem:[#allocation66_spill] sm:$0xff] }
 0x450   : > { %v3836_v26 = vadd.f32 %v3687_v50, %v3187_v31  ;;  %v3793_v42 = vpop.f32.mrf.mxu1  ;;  %v3689_v2 = vpop.f32.mrf.mxu0  ;;  %v3201_v33 = vadd.f32 %v7830_v39, %v7792_v34  ;;  %v8367_v50 = vld [vmem:[#allocation45_spill] sm:$0xff] }
 0x451   : > { %4000 = vst [vmem:[%s7867_s30 + $0xe0] sm:$0xff] %v3968_v63  ;;  %3977 = vst [vmem:[%s7867_s30 + $0x28] sm:$0xff] %v3945_v7  ;;  %v3943_v37 = vadd.f32 %v3911_v3, %v8361_v12  ;;  %v3946_v30 = vadd.f32 %v3914_v48, %v8362_v22  ;;  %v3834_v54 = vadd.f32 %v3793_v42, %v3293_v53  ;;  %v8372_v22 = vld [vmem:[#allocation52_spill] sm:$0xff] }
 0x452   : > { %v3837_v35 = vadd.f32 %v3689_v2, %v3189_v6  ;;  %v3917_v8 = vadd.f32 %v7873_v13, %v3836_v26  ;;  %v3795_v23 = vpop.f32.mrf.mxu1  ;;  %v3693_v51 = vpop.f32.mrf.mxu0  ;;  %v3205_v53 = vadd.f32 %v7834_v21, %v7794_v46  ;;  %v8369_v21 = vld [vmem:[#allocation68_spill] sm:$0xff]  ;;  %v8370_v2 = vld [vmem:[#allocation50_spill] sm:$0xff] }
 0x453   : > { %3975 = vst [vmem:[%s7867_s30 + $0x18] sm:$0xff] %v3943_v37  ;;  %3978 = vst [vmem:[%s7867_s30 + $0x30] sm:$0xff] %v3946_v30  ;;  %v3915_v1 = vadd.f32 %v7861_v43, %v3834_v54  ;;  %v3840_v20 = vadd.f32 %v3693_v51, %v3193_v38  ;;  %v3207_v12 = vadd.f32 %v8370_v2, %v7796_v24  ;;  %v8371_v37 = vld [vmem:[#allocation42_spill] sm:$0xff]  ;;  %v8373_v54 = vld [vmem:[#allocation65_spill] sm:$0xff] }
 0x454   : > { %v3918_v10 = vadd.f32 %v7873_v13, %v3837_v35  ;;  %v3949_v36 = vadd.f32 %v3917_v8, %v8363_v11  ;;  %v3798_v32 = vpop.f32.mrf.mxu1  ;;  %v3695_v47 = vpop.f32.mrf.mxu0  ;;  %v8374_v8 = vld [vmem:[#allocation53_spill] sm:$0xff]  ;;  %v8378_v11 = vld [vmem:[#allocation58_spill] sm:$0xff]  ;;  %v8390_v2 = vld [vmem:[#allocation40_spill] sm:$0xff] }
 0x455   : > { %v3947_v14 = vadd.f32 %v3915_v1, %v8364_v15  ;;  %v3921_v43 = vadd.f32 %v7881_v28, %v3840_v20  ;;  %v3838_v57 = vadd.f32 %v3798_v32, %v3298_v29  ;;  %v3841_v25 = vadd.f32 %v3695_v47, %v3195_v59  ;;  %v8375_v29 = vld [vmem:[#allocation44_spill] sm:$0xff]  ;;  %v8376_v1 = vld [vmem:[#allocation54_spill] sm:$0xff]  ;;  %v8379_v32 = vld [vmem:[#allocation55_spill] sm:$0xff] }
 0x456   : > { %v3950_v0 = vadd.f32 %v3918_v10, %v8365_v41  ;;  %3981 = vst [vmem:[%s7867_s30 + $0x48] sm:$0xff] %v3949_v36  ;;  %v3800_v19 = vpop.f32.mrf.mxu1  ;;  %v3699_v58 = vpop.f32.mrf.mxu0  ;;  %v3213_v10 = vadd.f32 %v8376_v1, %v8375_v29  ;;  %v8380_v41 = vld [vmem:[#allocation46_spill] sm:$0xff] }
 0x457   : > { %3979 = vst [vmem:[%s7867_s30 + $0x38] sm:$0xff] %v3947_v14  ;;  %v3953_v5 = vadd.f32 %v3921_v43, %v8366_v55  ;;  %v3919_v31 = vadd.f32 %v7873_v13, %v3838_v57  ;;  %v3844_v6 = vadd.f32 %v3699_v58, %v3199_v56  ;;  %v3922_v34 = vadd.f32 %v7881_v28, %v3841_v25  ;;  %v8377_v56 = vld [vmem:[#allocation38_spill] sm:$0xff]  ;;  %v8382_v19 = vld [vmem:[#allocation51_spill] sm:$0xff] }
 0x458   : > { %3982 = vst [vmem:[%s7867_s30 + $0x50] sm:$0xff] %v3950_v0  ;;  %v3803_v39 = vpop.f32.mrf.mxu1  ;;  %v3701_v52 = vpop.f32.mrf.mxu0  ;;  %v3308_v13 = vadd.f32 %v7859_v4, %v7715_v45  ;;  %v3211_v45 = vadd.f32 %v8372_v22, %v8371_v37  ;;  %v3313_v36 = vadd.f32 %v8378_v11, %v8377_v56  ;;  %v8381_v0 = vld [vmem:[#allocation56_spill] sm:$0xff]  ;;  %v8391_v37 = vld [vmem:[#allocation35_spill] sm:$0xff] }
 0x459   : > { %3985 = vst [vmem:[%s7867_s30 + $0x68] sm:$0xff] %v3953_v5  ;;  %v3951_v9 = vadd.f32 %v3919_v31, %v8367_v50  ;;  %v3925_v49 = vadd.f32 %v7890_v40, %v3844_v6  ;;  %v3842_v62 = vadd.f32 %v3803_v39, %v3303_v27  ;;  %v3845_v63 = vadd.f32 %v3701_v52, %v3201_v33  ;;  %v8383_v31 = vld [vmem:[#allocation39_spill] sm:$0xff]  ;;  %v8385_v52 = vld [vmem:[#allocation72_spill] sm:$0xff] }
 0x45a   : > { %v3954_v7 = vadd.f32 %v3922_v34, %v8368_v18  ;;  %v3805_v3 = vpop.f32.mrf.mxu1  ;;  %v3705_v46 = vpop.f32.mrf.mxu0  ;;  %v3217_v43 = vadd.f32 %v8381_v0, %v8380_v41  ;;  %v8384_v6 = vld [vmem:[#allocation71_spill] sm:$0xff] }
 0x45b   : > { %3983 = vst [vmem:[%s7867_s30 + $0x58] sm:$0xff] %v3951_v9  ;;  %v3957_v48 = vadd.f32 %v3925_v49, %v8369_v21  ;;  %v3923_v38 = vadd.f32 %v7881_v28, %v3842_v62  ;;  %v3926_v26 = vadd.f32 %v7890_v40, %v3845_v63  ;;  %v3848_v42 = vadd.f32 %v3705_v46, %v3205_v53  ;;  %v8386_v63 = vld [vmem:[#allocation48_spill] sm:$0xff]  ;;  %v8388_v3 = vld [vmem:[#allocation69_spill] sm:$0xff]  ;;  %v8389_v21 = vld [vmem:[#allocation59_spill] sm:$0xff] }
 0x45c   : > { %3986 = vst [vmem:[%s7867_s30 + $0x70] sm:$0xff] %v3954_v7  ;;  %v3808_v4 = vpop.f32.mrf.mxu1  ;;  %v3707_v30 = vpop.f32.mrf.mxu0 }
 0x45d   : > { %3989 = vst [vmem:[%s7867_s30 + $0x88] sm:$0xff] %v3957_v48  ;;  %v3955_v35 = vadd.f32 %v3923_v38, %v8373_v54  ;;  %v3958_v23 = vadd.f32 %v3926_v26, %v8374_v8  ;;  %v3929_v28 = vadd.f32 %v7898_v16, %v3848_v42  ;;  %v3846_v51 = vadd.f32 %v3808_v4, %v3308_v13  ;;  %v8387_v13 = vld [vmem:[#allocation33_spill] sm:$0xff] }
 0x45e   : > { %v3849_v24 = vadd.f32 %v3707_v30, %v3207_v12  ;;  %v3810_v20 = vpop.f32.mrf.mxu1  ;;  %v3711_v59 = vpop.f32.mrf.mxu0  ;;  %v3219_v18 = vadd.f32 %v8387_v13, %v8386_v63  ;;  %v3323_v12 = vadd.f32 %v7888_v60, %v8390_v2  ;;  %v8392_v54 = vld [vmem:[#allocation57_spill] sm:$0xff]  ;;  %v8393_v60 = vld [vmem:[#allocation74_spill] sm:$0xff] }
 0x45f   : > { %3987 = vst [vmem:[%s7867_s30 + $0x78] sm:$0xff] %v3955_v35  ;;  %3990 = vst [vmem:[%s7867_s30 + $0x90] sm:$0xff] %v3958_v23  ;;  %v3961_v47 = vadd.f32 %v3929_v28, %v8379_v32  ;;  %v3927_v15 = vadd.f32 %v7890_v40, %v3846_v51  ;;  %v3852_v14 = vadd.f32 %v3711_v59, %v3211_v45 }
 0x460   : > { %v3930_v57 = vadd.f32 %v7898_v16, %v3849_v24  ;;  %v3813_v33 = vpop.f32.mrf.mxu1  ;;  %v3713_v25 = vpop.f32.mrf.mxu0  ;;  %v3318_v40 = vadd.f32 %v7879_v61, %v8383_v31 }
 0x461   : > { %3993 = vst [vmem:[%s7867_s30 + $0xa8] sm:$0xff] %v3961_v47  ;;  %v3959_v58 = vadd.f32 %v3927_v15, %v8382_v19  ;;  %v3933_v27 = vadd.f32 %v7909_v17, %v3852_v14  ;;  %v3850_v55 = vadd.f32 %v3813_v33, %v3313_v36  ;;  %v3853_v5 = vadd.f32 %v3713_v25, %v3213_v10 }
 0x462   : > { %v3962_v53 = vadd.f32 %v3930_v57, %v8384_v6  ;;  %v3815_v34 = vpop.f32.mrf.mxu1  ;;  %v3717_v39 = vpop.f32.mrf.mxu0 }
 0x463   : > { %3991 = vst [vmem:[%s7867_s30 + $0x98] sm:$0xff] %v3959_v58  ;;  %v3965_v50 = vadd.f32 %v3933_v27, %v8385_v52  ;;  %v3931_v9 = vadd.f32 %v7898_v16, %v3850_v55  ;;  %v3934_v49 = vadd.f32 %v7909_v17, %v3853_v5  ;;  %v3856_v62 = vadd.f32 %v3717_v39, %v3217_v43 }
 0x464   : > { %3994 = vst [vmem:[%s7867_s30 + $0xb0] sm:$0xff] %v3962_v53  ;;  %v3818_v7 = vpop.f32.mrf.mxu1  ;;  %v3719_v61 = vpop.f32.mrf.mxu0 }
 0x465   : > { %3997 = vst [vmem:[%s7867_s30 + $0xc8] sm:$0xff] %v3965_v50  ;;  %v3963_v46 = vadd.f32 %v3931_v9, %v8388_v3  ;;  %v3966_v48 = vadd.f32 %v3934_v49, %v8389_v21  ;;  %v3937_v16 = vadd.f32 %v7922_v44, %v3856_v62  ;;  %v3854_v38 = vadd.f32 %v3818_v7, %v3318_v40 }
 0x466   : > { %v3857_v26 = vadd.f32 %v3719_v61, %v3219_v18  ;;  %v3820_v42 = vpop.f32.mrf.mxu1 }
 0x467   : > { %3995 = vst [vmem:[%s7867_s30 + $0xb8] sm:$0xff] %v3963_v46  ;;  %3998 = vst [vmem:[%s7867_s30 + $0xd0] sm:$0xff] %v3966_v48  ;;  %v3969_v22 = vadd.f32 %v3937_v16, %v8391_v37  ;;  %v3935_v45 = vadd.f32 %v7909_v17, %v3854_v38  ;;  %v8394_v17 = vld [vmem:[#allocation73_spill] sm:$0xff] }
 0x468   : > { %v3938_v4 = vadd.f32 %v7922_v44, %v3857_v26  ;;  %v3823_v30 = vpop.f32.mrf.mxu1 }
 0x469   : > { %4001 = vst [vmem:[%s7867_s30 + $0xe8] sm:$0xff] %v3969_v22  ;;  %v3967_v35 = vadd.f32 %v3935_v45, %v8392_v54  ;;  %v3858_v8 = vadd.f32 %v3823_v30, %v3323_v12 }
 0x46a   : > { %v3970_v23 = vadd.f32 %v3938_v4, %v8393_v60  ;;  %v3825_v28 = vpop.f32.mrf.mxu1 }
 0x46b   : > { %3999 = vst [vmem:[%s7867_s30 + $0xd8] sm:$0xff] %v3967_v35  ;;  %v3939_v51 = vadd.f32 %v7922_v44, %v3858_v8 }
 0x46c   : > { %4002 = vst [vmem:[%s7867_s30 + $0xf0] sm:$0xff] %v3970_v23 }
 0x46d   : > { %v3971_v29 = vadd.f32 %v3939_v51, %v8394_v17 }
 0x46f   : > { %4003 = vst [vmem:[%s7867_s30 + $0xf8] sm:$0xff] %v3971_v29 }
 0x470   : > { %4599 = shalt.err (!%p4596_p0)
}
 0x471   : > { %s4600_s1 = scalar_lea.hbm %s8041_s22, 4096  ;;  %s4604_s6 = scalar_lea.hbm %s8098_s5, 8192 }
 0x472   : > { %p4601_p4 = scmp.ne.s32.totalorder %s8041_s22, %s4600_s1  ;;  %p4605_p13 = scmp.lt.s32.totalorder %s8041_s22, %s8098_s5 }
 0x473   : > { %p4606_p3 = scmp.lt.s32.totalorder %s4604_s6, %s4600_s1 }
 0x474   : > { %p4602_p8 = pnand %p4601_p4, %p8395_p5 }
 0x475   : > { %p4607_p6 = por %p4606_p3, %p4605_p13 }
 0x476   : > { %p4603_p12 = pneg %p4602_p8 }
 0x478   : > { %p4608_p7 = pnand %p4607_p6, %p4603_p12 }
 0x47a   : > { %4611 = shalt.err (!%p4608_p7)
}
 0x47b   : > { %s4691_s27 = smov 512   ;;  %s4692_s26 = smov 32  }
 0x47c   : > { %4357 = dma.vmem_to_hbm [thread:$0]  (%p8395_p5), %s8043_s14, 4096, %s8041_s22, %s4005_s21, %s4691_s27, %s4691_s27, %s4692_s26  }
 0x47d PF: > { %s4035_s20 = sand.u32 1, %s4654_s18   ;;  %p8396_p11 = scmp.ne.s32.totalorder %s8176_s13, 0 }
 0x47e   : > { %p8397_p2 = scmp.ge.s32.totalorder %s4674_s23, 2  ;;  %s4036_s24 = scalar_lea.sflag [#allocation4], %s4035_s20 }
 0x480   : > { %p4374_p9 = pnand %p8397_p2, %p8396_p11 }
 0x482   : > { %p4375_p10 = pneg %p4374_p9 }
 0x484   : > { %4649 = dma.done.wait (%p4375_p10), %s4036_s24, 4096  }
 0x485   : > { %4651 = vsyncadd (%p4375_p10), %s4036_s24, 4294963200  ;;  %s25_s23 = sadd.s32 1, %s4674_s23   ;;  %s8398_s28 = sld [smem:[#allocation15_spill]] }
 0x486   : > { %p22_p1 = scmp.ge.s32.totalorder %s25_s23, 4   ;;  %s8399_s20 = sld [smem:[#allocation18_spill]] }
 0x487   : > { %s8400_s21 = sld [smem:[#allocation16_spill]]  ;;  %s8402_s18 = smov %s4658_s19 }
 0x488   : > { %s8401_s22 = sld [smem:[#allocation17_spill]]  ;;  %24 = sbr.rel (!%p22_p1) target bundleno = 13 (0xd), region = 119 }
 0x48b   : > { %s8403_s19 = smov %s8398_s28 }
 0x48d   :  { %4041 = vsyncpa [#allocation3], 1 }
 0x48e   :  { %4043 = vsyncpa [#allocation3 + $0x1], 1 }
 0x48f   :  { %4044 = vsyncpa [#allocation6], 1 }
 0x490   :  { %4046 = vsyncpa [#allocation6 + $0x1], 1 }
 0x491   :  { %4047 = vsyncpa [#allocation9], 1 }
 0x492   :  { %4048 = vsyncpa [#allocation4], 1 }
 0x493   :  { %4050 = vsyncpa [#allocation4 + $0x1], 1 }

</bundles_post_ra>
